<compile_context>
chip_gen: v5e
topology: v5e:2x2
jax: 0.10.0
libtpu: 0.0.40
codegen_flags: <defaults>
</compile_context>

<pallas_src>
import functools

import numpy as np

import jax
import jax.numpy as jnp
from jax import lax
from jax.experimental import pallas as pl
from jax.experimental.pallas import tpu as pltpu


# ----------------------------- small helpers ---------------------------------

def _conv1x1_vpu(x, w_t):
    """1x1 conv as VPU broadcast-MAC.  x: [Cin, P], w_t: [Cout, Cin] -> [Cout, P]."""
    c_in = x.shape[0]
    out = w_t[:, 0:1] * x[0:1, :]
    for ci in range(1, c_in):
        out = out + w_t[:, ci:ci + 1] * x[ci:ci + 1, :]
    return out


def _tap_geometry(cfg, H, W):
    KH, KW = cfg["kernel_size"]
    dh, dw = cfg["dilation"]
    ph, pw = cfg["padding"]
    offsets = tuple((i * dh - ph, j * dw - pw) for i in range(KH) for j in range(KW))
    shifts = tuple(di * W + dj for di, dj in offsets)
    return offsets, shifts


def _tap_mask(offsets, H, W, C_out, B):
    """Host-precomputed validity mask, laid out to match span rows (t*C_out+c) and
    batched lanes (b*HW + h*W + w)."""
    hh, ww = np.meshgrid(np.arange(H), np.arange(W), indexing="ij")
    rows = []
    for di, dj in offsets:
        valid = ((hh + di >= 0) & (hh + di < H) &
                 (ww + dj >= 0) & (ww + dj < W)).astype(np.float32).reshape(1, -1)
        rows.append(np.tile(valid, (C_out, B)))            # [C_out, B*HW]
    return np.concatenate(rows, axis=0)                    # [K*C_out, B*HW]


def _pick_k_chunk(flattened):
    """K-chunk of the Linear1 contraction streamed per grid step (lane aligned)."""
    for c in (256, 512, 128):
        if c <= flattened and flattened % c == 0:
            return c
    return flattened


# ----------------------------- fused Pallas kernel ---------------------------

def _fused_involution_kernel(
        x_ref, w_init_ref, w_red_ref, b_red_ref, w_span_ref, mask_ref,
        w1_ref, b1_ref, w2a_ref, b2a_ref, w2b_ref, b2b_ref,
        o_ref, xpad_ref, flat_ref, h1_ref,
        *, B, HW, C_out, tap_shifts, pad, has_initial, k_chunk):
    j = pl.program_id(0)
    L = B * HW

    # ---- grid step 0: involution for the whole batch (lanes = b*HW + p) -----
    @pl.when(j == 0)
    def _prologue():
        x = x_ref[...]                                        # [C_in, B*HW]

        # content branch: initial 1x1 mapping (VPU broadcast-MAC)
        if has_initial:
            x_map = _conv1x1_vpu(x, w_init_ref[...])          # [C_out, B*HW]
        else:
            x_map = x

        # lane-padded staging so every tap is a static lane-shifted read
        xpad_ref[...] = jnp.zeros_like(xpad_ref)
        xpad_ref[:, pad:pad + L] = x_map

        # kernel branch: reduce(1x1)+folded-BN+ReLU, span(1x1), host-built mask
        red = jnp.maximum(_conv1x1_vpu(x, w_red_ref[...]) + b_red_ref[...], 0.0)
        span = _conv1x1_vpu(red, w_span_ref[...]) * mask_ref[...]   # [K*C_out, B*HW]

        # involution: sum over taps of per-pixel kernel * shifted x_map
        acc = jnp.zeros((C_out, L), jnp.float32)
        for t, s in enumerate(tap_shifts):
            win = xpad_ref[:, pad + s:pad + s + L]
            acc = acc + span[t * C_out:(t + 1) * C_out, :] * win

        # flatten to [B, C_out*HW] in torch order (c*HW + h*W + w) for the head
        for b in range(B):
            for c in range(C_out):
                flat_ref[b:b + 1, c * HW:(c + 1) * HW] = \
                    acc[c:c + 1, b * HW:(b + 1) * HW]

        # Linear1 accumulator starts at the (BN-folded) bias
        h1_ref[...] = jnp.broadcast_to(b1_ref[...], h1_ref.shape)

    # ---- every step: one K-chunk of Linear1 (w1 streamed across the grid) ---
    start = pl.multiple_of(j * k_chunk, k_chunk)
    lhs = flat_ref[:, pl.ds(start, k_chunk)]                  # [B, k_chunk]
    h1_ref[...] += jnp.dot(lhs, w1_ref[...], preferred_element_type=jnp.float32)

    # ---- last step: finish the classifier head -------------------------------
    @pl.when(j == pl.num_programs(0) - 1)
    def _epilogue():
        h1 = jnp.maximum(h1_ref[...], 0.0)
        h2 = jnp.dot(h1, w2a_ref[...], preferred_element_type=jnp.float32) + b2a_ref[...]
        h2 = jnp.maximum(h2, 0.0)
        o_ref[...] = (jnp.dot(h2, w2b_ref[...], preferred_element_type=jnp.float32)
                      + b2b_ref[...])


# ------------------------------- forward wrapper -----------------------------

def involution2d_forward(x, kp, cfg):
    x = jnp.squeeze(x)                       # matches torch.squeeze (no-op here)
    assert x.ndim == 4
    B, C_in, H, W = x.shape
    KH, KW = cfg["kernel_size"]
    sh, sw = cfg["stride"]
    dh, dw = cfg["dilation"]
    ph, pw = cfg["padding"]
    C_out = cfg["out_channels"]
    C_red = C_out // cfg["reduce_ratio"]
    K = KH * KW
    oh = (H + 2 * ph - dh * (KH - 1) - 1) // sh + 1
    ow = (W + 2 * pw - dw * (KW - 1) - 1) // sw + 1
    assert (sh, sw) == (1, 1) and (oh, ow) == (H, W), "fused kernel: 'same' involution only"
    HW = H * W
    L = B * HW
    flattened = C_out * HW

    offsets, shifts = _tap_geometry(cfg, H, W)
    pad = max(1, max(abs(s) for s in shifts))
    has_initial = (C_in != C_out)
    mask = jnp.asarray(_tap_mask(offsets, H, W, C_out, B))    # [K*C_out, B*HW]

    n_h1 = kp["w1f"].shape[-1]
    n_h2 = kp["w2a"].shape[-1]
    n_cls = kp["w2b"].shape[-1]
    assert kp["w1f"].shape[0] == flattened

    k_chunk = _pick_k_chunk(flattened)
    nc = flattened // k_chunk

    # batch folded onto lanes: [C_in, B*HW], lane index = b*HW + h*W + w
    x_cb = jnp.transpose(x.reshape(B, C_in, HW), (1, 0, 2)).reshape(C_in, L)

    kernel = functools.partial(
        _fused_involution_kernel, B=B, HW=HW, C_out=C_out,
        tap_shifts=shifts, pad=pad, has_initial=has_initial, k_chunk=k_chunk)

    out = pl.pallas_call(
        kernel,
        grid=(nc,),
        in_specs=[
            pl.BlockSpec((C_in, L), lambda j: (0, 0)),             # x (batched lanes)
            pl.BlockSpec((C_out, C_in), lambda j: (0, 0)),         # w_init^T
            pl.BlockSpec((C_red, C_in), lambda j: (0, 0)),         # w_reduce^T (BN-folded)
            pl.BlockSpec((C_red, 1), lambda j: (0, 0)),            # reduce BN shift
            pl.BlockSpec((K * C_out, C_red), lambda j: (0, 0)),    # w_span expanded^T
            pl.BlockSpec((K * C_out, L), lambda j: (0, 0)),        # tap validity mask
            pl.BlockSpec((k_chunk, n_h1), lambda j: (j, 0)),       # w1 streamed K-chunks
            pl.BlockSpec((1, n_h1), lambda j: (0, 0)),             # b1 (BN-folded)
            pl.BlockSpec((n_h1, n_h2), lambda j: (0, 0)),          # w2a (BN-folded)
            pl.BlockSpec((1, n_h2), lambda j: (0, 0)),             # b2a (BN-folded)
            pl.BlockSpec((n_h2, n_cls), lambda j: (0, 0)),         # w2b
            pl.BlockSpec((1, n_cls), lambda j: (0, 0)),            # b2b
        ],
        out_specs=pl.BlockSpec((B, n_cls), lambda j: (0, 0)),
        out_shape=jax.ShapeDtypeStruct((B, n_cls), jnp.float32),
        scratch_shapes=[
            pltpu.VMEM((C_out, 2 * pad + L), jnp.float32),         # padded x_map staging
            pltpu.VMEM((B, flattened), jnp.float32),               # flattened involution out
            pltpu.VMEM((B, n_h1), jnp.float32),                    # Linear1 accumulator
        ],
        compiler_params=pltpu.CompilerParams(
            dimension_semantics=("arbitrary",)),
    )(x_cb, kp["w_init_T"], kp["w_red_T"], kp["b_red"], kp["w_span_T"], mask,
      kp["w1f"], kp["b1"], kp["w2a"], kp["b2a"], kp["w2b"], kp["b2b"])

    return out                                                  # [B, n_cls]


# ------------------------- parameter init / BN folding -----------------------

def init_params(cfg, key):
    """Raw synthetic parameters mirroring the PyTorch module."""
    C_in, C_out = cfg["in_channels"], cfg["out_channels"]
    G, rr = cfg["groups"], cfg["reduce_ratio"]
    KH, KW = cfg["kernel_size"]
    K = KH * KW
    C_red = C_out // rr
    P = cfg["patch_size"]
    ph, pw = cfg["padding"]
    dh, dw = cfg["dilation"]
    sh, sw = cfg["stride"]
    oh = (P + 2 * ph - dh * (KH - 1) - 1) // sh + 1
    ow = (P + 2 * pw - dw * (KW - 1) - 1) // sw + 1
    flattened = C_out * oh * ow

    ks = jax.random.split(key, 10)
    rnd = lambda k, shape, s=0.1: (s * jax.random.normal(k, shape)).astype(jnp.float32)
    params = dict(
        w_init=rnd(ks[0], (C_in, C_out)),
        w_reduce=rnd(ks[1], (C_in, C_red)),
        bn2d_gamma=jnp.ones((C_red,), jnp.float32),
        bn2d_beta=jnp.zeros((C_red,), jnp.float32),
        bn2d_mean=jnp.zeros((C_red,), jnp.float32),
        bn2d_var=jnp.ones((C_red,), jnp.float32),
        w_span=rnd(ks[2], (C_red, K * G)),
        w1=rnd(ks[3], (flattened, 512), 0.02),
        b1=rnd(ks[4], (512,)),
        bn1_gamma=jnp.ones((512,), jnp.float32),
        bn1_beta=jnp.zeros((512,), jnp.float32),
        bn1_mean=jnp.zeros((512,), jnp.float32),
        bn1_var=jnp.ones((512,), jnp.float32),
        w2a=rnd(ks[5], (512, 128), 0.05),
        b2a=rnd(ks[6], (128,)),
        bn2_gamma=jnp.ones((128,), jnp.float32),
        bn2_beta=jnp.zeros((128,), jnp.float32),
        bn2_mean=jnp.zeros((128,), jnp.float32),
        bn2_var=jnp.ones((128,), jnp.float32),
        w2b=rnd(ks[7], (128, 17)),
        b2b=rnd(ks[8], (17,)),
    )
    return params, flattened


def pack_params(params, cfg, eps=1e-5):
    """Fold inference BatchNorms into weights and pre-layout everything for the kernel."""
    C_out = cfg["out_channels"]
    G = cfg["groups"]
    KH, KW = cfg["kernel_size"]
    K = KH * KW
    Cpg = C_out // G
    C_red = C_out // cfg["reduce_ratio"]

    def bn_fold(gamma, beta, mean, var):
        s = gamma * jax.lax.rsqrt(var + eps)
        return s, beta - mean * s

    # reduce conv (bias=False) followed by BN2d + ReLU
    s_red, sh_red = bn_fold(params["bn2d_gamma"], params["bn2d_beta"],
                            params["bn2d_mean"], params["bn2d_var"])
    w_red_f = params["w_reduce"] * s_red[None, :]                       # [C_in, C_red]

    # Linear1 + BN1d
    s1, _ = bn_fold(params["bn1_gamma"], params["bn1_beta"],
                    params["bn1_mean"], params["bn1_var"])
    w1_f = params["w1"] * s1[None, :]
    b1_f = (params["b1"] - params["bn1_mean"]) * s1 + params["bn1_beta"]

    # Linear2a + BN1d
    s2, _ = bn_fold(params["bn2_gamma"], params["bn2_beta"],
                    params["bn2_mean"], params["bn2_var"])
    w2a_f = params["w2a"] * s2[None, :]
    b2a_f = (params["b2a"] - params["bn2_mean"]) * s2 + params["bn2_beta"]

    # Expand span weights so the kernel produces one row per (tap, out_channel):
    # expanded column t*C_out + c  <-  original span channel (c // Cpg)*K + t.
    cols = np.array([(c // Cpg) * K + t
                     for t in range(K) for c in range(C_out)], dtype=np.int32)
    w_span_exp_T = params["w_span"][:, cols].T                          # [K*C_out, C_red]

    kp = dict(
        w_init_T=params["w_init"].T,                                    # [C_out, C_in]
        w_red_T=w_red_f.T,                                              # [C_red, C_in]
        b_red=sh_red.reshape(C_red, 1),
        w_span_T=w_span_exp_T,
        w1f=w1_f,                                                       # [flattened, 512]
        b1=b1_f.reshape(1, -1),
        w2a=w2a_f,
        b2a=b2a_f.reshape(1, -1),
        w2b=params["w2b"],
        b2b=params["b2b"].reshape(1, -1),
    )
    return jax.tree.map(lambda a: jnp.asarray(a, jnp.float32), kp)


# ----------------------- pure-JAX reference (same folded params) -------------

def reference_forward(x, kp, cfg):
    x = jnp.squeeze(x)
    B, C_in, H, W = x.shape
    C_out = cfg["out_channels"]
    ph, pw = cfg["padding"]
    HW = H * W
    offsets, _ = _tap_geometry(cfg, H, W)
    hp = lax.Precision.HIGHEST

    xf = x.reshape(B, C_in, HW)
    if C_in != C_out:
        x_map = jnp.einsum("oc,bcp->bop", kp["w_init_T"], xf, precision=hp)
    else:
        x_map = xf
    red = jnp.maximum(jnp.einsum("rc,bcp->brp", kp["w_red_T"], xf, precision=hp)
                      + kp["b_red"][None], 0.0)
    span = jnp.einsum("kr,brp->bkp", kp["w_span_T"], red, precision=hp)

    x_im = x_map.reshape(B, C_out, H, W)
    x_padded = jnp.pad(x_im, ((0, 0), (0, 0), (ph, ph), (pw, pw)))
    acc = jnp.zeros((B, C_out, H, W), jnp.float32)
    for t, (di, dj) in enumerate(offsets):
        win = x_padded[:, :, di + ph:di + ph + H, dj + pw:dj + pw + W]
        ker = span[:, t * C_out:(t + 1) * C_out, :].reshape(B, C_out, H, W)
        acc = acc + ker * win

    flat = acc.reshape(B, C_out * HW)
    h1 = jnp.maximum(jnp.dot(flat, kp["w1f"], precision=hp) + kp["b1"], 0.0)
    h2 = jnp.maximum(jnp.dot(h1, kp["w2a"], precision=hp) + kp["b2a"], 0.0)
    return jnp.dot(h2, kp["w2b"], precision=hp) + kp["b2b"]


# ------------------------------------ main -----------------------------------

if __name__ == "__main__":
    cfg = dict(in_channels=8, out_channels=16, patch_size=8,
               kernel_size=(3, 3), stride=(1, 1), groups=4, reduce_ratio=4,
               dilation=(1, 1), padding=(1, 1))

    key = jax.random.PRNGKey(0)
    pkey, xkey = jax.random.split(key)
    params, flattened = init_params(cfg, pkey)
    assert params["w1"].shape[0] == flattened
    kp = pack_params(params, cfg)

    # input [batch, in_channels, patch_size, patch_size] (NCHW, like PyTorch)
    x = jax.random.normal(xkey, (2, cfg["in_channels"],
                                 cfg["patch_size"], cfg["patch_size"]),
                          dtype=jnp.float32)

    fwd = jax.jit(functools.partial(involution2d_forward, cfg=cfg))
    y = fwd(x, kp)
    jax.block_until_ready(y)
    assert y.shape == (2, 17) and y.dtype == jnp.float32

    y_ref = reference_forward(x, kp, cfg)
    assert jnp.allclose(y, y_ref, rtol=5e-3, atol=5e-3), \
        float(jnp.max(jnp.abs(y - y_ref)))
    print("KERNEL_OK")
</pallas_src>

<mosaic_0001>
module attributes {stable_mosaic.version = 11 : i64} {
  func.func @_fused_involution_kernel(%arg0: i32, %arg1: memref<8x128xf32, #tpu.memory_space<vmem>>, %arg2: memref<16x8xf32, #tpu.memory_space<vmem>>, %arg3: memref<4x8xf32, #tpu.memory_space<vmem>>, %arg4: memref<4x1xf32, #tpu.memory_space<vmem>>, %arg5: memref<144x4xf32, #tpu.memory_space<vmem>>, %arg6: memref<144x128xf32, #tpu.memory_space<vmem>>, %arg7: memref<256x512xf32, #tpu.memory_space<vmem>>, %arg8: memref<1x512xf32, #tpu.memory_space<vmem>>, %arg9: memref<512x128xf32, #tpu.memory_space<vmem>>, %arg10: memref<1x128xf32, #tpu.memory_space<vmem>>, %arg11: memref<128x17xf32, #tpu.memory_space<vmem>>, %arg12: memref<1x17xf32, #tpu.memory_space<vmem>>, %arg13: memref<2x17xf32, #tpu.memory_space<vmem>>, %arg14: memref<16x146xf32, #tpu.memory_space<vmem>>, %arg15: memref<2x1024xf32, #tpu.memory_space<vmem>>, %arg16: memref<2x512xf32, #tpu.memory_space<vmem>>) attributes {dimension_semantics = [#tpu.dimension_semantics<arbitrary>], iteration_bounds = array<i64: 4>, scalar_prefetch = 0 : i64, scratch_operands = 3 : i64, tpu.core_type = #tpu.core_type<tc>, window_params = [{pipeline_mode = #tpu.pipeline_mode<synchronous>, transform_indices = @transform_0, window_bounds = array<i64: 8, 128>}, {pipeline_mode = #tpu.pipeline_mode<synchronous>, transform_indices = @transform_1, window_bounds = array<i64: 16, 8>}, {pipeline_mode = #tpu.pipeline_mode<synchronous>, transform_indices = @transform_2, window_bounds = array<i64: 4, 8>}, {pipeline_mode = #tpu.pipeline_mode<synchronous>, transform_indices = @transform_3, window_bounds = array<i64: 4, 1>}, {pipeline_mode = #tpu.pipeline_mode<synchronous>, transform_indices = @transform_4, window_bounds = array<i64: 144, 4>}, {pipeline_mode = #tpu.pipeline_mode<synchronous>, transform_indices = @transform_5, window_bounds = array<i64: 144, 128>}, {transform_indices = @transform_6, window_bounds = array<i64: 256, 512>}, {pipeline_mode = #tpu.pipeline_mode<synchronous>, transform_indices = @transform_7, window_bounds = array<i64: 1, 512>}, {pipeline_mode = #tpu.pipeline_mode<synchronous>, transform_indices = @transform_8, window_bounds = array<i64: 512, 128>}, {pipeline_mode = #tpu.pipeline_mode<synchronous>, transform_indices = @transform_9, window_bounds = array<i64: 1, 128>}, {pipeline_mode = #tpu.pipeline_mode<synchronous>, transform_indices = @transform_10, window_bounds = array<i64: 128, 17>}, {pipeline_mode = #tpu.pipeline_mode<synchronous>, transform_indices = @transform_11, window_bounds = array<i64: 1, 17>}, {pipeline_mode = #tpu.pipeline_mode<synchronous>, transform_indices = @transform_12, window_bounds = array<i64: 2, 17>}]} {
    %c0_i32 = arith.constant 0 : i32
    %0 = arith.cmpi eq, %arg0, %c0_i32 : i32
    %1 = arith.extui %0 : i1 to i32
    %c0_i32_0 = arith.constant 0 : i32
    %2 = arith.cmpi ne, %1, %c0_i32_0 : i32
    scf.if %2 {
      %c0_8 = arith.constant 0 : index
      %c0_9 = arith.constant 0 : index
      %15 = vector.load %arg1[%c0_8, %c0_9] : memref<8x128xf32, #tpu.memory_space<vmem>>, vector<8x128xf32>
      %c0_10 = arith.constant 0 : index
      %c0_11 = arith.constant 0 : index
      %16 = vector.load %arg2[%c0_10, %c0_11] : memref<16x8xf32, #tpu.memory_space<vmem>>, vector<16x8xf32>
      %17 = vector.extract_strided_slice %16 {offsets = [0, 0], sizes = [16, 1], strides = [1, 1]} : vector<16x8xf32> to vector<16x1xf32>
      %18 = vector.extract_strided_slice %15 {offsets = [0, 0], sizes = [1, 128], strides = [1, 1]} : vector<8x128xf32> to vector<1x128xf32>
      %19 = vector.broadcast %17 : vector<16x1xf32> to vector<16x128xf32>
      %20 = vector.broadcast %18 : vector<1x128xf32> to vector<16x128xf32>
      %21 = arith.mulf %19, %20 : vector<16x128xf32>
      %22 = vector.extract_strided_slice %16 {offsets = [0, 1], sizes = [16, 1], strides = [1, 1]} : vector<16x8xf32> to vector<16x1xf32>
      %23 = vector.extract_strided_slice %15 {offsets = [1, 0], sizes = [1, 128], strides = [1, 1]} : vector<8x128xf32> to vector<1x128xf32>
      %24 = vector.broadcast %22 : vector<16x1xf32> to vector<16x128xf32>
      %25 = vector.broadcast %23 : vector<1x128xf32> to vector<16x128xf32>
      %26 = arith.mulf %24, %25 : vector<16x128xf32>
      %27 = arith.addf %21, %26 : vector<16x128xf32>
      %28 = vector.extract_strided_slice %16 {offsets = [0, 2], sizes = [16, 1], strides = [1, 1]} : vector<16x8xf32> to vector<16x1xf32>
      %29 = vector.extract_strided_slice %15 {offsets = [2, 0], sizes = [1, 128], strides = [1, 1]} : vector<8x128xf32> to vector<1x128xf32>
      %30 = vector.broadcast %28 : vector<16x1xf32> to vector<16x128xf32>
      %31 = vector.broadcast %29 : vector<1x128xf32> to vector<16x128xf32>
      %32 = arith.mulf %30, %31 : vector<16x128xf32>
      %33 = arith.addf %27, %32 : vector<16x128xf32>
      %34 = vector.extract_strided_slice %16 {offsets = [0, 3], sizes = [16, 1], strides = [1, 1]} : vector<16x8xf32> to vector<16x1xf32>
      %35 = vector.extract_strided_slice %15 {offsets = [3, 0], sizes = [1, 128], strides = [1, 1]} : vector<8x128xf32> to vector<1x128xf32>
      %36 = vector.broadcast %34 : vector<16x1xf32> to vector<16x128xf32>
      %37 = vector.broadcast %35 : vector<1x128xf32> to vector<16x128xf32>
      %38 = arith.mulf %36, %37 : vector<16x128xf32>
      %39 = arith.addf %33, %38 : vector<16x128xf32>
      %40 = vector.extract_strided_slice %16 {offsets = [0, 4], sizes = [16, 1], strides = [1, 1]} : vector<16x8xf32> to vector<16x1xf32>
      %41 = vector.extract_strided_slice %15 {offsets = [4, 0], sizes = [1, 128], strides = [1, 1]} : vector<8x128xf32> to vector<1x128xf32>
      %42 = vector.broadcast %40 : vector<16x1xf32> to vector<16x128xf32>
      %43 = vector.broadcast %41 : vector<1x128xf32> to vector<16x128xf32>
      %44 = arith.mulf %42, %43 : vector<16x128xf32>
      %45 = arith.addf %39, %44 : vector<16x128xf32>
      %46 = vector.extract_strided_slice %16 {offsets = [0, 5], sizes = [16, 1], strides = [1, 1]} : vector<16x8xf32> to vector<16x1xf32>
      %47 = vector.extract_strided_slice %15 {offsets = [5, 0], sizes = [1, 128], strides = [1, 1]} : vector<8x128xf32> to vector<1x128xf32>
      %48 = vector.broadcast %46 : vector<16x1xf32> to vector<16x128xf32>
      %49 = vector.broadcast %47 : vector<1x128xf32> to vector<16x128xf32>
      %50 = arith.mulf %48, %49 : vector<16x128xf32>
      %51 = arith.addf %45, %50 : vector<16x128xf32>
      %52 = vector.extract_strided_slice %16 {offsets = [0, 6], sizes = [16, 1], strides = [1, 1]} : vector<16x8xf32> to vector<16x1xf32>
      %53 = vector.extract_strided_slice %15 {offsets = [6, 0], sizes = [1, 128], strides = [1, 1]} : vector<8x128xf32> to vector<1x128xf32>
      %54 = vector.broadcast %52 : vector<16x1xf32> to vector<16x128xf32>
      %55 = vector.broadcast %53 : vector<1x128xf32> to vector<16x128xf32>
      %56 = arith.mulf %54, %55 : vector<16x128xf32>
      %57 = arith.addf %51, %56 : vector<16x128xf32>
      %58 = vector.extract_strided_slice %16 {offsets = [0, 7], sizes = [16, 1], strides = [1, 1]} : vector<16x8xf32> to vector<16x1xf32>
      %59 = vector.extract_strided_slice %15 {offsets = [7, 0], sizes = [1, 128], strides = [1, 1]} : vector<8x128xf32> to vector<1x128xf32>
      %60 = vector.broadcast %58 : vector<16x1xf32> to vector<16x128xf32>
      %61 = vector.broadcast %59 : vector<1x128xf32> to vector<16x128xf32>
      %62 = arith.mulf %60, %61 : vector<16x128xf32>
      %63 = arith.addf %57, %62 : vector<16x128xf32>
      %cst_12 = arith.constant 0.000000e+00 : f32
      %64 = vector.broadcast %cst_12 : f32 to vector<16x146xf32>
      %c0_13 = arith.constant 0 : index
      %c0_14 = arith.constant 0 : index
      %65 = vector.load %arg14[%c0_13, %c0_14] : memref<16x146xf32, #tpu.memory_space<vmem>>, vector<16x146xf32>
      tpu.vector_store %arg14[%c0_13, %c0_14], %64 {strides = array<i32>} : memref<16x146xf32, #tpu.memory_space<vmem>>, vector<16x146xf32>,
      %c0_15 = arith.constant 0 : index
      %c9 = arith.constant 9 : index
      %66 = vector.load %arg14[%c0_15, %c9] : memref<16x146xf32, #tpu.memory_space<vmem>>, vector<16x128xf32>
      tpu.vector_store %arg14[%c0_15, %c9], %63 {strides = array<i32>} : memref<16x146xf32, #tpu.memory_space<vmem>>, vector<16x128xf32>,
      %c0_16 = arith.constant 0 : index
      %c0_17 = arith.constant 0 : index
      %67 = vector.load %arg3[%c0_16, %c0_17] : memref<4x8xf32, #tpu.memory_space<vmem>>, vector<4x8xf32>
      %68 = vector.extract_strided_slice %67 {offsets = [0, 0], sizes = [4, 1], strides = [1, 1]} : vector<4x8xf32> to vector<4x1xf32>
      %69 = vector.extract_strided_slice %15 {offsets = [0, 0], sizes = [1, 128], strides = [1, 1]} : vector<8x128xf32> to vector<1x128xf32>
      %70 = vector.broadcast %68 : vector<4x1xf32> to vector<4x128xf32>
      %71 = vector.broadcast %69 : vector<1x128xf32> to vector<4x128xf32>
      %72 = arith.mulf %70, %71 : vector<4x128xf32>
      %73 = vector.extract_strided_slice %67 {offsets = [0, 1], sizes = [4, 1], strides = [1, 1]} : vector<4x8xf32> to vector<4x1xf32>
      %74 = vector.extract_strided_slice %15 {offsets = [1, 0], sizes = [1, 128], strides = [1, 1]} : vector<8x128xf32> to vector<1x128xf32>
      %75 = vector.broadcast %73 : vector<4x1xf32> to vector<4x128xf32>
      %76 = vector.broadcast %74 : vector<1x128xf32> to vector<4x128xf32>
      %77 = arith.mulf %75, %76 : vector<4x128xf32>
      %78 = arith.addf %72, %77 : vector<4x128xf32>
      %79 = vector.extract_strided_slice %67 {offsets = [0, 2], sizes = [4, 1], strides = [1, 1]} : vector<4x8xf32> to vector<4x1xf32>
      %80 = vector.extract_strided_slice %15 {offsets = [2, 0], sizes = [1, 128], strides = [1, 1]} : vector<8x128xf32> to vector<1x128xf32>
      %81 = vector.broadcast %79 : vector<4x1xf32> to vector<4x128xf32>
      %82 = vector.broadcast %80 : vector<1x128xf32> to vector<4x128xf32>
      %83 = arith.mulf %81, %82 : vector<4x128xf32>
      %84 = arith.addf %78, %83 : vector<4x128xf32>
      %85 = vector.extract_strided_slice %67 {offsets = [0, 3], sizes = [4, 1], strides = [1, 1]} : vector<4x8xf32> to vector<4x1xf32>
      %86 = vector.extract_strided_slice %15 {offsets = [3, 0], sizes = [1, 128], strides = [1, 1]} : vector<8x128xf32> to vector<1x128xf32>
      %87 = vector.broadcast %85 : vector<4x1xf32> to vector<4x128xf32>
      %88 = vector.broadcast %86 : vector<1x128xf32> to vector<4x128xf32>
      %89 = arith.mulf %87, %88 : vector<4x128xf32>
      %90 = arith.addf %84, %89 : vector<4x128xf32>
      %91 = vector.extract_strided_slice %67 {offsets = [0, 4], sizes = [4, 1], strides = [1, 1]} : vector<4x8xf32> to vector<4x1xf32>
      %92 = vector.extract_strided_slice %15 {offsets = [4, 0], sizes = [1, 128], strides = [1, 1]} : vector<8x128xf32> to vector<1x128xf32>
      %93 = vector.broadcast %91 : vector<4x1xf32> to vector<4x128xf32>
      %94 = vector.broadcast %92 : vector<1x128xf32> to vector<4x128xf32>
      %95 = arith.mulf %93, %94 : vector<4x128xf32>
      %96 = arith.addf %90, %95 : vector<4x128xf32>
      %97 = vector.extract_strided_slice %67 {offsets = [0, 5], sizes = [4, 1], strides = [1, 1]} : vector<4x8xf32> to vector<4x1xf32>
      %98 = vector.extract_strided_slice %15 {offsets = [5, 0], sizes = [1, 128], strides = [1, 1]} : vector<8x128xf32> to vector<1x128xf32>
      %99 = vector.broadcast %97 : vector<4x1xf32> to vector<4x128xf32>
      %100 = vector.broadcast %98 : vector<1x128xf32> to vector<4x128xf32>
      %101 = arith.mulf %99, %100 : vector<4x128xf32>
      %102 = arith.addf %96, %101 : vector<4x128xf32>
      %103 = vector.extract_strided_slice %67 {offsets = [0, 6], sizes = [4, 1], strides = [1, 1]} : vector<4x8xf32> to vector<4x1xf32>
      %104 = vector.extract_strided_slice %15 {offsets = [6, 0], sizes = [1, 128], strides = [1, 1]} : vector<8x128xf32> to vector<1x128xf32>
      %105 = vector.broadcast %103 : vector<4x1xf32> to vector<4x128xf32>
      %106 = vector.broadcast %104 : vector<1x128xf32> to vector<4x128xf32>
      %107 = arith.mulf %105, %106 : vector<4x128xf32>
      %108 = arith.addf %102, %107 : vector<4x128xf32>
      %109 = vector.extract_strided_slice %67 {offsets = [0, 7], sizes = [4, 1], strides = [1, 1]} : vector<4x8xf32> to vector<4x1xf32>
      %110 = vector.extract_strided_slice %15 {offsets = [7, 0], sizes = [1, 128], strides = [1, 1]} : vector<8x128xf32> to vector<1x128xf32>
      %111 = vector.broadcast %109 : vector<4x1xf32> to vector<4x128xf32>
      %112 = vector.broadcast %110 : vector<1x128xf32> to vector<4x128xf32>
      %113 = arith.mulf %111, %112 : vector<4x128xf32>
      %114 = arith.addf %108, %113 : vector<4x128xf32>
      %c0_18 = arith.constant 0 : index
      %c0_19 = arith.constant 0 : index
      %115 = vector.load %arg4[%c0_18, %c0_19] : memref<4x1xf32, #tpu.memory_space<vmem>>, vector<4x1xf32>
      %116 = vector.broadcast %115 : vector<4x1xf32> to vector<4x128xf32>
      %117 = arith.addf %114, %116 : vector<4x128xf32>
      %cst_20 = arith.constant 0.000000e+00 : f32
      %118 = vector.broadcast %cst_20 : f32 to vector<4x128xf32>
      %119 = arith.maximumf %117, %118 : vector<4x128xf32>
      %c0_21 = arith.constant 0 : index
      %c0_22 = arith.constant 0 : index
      %120 = vector.load %arg5[%c0_21, %c0_22] : memref<144x4xf32, #tpu.memory_space<vmem>>, vector<144x4xf32>
      %121 = vector.extract_strided_slice %120 {offsets = [0, 0], sizes = [144, 1], strides = [1, 1]} : vector<144x4xf32> to vector<144x1xf32>
      %122 = vector.extract_strided_slice %119 {offsets = [0, 0], sizes = [1, 128], strides = [1, 1]} : vector<4x128xf32> to vector<1x128xf32>
      %123 = vector.broadcast %121 : vector<144x1xf32> to vector<144x128xf32>
      %124 = vector.broadcast %122 : vector<1x128xf32> to vector<144x128xf32>
      %125 = arith.mulf %123, %124 : vector<144x128xf32>
      %126 = vector.extract_strided_slice %120 {offsets = [0, 1], sizes = [144, 1], strides = [1, 1]} : vector<144x4xf32> to vector<144x1xf32>
      %127 = vector.extract_strided_slice %119 {offsets = [1, 0], sizes = [1, 128], strides = [1, 1]} : vector<4x128xf32> to vector<1x128xf32>
      %128 = vector.broadcast %126 : vector<144x1xf32> to vector<144x128xf32>
      %129 = vector.broadcast %127 : vector<1x128xf32> to vector<144x128xf32>
      %130 = arith.mulf %128, %129 : vector<144x128xf32>
      %131 = arith.addf %125, %130 : vector<144x128xf32>
      %132 = vector.extract_strided_slice %120 {offsets = [0, 2], sizes = [144, 1], strides = [1, 1]} : vector<144x4xf32> to vector<144x1xf32>
      %133 = vector.extract_strided_slice %119 {offsets = [2, 0], sizes = [1, 128], strides = [1, 1]} : vector<4x128xf32> to vector<1x128xf32>
      %134 = vector.broadcast %132 : vector<144x1xf32> to vector<144x128xf32>
      %135 = vector.broadcast %133 : vector<1x128xf32> to vector<144x128xf32>
      %136 = arith.mulf %134, %135 : vector<144x128xf32>
      %137 = arith.addf %131, %136 : vector<144x128xf32>
      %138 = vector.extract_strided_slice %120 {offsets = [0, 3], sizes = [144, 1], strides = [1, 1]} : vector<144x4xf32> to vector<144x1xf32>
      %139 = vector.extract_strided_slice %119 {offsets = [3, 0], sizes = [1, 128], strides = [1, 1]} : vector<4x128xf32> to vector<1x128xf32>
      %140 = vector.broadcast %138 : vector<144x1xf32> to vector<144x128xf32>
      %141 = vector.broadcast %139 : vector<1x128xf32> to vector<144x128xf32>
      %142 = arith.mulf %140, %141 : vector<144x128xf32>
      %143 = arith.addf %137, %142 : vector<144x128xf32>
      %c0_23 = arith.constant 0 : index
      %c0_24 = arith.constant 0 : index
      %144 = vector.load %arg6[%c0_23, %c0_24] : memref<144x128xf32, #tpu.memory_space<vmem>>, vector<144x128xf32>
      %145 = arith.mulf %143, %144 : vector<144x128xf32>
      %cst_25 = arith.constant 0.000000e+00 : f32
      %146 = vector.broadcast %cst_25 : f32 to vector<16x128xf32>
      %c0_26 = arith.constant 0 : index
      %c0_27 = arith.constant 0 : index
      %147 = vector.load %arg14[%c0_26, %c0_27] : memref<16x146xf32, #tpu.memory_space<vmem>>, vector<16x128xf32>
      %148 = vector.extract_strided_slice %145 {offsets = [0, 0], sizes = [16, 128], strides = [1, 1]} : vector<144x128xf32> to vector<16x128xf32>
      %149 = arith.mulf %148, %147 : vector<16x128xf32>
      %150 = arith.addf %146, %149 : vector<16x128xf32>
      %c0_28 = arith.constant 0 : index
      %c1 = arith.constant 1 : index
      %151 = vector.load %arg14[%c0_28, %c1] : memref<16x146xf32, #tpu.memory_space<vmem>>, vector<16x128xf32>
      %152 = vector.extract_strided_slice %145 {offsets = [16, 0], sizes = [16, 128], strides = [1, 1]} : vector<144x128xf32> to vector<16x128xf32>
      %153 = arith.mulf %152, %151 : vector<16x128xf32>
      %154 = arith.addf %150, %153 : vector<16x128xf32>
      %c0_29 = arith.constant 0 : index
      %c2 = arith.constant 2 : index
      %155 = vector.load %arg14[%c0_29, %c2] : memref<16x146xf32, #tpu.memory_space<vmem>>, vector<16x128xf32>
      %156 = vector.extract_strided_slice %145 {offsets = [32, 0], sizes = [16, 128], strides = [1, 1]} : vector<144x128xf32> to vector<16x128xf32>
      %157 = arith.mulf %156, %155 : vector<16x128xf32>
      %158 = arith.addf %154, %157 : vector<16x128xf32>
      %c0_30 = arith.constant 0 : index
      %c8 = arith.constant 8 : index
      %159 = vector.load %arg14[%c0_30, %c8] : memref<16x146xf32, #tpu.memory_space<vmem>>, vector<16x128xf32>
      %160 = vector.extract_strided_slice %145 {offsets = [48, 0], sizes = [16, 128], strides = [1, 1]} : vector<144x128xf32> to vector<16x128xf32>
      %161 = arith.mulf %160, %159 : vector<16x128xf32>
      %162 = arith.addf %158, %161 : vector<16x128xf32>
      %c0_31 = arith.constant 0 : index
      %c9_32 = arith.constant 9 : index
      %163 = vector.load %arg14[%c0_31, %c9_32] : memref<16x146xf32, #tpu.memory_space<vmem>>, vector<16x128xf32>
      %164 = vector.extract_strided_slice %145 {offsets = [64, 0], sizes = [16, 128], strides = [1, 1]} : vector<144x128xf32> to vector<16x128xf32>
      %165 = arith.mulf %164, %163 : vector<16x128xf32>
      %166 = arith.addf %162, %165 : vector<16x128xf32>
      %c0_33 = arith.constant 0 : index
      %c10 = arith.constant 10 : index
      %167 = vector.load %arg14[%c0_33, %c10] : memref<16x146xf32, #tpu.memory_space<vmem>>, vector<16x128xf32>
      %168 = vector.extract_strided_slice %145 {offsets = [80, 0], sizes = [16, 128], strides = [1, 1]} : vector<144x128xf32> to vector<16x128xf32>
      %169 = arith.mulf %168, %167 : vector<16x128xf32>
      %170 = arith.addf %166, %169 : vector<16x128xf32>
      %c0_34 = arith.constant 0 : index
      %c16 = arith.constant 16 : index
      %171 = vector.load %arg14[%c0_34, %c16] : memref<16x146xf32, #tpu.memory_space<vmem>>, vector<16x128xf32>
      %172 = vector.extract_strided_slice %145 {offsets = [96, 0], sizes = [16, 128], strides = [1, 1]} : vector<144x128xf32> to vector<16x128xf32>
      %173 = arith.mulf %172, %171 : vector<16x128xf32>
      %174 = arith.addf %170, %173 : vector<16x128xf32>
      %c0_35 = arith.constant 0 : index
      %c17 = arith.constant 17 : index
      %175 = vector.load %arg14[%c0_35, %c17] : memref<16x146xf32, #tpu.memory_space<vmem>>, vector<16x128xf32>
      %176 = vector.extract_strided_slice %145 {offsets = [112, 0], sizes = [16, 128], strides = [1, 1]} : vector<144x128xf32> to vector<16x128xf32>
      %177 = arith.mulf %176, %175 : vector<16x128xf32>
      %178 = arith.addf %174, %177 : vector<16x128xf32>
      %c0_36 = arith.constant 0 : index
      %c18 = arith.constant 18 : index
      %179 = vector.load %arg14[%c0_36, %c18] : memref<16x146xf32, #tpu.memory_space<vmem>>, vector<16x128xf32>
      %180 = vector.extract_strided_slice %145 {offsets = [128, 0], sizes = [16, 128], strides = [1, 1]} : vector<144x128xf32> to vector<16x128xf32>
      %181 = arith.mulf %180, %179 : vector<16x128xf32>
      %182 = arith.addf %178, %181 : vector<16x128xf32>
      %183 = vector.extract_strided_slice %182 {offsets = [0, 0], sizes = [1, 64], strides = [1, 1]} : vector<16x128xf32> to vector<1x64xf32>
      %c0_37 = arith.constant 0 : index
      %c0_38 = arith.constant 0 : index
      %184 = vector.load %arg15[%c0_37, %c0_38] : memref<2x1024xf32, #tpu.memory_space<vmem>>, vector<1x64xf32>
      tpu.vector_store %arg15[%c0_37, %c0_38], %183 {strides = array<i32>} : memref<2x1024xf32, #tpu.memory_space<vmem>>, vector<1x64xf32>,
      %185 = vector.extract_strided_slice %182 {offsets = [1, 0], sizes = [1, 64], strides = [1, 1]} : vector<16x128xf32> to vector<1x64xf32>
      %c0_39 = arith.constant 0 : index
      %c64 = arith.constant 64 : index
      %186 = vector.load %arg15[%c0_39, %c64] : memref<2x1024xf32, #tpu.memory_space<vmem>>, vector<1x64xf32>
      tpu.vector_store %arg15[%c0_39, %c64], %185 {strides = array<i32>} : memref<2x1024xf32, #tpu.memory_space<vmem>>, vector<1x64xf32>,
      %187 = vector.extract_strided_slice %182 {offsets = [2, 0], sizes = [1, 64], strides = [1, 1]} : vector<16x128xf32> to vector<1x64xf32>
      %c0_40 = arith.constant 0 : index
      %c128 = arith.constant 128 : index
      %188 = vector.load %arg15[%c0_40, %c128] : memref<2x1024xf32, #tpu.memory_space<vmem>>, vector<1x64xf32>
      tpu.vector_store %arg15[%c0_40, %c128], %187 {strides = array<i32>} : memref<2x1024xf32, #tpu.memory_space<vmem>>, vector<1x64xf32>,
      %189 = vector.extract_strided_slice %182 {offsets = [3, 0], sizes = [1, 64], strides = [1, 1]} : vector<16x128xf32> to vector<1x64xf32>
      %c0_41 = arith.constant 0 : index
      %c192 = arith.constant 192 : index
      %190 = vector.load %arg15[%c0_41, %c192] : memref<2x1024xf32, #tpu.memory_space<vmem>>, vector<1x64xf32>
      tpu.vector_store %arg15[%c0_41, %c192], %189 {strides = array<i32>} : memref<2x1024xf32, #tpu.memory_space<vmem>>, vector<1x64xf32>,
      %191 = vector.extract_strided_slice %182 {offsets = [4, 0], sizes = [1, 64], strides = [1, 1]} : vector<16x128xf32> to vector<1x64xf32>
      %c0_42 = arith.constant 0 : index
      %c256 = arith.constant 256 : index
      %192 = vector.load %arg15[%c0_42, %c256] : memref<2x1024xf32, #tpu.memory_space<vmem>>, vector<1x64xf32>
      tpu.vector_store %arg15[%c0_42, %c256], %191 {strides = array<i32>} : memref<2x1024xf32, #tpu.memory_space<vmem>>, vector<1x64xf32>,
      %193 = vector.extract_strided_slice %182 {offsets = [5, 0], sizes = [1, 64], strides = [1, 1]} : vector<16x128xf32> to vector<1x64xf32>
      %c0_43 = arith.constant 0 : index
      %c320 = arith.constant 320 : index
      %194 = vector.load %arg15[%c0_43, %c320] : memref<2x1024xf32, #tpu.memory_space<vmem>>, vector<1x64xf32>
      tpu.vector_store %arg15[%c0_43, %c320], %193 {strides = array<i32>} : memref<2x1024xf32, #tpu.memory_space<vmem>>, vector<1x64xf32>,
      %195 = vector.extract_strided_slice %182 {offsets = [6, 0], sizes = [1, 64], strides = [1, 1]} : vector<16x128xf32> to vector<1x64xf32>
      %c0_44 = arith.constant 0 : index
      %c384 = arith.constant 384 : index
      %196 = vector.load %arg15[%c0_44, %c384] : memref<2x1024xf32, #tpu.memory_space<vmem>>, vector<1x64xf32>
      tpu.vector_store %arg15[%c0_44, %c384], %195 {strides = array<i32>} : memref<2x1024xf32, #tpu.memory_space<vmem>>, vector<1x64xf32>,
      %197 = vector.extract_strided_slice %182 {offsets = [7, 0], sizes = [1, 64], strides = [1, 1]} : vector<16x128xf32> to vector<1x64xf32>
      %c0_45 = arith.constant 0 : index
      %c448 = arith.constant 448 : index
      %198 = vector.load %arg15[%c0_45, %c448] : memref<2x1024xf32, #tpu.memory_space<vmem>>, vector<1x64xf32>
      tpu.vector_store %arg15[%c0_45, %c448], %197 {strides = array<i32>} : memref<2x1024xf32, #tpu.memory_space<vmem>>, vector<1x64xf32>,
      %199 = vector.extract_strided_slice %182 {offsets = [8, 0], sizes = [1, 64], strides = [1, 1]} : vector<16x128xf32> to vector<1x64xf32>
      %c0_46 = arith.constant 0 : index
      %c512 = arith.constant 512 : index
      %200 = vector.load %arg15[%c0_46, %c512] : memref<2x1024xf32, #tpu.memory_space<vmem>>, vector<1x64xf32>
      tpu.vector_store %arg15[%c0_46, %c512], %199 {strides = array<i32>} : memref<2x1024xf32, #tpu.memory_space<vmem>>, vector<1x64xf32>,
      %201 = vector.extract_strided_slice %182 {offsets = [9, 0], sizes = [1, 64], strides = [1, 1]} : vector<16x128xf32> to vector<1x64xf32>
      %c0_47 = arith.constant 0 : index
      %c576 = arith.constant 576 : index
      %202 = vector.load %arg15[%c0_47, %c576] : memref<2x1024xf32, #tpu.memory_space<vmem>>, vector<1x64xf32>
      tpu.vector_store %arg15[%c0_47, %c576], %201 {strides = array<i32>} : memref<2x1024xf32, #tpu.memory_space<vmem>>, vector<1x64xf32>,
      %203 = vector.extract_strided_slice %182 {offsets = [10, 0], sizes = [1, 64], strides = [1, 1]} : vector<16x128xf32> to vector<1x64xf32>
      %c0_48 = arith.constant 0 : index
      %c640 = arith.constant 640 : index
      %204 = vector.load %arg15[%c0_48, %c640] : memref<2x1024xf32, #tpu.memory_space<vmem>>, vector<1x64xf32>
      tpu.vector_store %arg15[%c0_48, %c640], %203 {strides = array<i32>} : memref<2x1024xf32, #tpu.memory_space<vmem>>, vector<1x64xf32>,
      %205 = vector.extract_strided_slice %182 {offsets = [11, 0], sizes = [1, 64], strides = [1, 1]} : vector<16x128xf32> to vector<1x64xf32>
      %c0_49 = arith.constant 0 : index
      %c704 = arith.constant 704 : index
      %206 = vector.load %arg15[%c0_49, %c704] : memref<2x1024xf32, #tpu.memory_space<vmem>>, vector<1x64xf32>
      tpu.vector_store %arg15[%c0_49, %c704], %205 {strides = array<i32>} : memref<2x1024xf32, #tpu.memory_space<vmem>>, vector<1x64xf32>,
      %207 = vector.extract_strided_slice %182 {offsets = [12, 0], sizes = [1, 64], strides = [1, 1]} : vector<16x128xf32> to vector<1x64xf32>
      %c0_50 = arith.constant 0 : index
      %c768 = arith.constant 768 : index
      %208 = vector.load %arg15[%c0_50, %c768] : memref<2x1024xf32, #tpu.memory_space<vmem>>, vector<1x64xf32>
      tpu.vector_store %arg15[%c0_50, %c768], %207 {strides = array<i32>} : memref<2x1024xf32, #tpu.memory_space<vmem>>, vector<1x64xf32>,
      %209 = vector.extract_strided_slice %182 {offsets = [13, 0], sizes = [1, 64], strides = [1, 1]} : vector<16x128xf32> to vector<1x64xf32>
      %c0_51 = arith.constant 0 : index
      %c832 = arith.constant 832 : index
      %210 = vector.load %arg15[%c0_51, %c832] : memref<2x1024xf32, #tpu.memory_space<vmem>>, vector<1x64xf32>
      tpu.vector_store %arg15[%c0_51, %c832], %209 {strides = array<i32>} : memref<2x1024xf32, #tpu.memory_space<vmem>>, vector<1x64xf32>,
      %211 = vector.extract_strided_slice %182 {offsets = [14, 0], sizes = [1, 64], strides = [1, 1]} : vector<16x128xf32> to vector<1x64xf32>
      %c0_52 = arith.constant 0 : index
      %c896 = arith.constant 896 : index
      %212 = vector.load %arg15[%c0_52, %c896] : memref<2x1024xf32, #tpu.memory_space<vmem>>, vector<1x64xf32>
      tpu.vector_store %arg15[%c0_52, %c896], %211 {strides = array<i32>} : memref<2x1024xf32, #tpu.memory_space<vmem>>, vector<1x64xf32>,
      %213 = vector.extract_strided_slice %182 {offsets = [15, 0], sizes = [1, 64], strides = [1, 1]} : vector<16x128xf32> to vector<1x64xf32>
      %c0_53 = arith.constant 0 : index
      %c960 = arith.constant 960 : index
      %214 = vector.load %arg15[%c0_53, %c960] : memref<2x1024xf32, #tpu.memory_space<vmem>>, vector<1x64xf32>
      tpu.vector_store %arg15[%c0_53, %c960], %213 {strides = array<i32>} : memref<2x1024xf32, #tpu.memory_space<vmem>>, vector<1x64xf32>,
      %215 = vector.extract_strided_slice %182 {offsets = [0, 64], sizes = [1, 64], strides = [1, 1]} : vector<16x128xf32> to vector<1x64xf32>
      %c1_54 = arith.constant 1 : index
      %c0_55 = arith.constant 0 : index
      %216 = vector.load %arg15[%c1_54, %c0_55] : memref<2x1024xf32, #tpu.memory_space<vmem>>, vector<1x64xf32>
      tpu.vector_store %arg15[%c1_54, %c0_55], %215 {strides = array<i32>} : memref<2x1024xf32, #tpu.memory_space<vmem>>, vector<1x64xf32>,
      %217 = vector.extract_strided_slice %182 {offsets = [1, 64], sizes = [1, 64], strides = [1, 1]} : vector<16x128xf32> to vector<1x64xf32>
      %c1_56 = arith.constant 1 : index
      %c64_57 = arith.constant 64 : index
      %218 = vector.load %arg15[%c1_56, %c64_57] : memref<2x1024xf32, #tpu.memory_space<vmem>>, vector<1x64xf32>
      tpu.vector_store %arg15[%c1_56, %c64_57], %217 {strides = array<i32>} : memref<2x1024xf32, #tpu.memory_space<vmem>>, vector<1x64xf32>,
      %219 = vector.extract_strided_slice %182 {offsets = [2, 64], sizes = [1, 64], strides = [1, 1]} : vector<16x128xf32> to vector<1x64xf32>
      %c1_58 = arith.constant 1 : index
      %c128_59 = arith.constant 128 : index
      %220 = vector.load %arg15[%c1_58, %c128_59] : memref<2x1024xf32, #tpu.memory_space<vmem>>, vector<1x64xf32>
      tpu.vector_store %arg15[%c1_58, %c128_59], %219 {strides = array<i32>} : memref<2x1024xf32, #tpu.memory_space<vmem>>, vector<1x64xf32>,
      %221 = vector.extract_strided_slice %182 {offsets = [3, 64], sizes = [1, 64], strides = [1, 1]} : vector<16x128xf32> to vector<1x64xf32>
      %c1_60 = arith.constant 1 : index
      %c192_61 = arith.constant 192 : index
      %222 = vector.load %arg15[%c1_60, %c192_61] : memref<2x1024xf32, #tpu.memory_space<vmem>>, vector<1x64xf32>
      tpu.vector_store %arg15[%c1_60, %c192_61], %221 {strides = array<i32>} : memref<2x1024xf32, #tpu.memory_space<vmem>>, vector<1x64xf32>,
      %223 = vector.extract_strided_slice %182 {offsets = [4, 64], sizes = [1, 64], strides = [1, 1]} : vector<16x128xf32> to vector<1x64xf32>
      %c1_62 = arith.constant 1 : index
      %c256_63 = arith.constant 256 : index
      %224 = vector.load %arg15[%c1_62, %c256_63] : memref<2x1024xf32, #tpu.memory_space<vmem>>, vector<1x64xf32>
      tpu.vector_store %arg15[%c1_62, %c256_63], %223 {strides = array<i32>} : memref<2x1024xf32, #tpu.memory_space<vmem>>, vector<1x64xf32>,
      %225 = vector.extract_strided_slice %182 {offsets = [5, 64], sizes = [1, 64], strides = [1, 1]} : vector<16x128xf32> to vector<1x64xf32>
      %c1_64 = arith.constant 1 : index
      %c320_65 = arith.constant 320 : index
      %226 = vector.load %arg15[%c1_64, %c320_65] : memref<2x1024xf32, #tpu.memory_space<vmem>>, vector<1x64xf32>
      tpu.vector_store %arg15[%c1_64, %c320_65], %225 {strides = array<i32>} : memref<2x1024xf32, #tpu.memory_space<vmem>>, vector<1x64xf32>,
      %227 = vector.extract_strided_slice %182 {offsets = [6, 64], sizes = [1, 64], strides = [1, 1]} : vector<16x128xf32> to vector<1x64xf32>
      %c1_66 = arith.constant 1 : index
      %c384_67 = arith.constant 384 : index
      %228 = vector.load %arg15[%c1_66, %c384_67] : memref<2x1024xf32, #tpu.memory_space<vmem>>, vector<1x64xf32>
      tpu.vector_store %arg15[%c1_66, %c384_67], %227 {strides = array<i32>} : memref<2x1024xf32, #tpu.memory_space<vmem>>, vector<1x64xf32>,
      %229 = vector.extract_strided_slice %182 {offsets = [7, 64], sizes = [1, 64], strides = [1, 1]} : vector<16x128xf32> to vector<1x64xf32>
      %c1_68 = arith.constant 1 : index
      %c448_69 = arith.constant 448 : index
      %230 = vector.load %arg15[%c1_68, %c448_69] : memref<2x1024xf32, #tpu.memory_space<vmem>>, vector<1x64xf32>
      tpu.vector_store %arg15[%c1_68, %c448_69], %229 {strides = array<i32>} : memref<2x1024xf32, #tpu.memory_space<vmem>>, vector<1x64xf32>,
      %231 = vector.extract_strided_slice %182 {offsets = [8, 64], sizes = [1, 64], strides = [1, 1]} : vector<16x128xf32> to vector<1x64xf32>
      %c1_70 = arith.constant 1 : index
      %c512_71 = arith.constant 512 : index
      %232 = vector.load %arg15[%c1_70, %c512_71] : memref<2x1024xf32, #tpu.memory_space<vmem>>, vector<1x64xf32>
      tpu.vector_store %arg15[%c1_70, %c512_71], %231 {strides = array<i32>} : memref<2x1024xf32, #tpu.memory_space<vmem>>, vector<1x64xf32>,
      %233 = vector.extract_strided_slice %182 {offsets = [9, 64], sizes = [1, 64], strides = [1, 1]} : vector<16x128xf32> to vector<1x64xf32>
      %c1_72 = arith.constant 1 : index
      %c576_73 = arith.constant 576 : index
      %234 = vector.load %arg15[%c1_72, %c576_73] : memref<2x1024xf32, #tpu.memory_space<vmem>>, vector<1x64xf32>
      tpu.vector_store %arg15[%c1_72, %c576_73], %233 {strides = array<i32>} : memref<2x1024xf32, #tpu.memory_space<vmem>>, vector<1x64xf32>,
      %235 = vector.extract_strided_slice %182 {offsets = [10, 64], sizes = [1, 64], strides = [1, 1]} : vector<16x128xf32> to vector<1x64xf32>
      %c1_74 = arith.constant 1 : index
      %c640_75 = arith.constant 640 : index
      %236 = vector.load %arg15[%c1_74, %c640_75] : memref<2x1024xf32, #tpu.memory_space<vmem>>, vector<1x64xf32>
      tpu.vector_store %arg15[%c1_74, %c640_75], %235 {strides = array<i32>} : memref<2x1024xf32, #tpu.memory_space<vmem>>, vector<1x64xf32>,
      %237 = vector.extract_strided_slice %182 {offsets = [11, 64], sizes = [1, 64], strides = [1, 1]} : vector<16x128xf32> to vector<1x64xf32>
      %c1_76 = arith.constant 1 : index
      %c704_77 = arith.constant 704 : index
      %238 = vector.load %arg15[%c1_76, %c704_77] : memref<2x1024xf32, #tpu.memory_space<vmem>>, vector<1x64xf32>
      tpu.vector_store %arg15[%c1_76, %c704_77], %237 {strides = array<i32>} : memref<2x1024xf32, #tpu.memory_space<vmem>>, vector<1x64xf32>,
      %239 = vector.extract_strided_slice %182 {offsets = [12, 64], sizes = [1, 64], strides = [1, 1]} : vector<16x128xf32> to vector<1x64xf32>
      %c1_78 = arith.constant 1 : index
      %c768_79 = arith.constant 768 : index
      %240 = vector.load %arg15[%c1_78, %c768_79] : memref<2x1024xf32, #tpu.memory_space<vmem>>, vector<1x64xf32>
      tpu.vector_store %arg15[%c1_78, %c768_79], %239 {strides = array<i32>} : memref<2x1024xf32, #tpu.memory_space<vmem>>, vector<1x64xf32>,
      %241 = vector.extract_strided_slice %182 {offsets = [13, 64], sizes = [1, 64], strides = [1, 1]} : vector<16x128xf32> to vector<1x64xf32>
      %c1_80 = arith.constant 1 : index
      %c832_81 = arith.constant 832 : index
      %242 = vector.load %arg15[%c1_80, %c832_81] : memref<2x1024xf32, #tpu.memory_space<vmem>>, vector<1x64xf32>
      tpu.vector_store %arg15[%c1_80, %c832_81], %241 {strides = array<i32>} : memref<2x1024xf32, #tpu.memory_space<vmem>>, vector<1x64xf32>,
      %243 = vector.extract_strided_slice %182 {offsets = [14, 64], sizes = [1, 64], strides = [1, 1]} : vector<16x128xf32> to vector<1x64xf32>
      %c1_82 = arith.constant 1 : index
      %c896_83 = arith.constant 896 : index
      %244 = vector.load %arg15[%c1_82, %c896_83] : memref<2x1024xf32, #tpu.memory_space<vmem>>, vector<1x64xf32>
      tpu.vector_store %arg15[%c1_82, %c896_83], %243 {strides = array<i32>} : memref<2x1024xf32, #tpu.memory_space<vmem>>, vector<1x64xf32>,
      %245 = vector.extract_strided_slice %182 {offsets = [15, 64], sizes = [1, 64], strides = [1, 1]} : vector<16x128xf32> to vector<1x64xf32>
      %c1_84 = arith.constant 1 : index
      %c960_85 = arith.constant 960 : index
      %246 = vector.load %arg15[%c1_84, %c960_85] : memref<2x1024xf32, #tpu.memory_space<vmem>>, vector<1x64xf32>
      tpu.vector_store %arg15[%c1_84, %c960_85], %245 {strides = array<i32>} : memref<2x1024xf32, #tpu.memory_space<vmem>>, vector<1x64xf32>,
      %c0_86 = arith.constant 0 : index
      %c0_87 = arith.constant 0 : index
      %247 = vector.load %arg8[%c0_86, %c0_87] : memref<1x512xf32, #tpu.memory_space<vmem>>, vector<1x512xf32>
      %248 = vector.shape_cast %247 : vector<1x512xf32> to vector<1x512xf32>
      %249 = vector.broadcast %248 : vector<1x512xf32> to vector<2x512xf32>
      %c0_88 = arith.constant 0 : index
      %c0_89 = arith.constant 0 : index
      %250 = vector.load %arg16[%c0_88, %c0_89] : memref<2x512xf32, #tpu.memory_space<vmem>>, vector<2x512xf32>
      tpu.vector_store %arg16[%c0_88, %c0_89], %249 {strides = array<i32>} : memref<2x512xf32, #tpu.memory_space<vmem>>, vector<2x512xf32>,
    } else {
    }
    %c256_i32 = arith.constant 256 : i32
    %3 = arith.muli %arg0, %c256_i32 : i32
    %4 = tpu.assume_multiple %3, 256 : i32
    %c0 = arith.constant 0 : index
    %5 = arith.index_cast %4 : i32 to index
    %6 = vector.load %arg15[%c0, %5] : memref<2x1024xf32, #tpu.memory_space<vmem>>, vector<2x256xf32>
    %c0_1 = arith.constant 0 : index
    %c0_2 = arith.constant 0 : index
    %7 = vector.load %arg16[%c0_1, %c0_2] : memref<2x512xf32, #tpu.memory_space<vmem>>, vector<2x512xf32>
    %c0_3 = arith.constant 0 : index
    %c0_4 = arith.constant 0 : index
    %8 = vector.load %arg7[%c0_3, %c0_4] : memref<256x512xf32, #tpu.memory_space<vmem>>, vector<256x512xf32>
    %cst = arith.constant dense<0.000000e+00> : vector<2x512xf32>
    %9 = tpu.matmul %6, %8, %cst {dimension_numbers = #tpu.dot_dimension_numbers<[1], [0], [0], [1], [0, 0, 1, 1], [], []>} : vector<2x256xf32>, vector<256x512xf32>, vector<2x512xf32> -> vector<2x512xf32>
    %10 = arith.addf %7, %9 : vector<2x512xf32>
    %c0_5 = arith.constant 0 : index
    %c0_6 = arith.constant 0 : index
    %11 = vector.load %arg16[%c0_5, %c0_6] : memref<2x512xf32, #tpu.memory_space<vmem>>, vector<2x512xf32>
    tpu.vector_store %arg16[%c0_5, %c0_6], %10 {strides = array<i32>} : memref<2x512xf32, #tpu.memory_space<vmem>>, vector<2x512xf32>,
    %c3_i32 = arith.constant 3 : i32
    %12 = arith.cmpi eq, %arg0, %c3_i32 : i32
    %13 = arith.extui %12 : i1 to i32
    %c0_i32_7 = arith.constant 0 : i32
    %14 = arith.cmpi ne, %13, %c0_i32_7 : i32
    scf.if %14 {
      %c0_8 = arith.constant 0 : index
      %c0_9 = arith.constant 0 : index
      %15 = vector.load %arg16[%c0_8, %c0_9] : memref<2x512xf32, #tpu.memory_space<vmem>>, vector<2x512xf32>
      %cst_10 = arith.constant 0.000000e+00 : f32
      %16 = vector.broadcast %cst_10 : f32 to vector<2x512xf32>
      %17 = arith.maximumf %15, %16 : vector<2x512xf32>
      %c0_11 = arith.constant 0 : index
      %c0_12 = arith.constant 0 : index
      %18 = vector.load %arg9[%c0_11, %c0_12] : memref<512x128xf32, #tpu.memory_space<vmem>>, vector<512x128xf32>
      %cst_13 = arith.constant dense<0.000000e+00> : vector<2x128xf32>
      %19 = tpu.matmul %17, %18, %cst_13 {dimension_numbers = #tpu.dot_dimension_numbers<[1], [0], [0], [1], [0, 0, 1, 1], [], []>} : vector<2x512xf32>, vector<512x128xf32>, vector<2x128xf32> -> vector<2x128xf32>
      %c0_14 = arith.constant 0 : index
      %c0_15 = arith.constant 0 : index
      %20 = vector.load %arg10[%c0_14, %c0_15] : memref<1x128xf32, #tpu.memory_space<vmem>>, vector<1x128xf32>
      %21 = vector.broadcast %20 : vector<1x128xf32> to vector<2x128xf32>
      %22 = arith.addf %19, %21 : vector<2x128xf32>
      %cst_16 = arith.constant 0.000000e+00 : f32
      %23 = vector.broadcast %cst_16 : f32 to vector<2x128xf32>
      %24 = arith.maximumf %22, %23 : vector<2x128xf32>
      %c0_17 = arith.constant 0 : index
      %c0_18 = arith.constant 0 : index
      %25 = vector.load %arg11[%c0_17, %c0_18] : memref<128x17xf32, #tpu.memory_space<vmem>>, vector<128x17xf32>
      %cst_19 = arith.constant dense<0.000000e+00> : vector<2x17xf32>
      %26 = tpu.matmul %24, %25, %cst_19 {dimension_numbers = #tpu.dot_dimension_numbers<[1], [0], [0], [1], [0, 0, 1, 1], [], []>} : vector<2x128xf32>, vector<128x17xf32>, vector<2x17xf32> -> vector<2x17xf32>
      %c0_20 = arith.constant 0 : index
      %c0_21 = arith.constant 0 : index
      %27 = vector.load %arg12[%c0_20, %c0_21] : memref<1x17xf32, #tpu.memory_space<vmem>>, vector<1x17xf32>
      %28 = vector.broadcast %27 : vector<1x17xf32> to vector<2x17xf32>
      %29 = arith.addf %26, %28 : vector<2x17xf32>
      %c0_22 = arith.constant 0 : index
      %c0_23 = arith.constant 0 : index
      %30 = vector.load %arg13[%c0_22, %c0_23] : memref<2x17xf32, #tpu.memory_space<vmem>>, vector<2x17xf32>
      tpu.vector_store %arg13[%c0_22, %c0_23], %29 {strides = array<i32>} : memref<2x17xf32, #tpu.memory_space<vmem>>, vector<2x17xf32>,
    } else {
    }
    return
  }
  func.func @transform_0(%arg0: i32) -> (i32, i32) {
    %c0_i32 = arith.constant 0 : i32
    %c0_i32_0 = arith.constant 0 : i32
    %c0_i32_1 = arith.constant 0 : i32
    return %c0_i32, %c0_i32_0 : i32, i32
  }
  func.func @transform_1(%arg0: i32) -> (i32, i32) {
    %c0_i32 = arith.constant 0 : i32
    %c0_i32_0 = arith.constant 0 : i32
    %c0_i32_1 = arith.constant 0 : i32
    return %c0_i32, %c0_i32_0 : i32, i32
  }
  func.func @transform_2(%arg0: i32) -> (i32, i32) {
    %c0_i32 = arith.constant 0 : i32
    %c0_i32_0 = arith.constant 0 : i32
    %c0_i32_1 = arith.constant 0 : i32
    return %c0_i32, %c0_i32_0 : i32, i32
  }
  func.func @transform_3(%arg0: i32) -> (i32, i32) {
    %c0_i32 = arith.constant 0 : i32
    %c0_i32_0 = arith.constant 0 : i32
    %c0_i32_1 = arith.constant 0 : i32
    return %c0_i32, %c0_i32_0 : i32, i32
  }
  func.func @transform_4(%arg0: i32) -> (i32, i32) {
    %c0_i32 = arith.constant 0 : i32
    %c0_i32_0 = arith.constant 0 : i32
    %c0_i32_1 = arith.constant 0 : i32
    return %c0_i32, %c0_i32_0 : i32, i32
  }
  func.func @transform_5(%arg0: i32) -> (i32, i32) {
    %c0_i32 = arith.constant 0 : i32
    %c0_i32_0 = arith.constant 0 : i32
    %c0_i32_1 = arith.constant 0 : i32
    return %c0_i32, %c0_i32_0 : i32, i32
  }
  func.func @transform_6(%arg0: i32) -> (i32, i32) {
    %c0_i32 = arith.constant 0 : i32
    %c0_i32_0 = arith.constant 0 : i32
    return %arg0, %c0_i32 : i32, i32
  }
  func.func @transform_7(%arg0: i32) -> (i32, i32) {
    %c0_i32 = arith.constant 0 : i32
    %c0_i32_0 = arith.constant 0 : i32
    %c0_i32_1 = arith.constant 0 : i32
    return %c0_i32, %c0_i32_0 : i32, i32
  }
  func.func @transform_8(%arg0: i32) -> (i32, i32) {
    %c0_i32 = arith.constant 0 : i32
    %c0_i32_0 = arith.constant 0 : i32
    %c0_i32_1 = arith.constant 0 : i32
    return %c0_i32, %c0_i32_0 : i32, i32
  }
  func.func @transform_9(%arg0: i32) -> (i32, i32) {
    %c0_i32 = arith.constant 0 : i32
    %c0_i32_0 = arith.constant 0 : i32
    %c0_i32_1 = arith.constant 0 : i32
    return %c0_i32, %c0_i32_0 : i32, i32
  }
  func.func @transform_10(%arg0: i32) -> (i32, i32) {
    %c0_i32 = arith.constant 0 : i32
    %c0_i32_0 = arith.constant 0 : i32
    %c0_i32_1 = arith.constant 0 : i32
    return %c0_i32, %c0_i32_0 : i32, i32
  }
  func.func @transform_11(%arg0: i32) -> (i32, i32) {
    %c0_i32 = arith.constant 0 : i32
    %c0_i32_0 = arith.constant 0 : i32
    %c0_i32_1 = arith.constant 0 : i32
    return %c0_i32, %c0_i32_0 : i32, i32
  }
  func.func @transform_12(%arg0: i32) -> (i32, i32) {
    %c0_i32 = arith.constant 0 : i32
    %c0_i32_0 = arith.constant 0 : i32
    %c0_i32_1 = arith.constant 0 : i32
    return %c0_i32, %c0_i32_0 : i32, i32
  }
}

</mosaic_0001>

<bundles_post_ra>
// kernel: involution2d_forward.1
= control target key start
LH: loop header
LB: loop body
LE: loop exit
PB: predicated region body
PF: predicated region fallthrough
CT: control target
= control target key end

     0   :  { %s3746_s0 = inlined_call_operand.vmem [shape: f32[8,128], index: 0, kind: input, shape index: {}]   ;;  %s3747_s1 = inlined_call_operand.vmem [shape: f32[16,8], index: 1, kind: input, shape index: {}]   ;;  %s3748_s2 = inlined_call_operand.hbm [shape: f32[4,8], index: 2, kind: input, shape index: {}]   ;;  %s3749_s3 = inlined_call_operand.vmem [shape: f32[4,1], index: 3, kind: input, shape index: {}]   ;;  %s3750_s4 = inlined_call_operand.vmem [shape: f32[144,4], index: 4, kind: input, shape index: {}]   ;;  %s3751_s5 = inlined_call_operand.hbm [shape: f32[144,128], index: 5, kind: input, shape index: {}]   ;;  %s3752_s6 = inlined_call_operand.hbm [shape: f32[1024,512], index: 6, kind: input, shape index: {}]   ;;  %s3753_s7 = inlined_call_operand.hbm [shape: f32[1,512], index: 7, kind: input, shape index: {}]   ;;  %s3754_s8 = inlined_call_operand.hbm [shape: f32[512,128], index: 8, kind: input, shape index: {}]   ;;  %s3755_s9 = inlined_call_operand.hbm [shape: f32[1,128], index: 9, kind: input, shape index: {}]   ;;  %s3756_s10 = inlined_call_operand.vmem [shape: f32[128,17], index: 10, kind: input, shape index: {}]   ;;  %s3757_s11 = inlined_call_operand.hbm [shape: f32[1,17], index: 11, kind: input, shape index: {}]   ;;  %s3758_s12 = inlined_call_operand.hbm [shape: f32[2,17], index: 12, kind: output, shape index: {}]  }
   0x1   :  { %3759 = sst [smem:[#allocation25_spill]] %s3748_s2 }
   0x2   :  { %3760 = sst [smem:[#allocation26_spill]] %s3751_s5 }
   0x3   :  { %3761 = sst [smem:[#allocation27_spill]] %s3758_s12 }
   0x4   :  { %17 = vsyncpa [#allocation6], 0 }
   0x5   :  { %18 = vsyncpa [#allocation9], 0 }
   0x6   :  { %19 = vsyncpa [#allocation13], 0 }
   0x7   :  { %20 = vsyncpa [#allocation16], 0 }
   0x8   :  { %21 = vsyncpa [#allocation7], 0  ;;  %s2798_s21 = smov 0   ;;  %s2800_s22 = smov 0  }
   0x9   :  { %s2802_s23 = smov 0   ;;  %s2804_s24 = smov 0  }
   0xa LB: > { %s3762_s2 = sld [smem:[#allocation25_spill]]  ;;  %s2822_s28 = sadd.s32 4294967295, %s2701_s24   ;;  %s2701_s24 = sphi %s2804_s24, %s3772_s24   ;;  %s2697_s23 = sphi %s2802_s23, %s3771_s23   ;;  %s2693_s22 = sphi %s2800_s22, %s3770_s22   ;;  %s2689_s21 = sphi %s2798_s21, %s3769_s21  }
   0xb   : > { %p2196_p0 = scmp.ge.s32.totalorder %s2701_s24, 1  ;;  %p174_p1 = scmp.eq.s32.totalorder %s2822_s28, 0 }
   0xc   : > { %p310_p2 = scmp.lt.s32.totalorder %s2701_s24, 5  ;;  %p2197_p3 = scmp.ne.s32.totalorder %s2822_s28, 0 }
   0xd   : > { %s2703_s30 = smov [#allocation5]   ;;  %s3764_s5 = sld [smem:[#allocation26_spill]] }
   0xe   : > { %p2828_p4 = pnand %p2196_p0, %p310_p2  ;;  %s330_s13 = sshll.u32 %s2703_s30, 4  ;;  %s331_s13 = int_to_ptr.vmem [resolvable:$true] %s330_s13 }
   0xf   : > { %s2704_s18 = smov [#allocation8]   ;;  %s2705_s20 = smov 128  }
  0x10   : > { %s328_s27 = sshll.u32 %s3762_s2, 4  ;;  %p2268_p5 = pneg %p2828_p4  ;;  %s329_s27 = int_to_ptr.hbm [resolvable:$true] %s328_s27 }
  0x11   : > { %s347_s19 = sshll.u32 %s2704_s18, 4  ;;  %s2706_s25 = smov 8   ;;  %s348_s19 = int_to_ptr.vmem [resolvable:$true] %s347_s19 }
  0x12   : > { %p2839_p6 = pnand %p2268_p5, %p174_p1  ;;  %s371_s14 = sshll.u32 %s3754_s8, 4  ;;  %s372_s14 = int_to_ptr.hbm [resolvable:$true] %s371_s14 }
  0x13   : > { %s345_s16 = sshll.u32 %s3764_s5, 4  ;;  %s2707_s15 = smov [#allocation12]   ;;  %s346_s16 = int_to_ptr.hbm [resolvable:$true] %s345_s16 }
  0x14   : > { %2271 = dma.hbm_to_vmem [thread:$0]  (!%p2839_p6), %s329_s27, 64, %s331_s13, [#allocation6]  }
  0x15   : > { %2274 = dma.hbm_to_vmem [thread:$0]  (!%p2839_p6), %s346_s16, 2304, %s348_s19, [#allocation9], %s2705_s20, %s2705_s20, %s2706_s25  }
  0x16   : > { %s373_s2 = sshll.u32 %s2707_s15, 4  ;;  %s360_s18 = sshll.u32 %s3753_s7, 4  ;;  %s374_s2 = int_to_ptr.vmem [resolvable:$true] %s373_s2  ;;  %s361_s18 = int_to_ptr.hbm [resolvable:$true] %s360_s18 }
  0x17   : > { %2280 = dma.hbm_to_vmem [thread:$0]  (!%p2839_p6), %s372_s14, 8192, %s374_s2, [#allocation13], %s2705_s20, %s2705_s20, %s2706_s25  }
  0x18   : > { %s2708_s27 = smov [#allocation11]   ;;  %s386_s26 = sshll.u32 %s3755_s9, 4  ;;  %s387_s26 = int_to_ptr.hbm [resolvable:$true] %s386_s26 }
  0x19   : > { %s362_s13 = sshll.u32 %s2708_s27, 4  ;;  %s401_s2 = sshll.u32 %s3757_s11, 4  ;;  %s363_s13 = int_to_ptr.vmem [resolvable:$true] %s362_s13  ;;  %s402_s2 = int_to_ptr.hbm [resolvable:$true] %s401_s2 }
  0x1a   : > { %2277 = dma.hbm_to_vmem [thread:$0]  (!%p2839_p6), %s361_s18, 64, %s363_s13, [#allocation9]  }
  0x1b   : > { %s2709_s20 = smov [#allocation14]   ;;  %s2710_s30 = smov [#allocation15]  }
  0x1c   : > { %s388_s25 = sshll.u32 %s2709_s20, 4  ;;  %s403_s14 = sshll.u32 %s2710_s30, 4  ;;  %s389_s25 = int_to_ptr.vmem [resolvable:$true] %s388_s25  ;;  %s404_s14 = int_to_ptr.vmem [resolvable:$true] %s403_s14 }
  0x1d   : > { %2283 = dma.hbm_to_vmem [thread:$0]  (!%p2839_p6), %s387_s26, 16, %s389_s25, [#allocation13]  }
  0x1e   : > { %2286 = dma.hbm_to_vmem [thread:$0]  (!%p2839_p6), %s402_s2, 16, %s404_s14, [#allocation16]  }
  0x1f   : > { %s2868_s15 = sadd.s32 1, %s2701_s24   ;;  %s160_s18 = sadd.s32 1, %s2697_s23 }
  0x20   : > { %s157_s27 = ssub.s32 %s2701_s24, %s2868_s15  ;;  %p167_p7 = scmp.ne.s32.totalorder %s2697_s23, %s2693_s22 }
  0x21   : > { %p158_p8 = scmp.eq.s32.totalorder %s157_s27, 0  ;;  %p168_p9 = scmp.eq.s32.totalorder %s2701_s24, 0 }
  0x22   : > { %p173_p10 = scmp.ne.s32.totalorder %s2693_s22, %s2689_s21  ;;  %p2297_p11 = scmp.lt.s32.totalorder %s2701_s24, 4 }
  0x23   : > { %s2880_s13 = scalar_select %p158_p8, %s2697_s23, %s160_s18  }
  0x24   : > { %p169_p12 = por %p168_p9, %p167_p7  ;;  %p2884_p13 = por %p174_p1, %p173_p10 }
  0x25   : > { %s414_s17 = sand.u32 1, %s2701_s24   ;;  %s416_s19 = sand.u32 1, %s2697_s23  }
  0x26   : > { %s2204_s26 = sshll.u32 %s416_s19, 10  ;;  %s2237_s5 = sshll.u32 %s2701_s24, 10 }
  0x27   : > { %s424_s20 = scalar_lea.hbm %s3752_s6, %s2237_s5  ;;  %s418_s25 = scalar_lea.vmem [#allocation10], %s2204_s26 }
  0x28   : > { %s427_s30 = sshll.u32 %s418_s25, 4  ;;  %s425_s21 = sshll.u32 %s424_s20, 4  ;;  %s428_s30 = int_to_ptr.vmem [resolvable:$true] %s427_s30  ;;  %s426_s21 = int_to_ptr.hbm [resolvable:$true] %s425_s21 }
  0x29   : > { %p2896_p0 = pnand %p2297_p11, %p169_p12  ;;  %s415_s18 = scalar_lea.sflag [#allocation6], %s414_s17 }
  0x2a   : > { %s2585_s27 = sshra.s32 %s426_s21, 4  ;;  %s2592_s12 = scalar_lea.hbm %s3752_s6, 4096  ;;  %s2586_s27 = int_to_ptr.hbm [resolvable:$true] %s2585_s27 }
  0x2b   : > { %s2587_s19 = scalar_lea.hbm %s2586_s27, 1024  ;;  %p2589_p5 = pneg %p2896_p0 }
  0x2c   : > { %p2588_p2 = scmp.ne.s32.totalorder %s2586_s27, %s2587_s19  ;;  %p2593_p8 = scmp.lt.s32.totalorder %s2586_s27, %s3752_s6 }
  0x2d   : > { %p2594_p9 = scmp.lt.s32.totalorder %s2592_s12, %s2587_s19 }
  0x2e   : > { %p2590_p6 = pnand %p2589_p5, %p2588_p2 }
  0x2f   : > { %p2595_p10 = por %p2594_p9, %p2593_p8 }
  0x30   : > { %p2591_p7 = pneg %p2590_p6 }
  0x32   : > { %p2596_p11 = pnand %p2595_p10, %p2591_p7 }
  0x34   : > { %2599 = shalt.err (!%p2596_p11)
}
  0x35   : > { %s2711_s17 = smov 512   ;;  %s2712_s20 = smov 32  }
  0x36   : > { %2290 = dma.hbm_to_vmem [thread:$0]  (!%p2896_p0), %s426_s21, 16384, %s428_s30, %s415_s18, %s2711_s17, %s2711_s17, %s2712_s20  }
  0x37   : > { %439 = sbr.rel (%p2828_p4) target bundleno = 1402 (0x57a), region = 68 }
  0x3c   : > { %2660 = dma.done.wait (%p174_p1), [#allocation6], 64  }
  0x3d   : > { %2662 = vsyncadd (%p174_p1), [#allocation6], 4294967232 }
  0x3e   : > { %2664 = dma.done.wait (%p174_p1), [#allocation9], 2304  }
  0x3f   : > { %2666 = vsyncadd (%p174_p1), [#allocation9], 4294964992  ;;  %s451_s25 = sand.u32 1, %s2822_s28   ;;  %s453_s30 = sand.u32 1, %s2693_s22  }
  0x40   : > { %s2211_s21 = sshll.u32 %s453_s30, 10  ;;  %s452_s29 = scalar_lea.sflag [#allocation6], %s451_s25 }
  0x41   : > { %s2922_s14 = scalar_lea.vmem [#allocation10], %s2211_s21 }
  0x42   : > { %2668 = dma.done.wait (%p2884_p13), %s452_s29, 16384  }
  0x43   : > { %2670 = vsyncadd (%p2884_p13), %s452_s29, 4294950912 }
  0x44   : > { %2672 = dma.done.wait (%p174_p1), [#allocation9], 64  }
  0x45   : > { %2674 = vsyncadd (%p174_p1), [#allocation9], 4294967232 }
  0x46   : > { %2676 = dma.done.wait (%p174_p1), [#allocation13], 8208  }
  0x47   : > { %2678 = vsyncadd (%p174_p1), [#allocation13], 4294959088 }
  0x48   : > { %2680 = dma.done.wait (%p174_p1), [#allocation16], 16  }
  0x49   : > { %2682 = vsyncadd (%p174_p1), [#allocation16], 4294967280  ;;  %516 = sbr.rel (%p2197_p3) target bundleno = 885 (0x375), region = 100  ;;  %s2721_s29 = smov (!%p2197_p3), 9  }
  0x4a   : > { %s2723_s16 = smov (!%p2197_p3), 127   ;;  %s2724_s18 = smov (!%p2197_p3), 112  }
  0x4b   : > { %s2725_s27 = smov (!%p2197_p3), 126   ;;  %s2726_s19 = smov (!%p2197_p3), 110  }
  0x4c   : > { %s2727_s26 = smov (!%p2197_p3), 120   ;;  %s2728_s5 = smov (!%p2197_p3), 119  }
  0x4d   : > { %s2729_s12 = smov (!%p2197_p3), 118   ;;  %s2730_s2 = smov (!%p2197_p3), 111  }
  0x4e   : > { %v518_v0 = vld [vmem:[%s3747_s1] sm:$0xff]  ;;  %v2713_v1 = vmov 3   ;;  %v2714_v2 = vmov 2   ;;  %v2715_v3 = vmov 1   ;;  %v519_v4 = vld [vmem:[%s3747_s1 + $0x8] sm:$0xff]  ;;  %v2716_v5 = vmov 5  }
  0x4f   : > { %2370 = vset.pattern.permute.xlu0 %v2713_v1  ;;  %2369 = vset.pattern.permute.xlu2 %v2714_v2  ;;  %v643_v6 = vld [vmem:[#allocation5] sm:$0xf]  ;;  %v2717_v7 = vmov 4   ;;  %v2718_v8 = vmov 6   ;;  %v2719_v9 = vmov 0   ;;  %v2955_v10 = vld [vmem:[%s3750_s4 + $0x10] sm:$0xff] }
  0x50   : > { %2368 = vset.pattern.permute.xlu1 %v2715_v3  ;;  %560 = vperm.xlu0 %2370, %v518_v0   ;;  %v2720_v11 = vmov 7   ;;  %v2961_v12 = vld [vmem:[%s3750_s4 + $0x38] sm:$0xff]  ;;  %v2968_v13 = vld [vmem:[%s3750_s4 + $0x50] sm:$0xff]  ;;  %v2975_v14 = vld [vmem:[%s3750_s4 + $0x68] sm:$0xff]  ;;  %vm625_vm0 = vcmask 146432   ;;  %vm637_vm1 = vcmask 1047624  }
  0x51   : > { %547 = vperm.xlu2 %2369, %v518_v0   ;;  %534 = vperm.xlu1 %2368, %v518_v0   ;;  %v2981_v15 = vld [vmem:[%s3750_s4 + $0x80] sm:$0xff]  ;;  %v2997_v18 = vld [vmem:[%s3750_s4 + $0x8] sm:$0xff]  ;;  %v3002_v19 = vld [vmem:[%s3750_s4 + $0x18] sm:$0xff]  ;;  %vm639_vm2 = vcmask 72704   ;;  %vm1210_vm3 = vcmask 1039360   ;;  %vm1227_vm4 = vcmask 1031168  }
  0x52   : > { %v692_v16 = vld [vmem:[%s3749_s3] sm:$0xf]  ;;  %v3014_v22 = vld [vmem:[%s3750_s4 + $0x28] sm:$0xff]  ;;  %v3021_v24 = vld [vmem:[%s3750_s4 + $0x30] sm:$0xff]  ;;  %vm1244_vm5 = vcmask 982016   ;;  %vm1261_vm6 = vcmask 973824  }
  0x53   : > { %v2990_v17 = vld [vmem:[%s3750_s4] sm:$0xff]  ;;  %v3033_v27 = vld [vmem:[%s3750_s4 + $0x48] sm:$0xff]  ;;  %v3038_v28 = vld [vmem:[%s3750_s4 + $0x58] sm:$0xff]  ;;  %vm1295_vm7 = vcmask 916480   ;;  %vm1278_vm8 = vcmask 965632   ;;  %vm1312_vm9 = vcmask 908288  }
  0x54   : > { %v3009_v21 = vld [vmem:[%s3750_s4 + $0x20] sm:$0xff]  ;;  %v3050_v33 = vld [vmem:[%s3750_s4 + $0x70] sm:$0xff]  ;;  %v3057_v36 = vld [vmem:[%s3750_s4 + $0x78] sm:$0xff]  ;;  %vm1329_vm10 = vcmask 900096   ;;  %vm1338_vm11 = vcmask 516096   ;;  %s2731_s24 = smov 64  }
  0x55   : > { %v3026_v25 = vld [vmem:[%s3750_s4 + $0x40] sm:$0xff]  ;;  %v3062_v38 = vld [vmem:[%s3750_s4 + $0x88] sm:$0xff]  ;;  %vm1346_vm12 = vcmask 1040896   ;;  %vm1545_vm13 = vcmask 1041408   ;;  %vm1547_vm14 = vcmask 1045508   ;;  %vm1549_vm15 = vcmask 1043456  }
  0x56   : > { %v3045_v32 = vld [vmem:[%s3750_s4 + $0x60] sm:$0xff] }
  0x57   : > { %v517_v39 = vld [vmem:[%s3746_s0] sm:$0xff] }
  0x58   : > { %2375 = vset.pattern.permute.xlu0 %v2716_v5  ;;  %v606_v40 = vperm.slane %v517_v39, 6  ;;  %v3074_v45 = vperm.slane %v517_v39, 1  ;;  %v530_v46 = vperm.slane %v517_v39, 0  ;;  %v3076_v47 = vperm.slane %v517_v39, 2 }
  0x59   : > { %551 = vperm.xlu2 %2369, %v519_v4   ;;  %538 = vperm.xlu1 %2368, %v519_v4   ;;  %v567_v51 = vperm.slane %v517_v39, 3  ;;  %v3083_v57 = vperm.slane %v517_v39, 4 }
  0x5a   : > { %590 = vperm.xlu0 %2375, %v519_v4  }
  0x61   : > { %2372 = vset.pattern.permute.xlu2 %v2717_v7  ;;  %2371 = vset.pattern.permute.xlu1 %v2713_v1 }
  0x62   : > { %2385 = vset.pattern.permute.xlu0 %v2718_v8  ;;  %573 = vperm.xlu2 %2372, %v518_v0  }
  0x63   : > { %564 = vperm.xlu1 %2371, %v519_v4   ;;  %681 = vperm.xlu0 %2385, %v643_v6  }
  0x6a   : > { %2374 = vset.pattern.permute.xlu2 %v2716_v5 }
  0x6b   : > { %2373 = vset.pattern.permute.xlu1 %v2717_v7  ;;  %2386 = vset.pattern.permute.xlu0 %v2719_v9 }
  0x6c   : > { %586 = vperm.xlu2 %2374, %v518_v0   ;;  %577 = vperm.xlu1 %2373, %v519_v4  }
  0x6d   : > { %522 = vperm.xlu0 %2386, %v518_v0  }
  0x74   : > { %2377 = vset.pattern.permute.xlu2 %v2718_v8  ;;  %2376 = vset.pattern.permute.xlu1 %v2718_v8 }
  0x75   : > { %527 = vperm.xlu0 %2386, %v519_v4   ;;  %603 = vperm.xlu2 %2377, %v519_v4  }
  0x76   : > { %599 = vperm.xlu1 %2376, %v518_v0  }
  0x7d   : > { %730 = vperm.xlu0 %2386, %v2955_v10   ;;  %2379 = vset.pattern.permute.xlu2 %v2720_v11 }
  0x7e   : > { %2378 = vset.pattern.permute.xlu1 %v2720_v11  ;;  %616 = vperm.xlu2 %2379, %v519_v4  }
  0x7f   : > { %612 = vperm.xlu1 %2378, %v518_v0   ;;  %v593_v0 = vperm.slane %v517_v39, 5 }
  0x85   : > { %755 = vperm.xlu0 %2386, %v2961_v12  }
  0x86   : > { %2380 = vset.pattern.permute.xlu2 %v2719_v9 }
  0x87   : > { %2381 = vset.pattern.permute.xlu1 %v2714_v2  ;;  %646 = vperm.xlu2 %2380, %v643_v6  }
  0x88   : > { %657 = vperm.xlu1 %2381, %v643_v6  }
  0x8d   : > { %770 = vperm.xlu0 %2386, %v2968_v13  }
  0x8f   : > { %2382 = vset.pattern.permute.xlu2 %v2713_v1 }
  0x90   : > { %2383 = vset.pattern.permute.xlu1 %v2717_v7  ;;  %663 = vperm.xlu2 %2382, %v643_v6  }
  0x91   : > { %669 = vperm.xlu1 %2383, %v643_v6  }
  0x95   : > { %785 = vperm.xlu0 %2386, %v2975_v14  }
  0x98   : > { %2384 = vset.pattern.permute.xlu2 %v2716_v5 }
  0x99   : > { %2387 = vset.pattern.permute.xlu1 %v2720_v11  ;;  %675 = vperm.xlu2 %2384, %v643_v6  }
  0x9a   : > { %687 = vperm.xlu1 %2387, %v643_v6  }
  0x9d   : > { %800 = vperm.xlu0 %2386, %v2981_v15  }
  0xa1   : > { %2388 = vset.pattern.permute.xlu2 %v2719_v9 }
  0xa2   : > { %2389 = vset.pattern.permute.xlu1 %v2719_v9  ;;  %695 = vperm.xlu2 %2388, %v692_v16  }
  0xa3   : > { %720 = vperm.xlu1 %2389, %v2990_v17  }
  0xa5   : > { %2390 = vset.pattern.permute.xlu0 %v2715_v3 }
  0xa6   : > { %651 = vperm.xlu0 %2390, %v643_v6  }
  0xaa   : > { %725 = vperm.xlu2 %2388, %v2997_v18  }
  0xab   : > { %735 = vperm.xlu1 %2389, %v3002_v19   ;;  %v548_v20 = vpop.permute.xlu2 %547 }
  0xac   : > { %v555_v54 = vmul.f32 %v3076_v47, %v548_v20 }
  0xb2   : > { %740 = vperm.xlu2 %2388, %v3009_v21  }
  0xb3   : > { %745 = vperm.xlu1 %2389, %v3014_v22   ;;  %v552_v23 = vpop.permute.xlu2 %551 }
  0xb4   : > { %v556_v5 = vmul.f32 %v3076_v47, %v552_v23 }
  0xba   : > { %750 = vperm.xlu2 %2388, %v3021_v24  }
  0xbb   : > { %760 = vperm.xlu1 %2389, %v3026_v25  }
  0xbc   : > { %v574_v26 = vpop.permute.xlu2 %573 }
  0xbd   : > { %v581_v62 = vmul.f32 %v3083_v57, %v574_v26 }
  0xc2   : > { %765 = vperm.xlu2 %2388, %v3033_v27   ;;  %v561_v29 = vpop.permute.xlu0 %560 }
  0xc3   : > { %775 = vperm.xlu1 %2389, %v3038_v28   ;;  %v535_v30 = vpop.permute.xlu1 %534  ;;  %v568_v58 = vmul.f32 %v567_v51, %v561_v29  ;;  %v619_v29 = vperm.slane %v517_v39, 7 }
  0xc4   : > { %v542_v50 = vmul.f32 %v3074_v45, %v535_v30 }
  0xc6   : > { %v587_v31 = vpop.permute.xlu2 %586 }
  0xc7   : > { %v594_v6 = vmul.f32 %v593_v0, %v587_v31 }
  0xca   : > { %780 = vperm.xlu2 %2388, %v3045_v32  }
  0xcb   : > { %790 = vperm.xlu1 %2389, %v3050_v33   ;;  %v539_v34 = vpop.permute.xlu1 %538 }
  0xcc   : > { %v591_v35 = vpop.permute.xlu0 %590  ;;  %v543_v63 = vmul.f32 %v3074_v45, %v539_v34 }
  0xcf   : > { %v604_v37 = vpop.permute.xlu2 %603 }
  0xd2   : > { %795 = vperm.xlu2 %2388, %v3057_v36  }
  0xd3   : > { %805 = vperm.xlu1 %2389, %v3062_v38  }
  0xd5   : > { %v565_v41 = vpop.permute.xlu1 %564  ;;  %v682_v42 = vpop.permute.xlu0 %681 }
  0xd6   : > { %v3069_v43 = vmul.f32 %v682_v42, %v606_v40  ;;  %v569_v16 = vmul.f32 %v567_v51, %v565_v41 }
  0xd8   : > { %v617_v44 = vpop.permute.xlu2 %616 }
  0xda   : > { %2391 = vset.pattern.permute.xlu2 %v2715_v3 }
  0xdb   : > { %828 = vperm.xlu2 %2391, %v2990_v17   ;;  %2392 = vset.pattern.permute.xlu1 %v2715_v3 }
  0xde   : > { %v578_v48 = vpop.permute.xlu1 %577 }
  0xdf   : > { %v523_v49 = vpop.permute.xlu0 %522  ;;  %v582_v30 = vmul.f32 %v3083_v57, %v578_v48 }
  0xe0   : > { %v531_v52 = vmul.f32 %v530_v46, %v523_v49  ;;  %v608_v49 = vmul.f32 %v606_v40, %v604_v37 }
  0xe1   : > { %v647_v53 = vpop.permute.xlu2 %646 }
  0xe2   : > { %v544_v55 = vadd.f32 %v542_v50, %v531_v52  ;;  %v3080_v56 = vmul.f32 %v647_v53, %v530_v46  ;;  %v621_v52 = vmul.f32 %v619_v29, %v617_v44 }
  0xe3   : > { %840 = vperm.xlu2 %2391, %v3002_v19  }
  0xe4   : > { %v557_v59 = vadd.f32 %v555_v54, %v544_v55 }
  0xe6   : > { %v570_v60 = vadd.f32 %v568_v58, %v557_v59 }
  0xe7   : > { %v528_v61 = vpop.permute.xlu0 %527 }
  0xe8   : > { %v532_v3 = vmul.f32 %v530_v46, %v528_v61  ;;  %v600_v4 = vpop.permute.xlu1 %599  ;;  %v583_v8 = vadd.f32 %v581_v62, %v570_v60  ;;  %v595_v46 = vmul.f32 %v593_v0, %v591_v35 }
  0xe9   : > { %v607_v23 = vmul.f32 %v606_v40, %v600_v4 }
  0xea   : > { %v545_v7 = vadd.f32 %v543_v63, %v532_v3  ;;  %v664_v9 = vpop.permute.xlu2 %663  ;;  %v596_v42 = vadd.f32 %v594_v6, %v583_v8 }
  0xeb   : > { %848 = vperm.xlu2 %2391, %v3014_v22   ;;  %v666_v11 = vmul.f32 %v664_v9, %v567_v51 }
  0xec   : > { %v558_v20 = vadd.f32 %v556_v5, %v545_v7  ;;  %v609_v53 = vadd.f32 %v607_v23, %v596_v42 }
  0xee   : > { %v571_v26 = vadd.f32 %v569_v16, %v558_v20 }
  0xef   : > { %v3090_v34 = vpop.permute.xlu0 %730 }
  0xf0   : > { %v584_v50 = vadd.f32 %v582_v30, %v571_v26 }
  0xf1   : > { %v613_v31 = vpop.permute.xlu1 %612 }
  0xf2   : > { %v620_v54 = vmul.f32 %v619_v29, %v613_v31  ;;  %v597_v55 = vadd.f32 %v595_v46, %v584_v50 }
  0xf3   : > { %860 = vperm.xlu2 %2391, %v3026_v25   ;;  %v676_v41 = vpop.permute.xlu2 %675 }
  0xf4   : > { %v622_v51 = vadd.f32 %v620_v54, %v609_v53  ;;  %v678_v39 = vmul.f32 %v676_v41, %v593_v0  ;;  %v610_v58 = vadd.f32 %v608_v49, %v597_v55 }
  0xf6   : > { %631 = vrot.lane.b32.xlu0 %v622_v51, %s2721_s29  ;;  %v623_v48 = vadd.f32 %v621_v52, %v610_v58 }
  0xf7   : > { %v3093_v59 = vpop.permute.xlu0 %755 }
  0xf8   : > { %633 = vrot.lane.b32.xlu1 %v623_v48, %s2721_s29 }
  0xfa   : > { %v658_v35 = vpop.permute.xlu1 %657 }
  0xfb   : > { %872 = vperm.xlu2 %2391, %v3038_v28   ;;  %v660_v7 = vmul.f32 %v658_v35, %v3076_v47 }
  0xfc   : > { %v696_v37 = vpop.permute.xlu2 %695 }
  0xfe   : > { %832 = vperm.xlu0 %2390, %v2997_v18  }
  0xff   : > { %v3097_v40 = vpop.permute.xlu0 %770 }
 0x100   : > { %836 = vperm.xlu1 %2392, %v2955_v10  }
 0x103   : > { %884 = vperm.xlu2 %2391, %v3050_v33   ;;  %v670_v44 = vpop.permute.xlu1 %669 }
 0x104   : > { %v726_v60 = vpop.permute.xlu2 %725  ;;  %v672_v20 = vmul.f32 %v670_v44, %v3083_v57 }
 0x106   : > { %852 = vperm.xlu0 %2390, %v3021_v24  }
 0x107   : > { %v786_v61 = vpop.permute.xlu0 %785 }
 0x108   : > { %844 = vperm.xlu1 %2392, %v3009_v21  }
 0x10b   : > { %896 = vperm.xlu2 %2391, %v3062_v38  }
 0x10c   : > { %v688_v62 = vpop.permute.xlu1 %687  ;;  %v741_v63 = vpop.permute.xlu2 %740 }
 0x10d   : > { %v690_v0 = vmul.f32 %v688_v62, %v619_v29 }
 0x10e   : > { %864 = vperm.xlu0 %2390, %v3033_v27  }
 0x10f   : > { %v801_v3 = vpop.permute.xlu0 %800 }
 0x110   : > { %856 = vperm.xlu1 %2392, %v2961_v12  }
 0x113   : > { %2394 = vset.pattern.permute.xlu2 %v2714_v2 }
 0x114   : > { %945 = vperm.xlu2 %2394, %v2955_v10   ;;  %v751_v4 = vpop.permute.xlu2 %750 }
 0x115   : > { %v721_v5 = vpop.permute.xlu1 %720 }
 0x116   : > { %876 = vperm.xlu0 %2390, %v3045_v32  }
 0x118   : > { %v652_v6 = vpop.permute.xlu0 %651  ;;  %868 = vperm.xlu1 %2392, %v2968_v13  }
 0x119   : > { %v654_v8 = vmul.f32 %v652_v6, %v3074_v45 }
 0x11b   : > { %v655_v9 = vadd.f32 %v654_v8, %v3080_v56 }
 0x11c   : > { %953 = vperm.xlu2 %2394, %v3009_v21   ;;  %v766_v16 = vpop.permute.xlu2 %765 }
 0x11d   : > { %v661_v29 = vadd.f32 %v660_v7, %v655_v9  ;;  %v736_v30 = vpop.permute.xlu1 %735 }
 0x11e   : > { %888 = vperm.xlu0 %2390, %v3057_v36  }
 0x11f   : > { %v667_v26 = vadd.f32 %v666_v11, %v661_v29 }
 0x120   : > { %880 = vperm.xlu1 %2392, %v2975_v14  }
 0x121   : > { %v673_v42 = vadd.f32 %v672_v20, %v667_v26  ;;  %v2722_v20 = vmov 0.0  }
 0x122   : > { %624 = vst [vmem:[#allocation2] sm:$0xff] %v2722_v20 }
 0x123   : > { %v679_v46 = vadd.f32 %v678_v39, %v673_v42  ;;  %626 = vst.msk [vmem:[#allocation2 + $0x8] sm:$0xff] %vm625_vm0, %v2722_v20 }
 0x124   : > { %965 = vperm.xlu2 %2394, %v2961_v12   ;;  %v781_v47 = vpop.permute.xlu2 %780  ;;  %627 = vst [vmem:[#allocation2 + $0x10] sm:$0xff] %v2722_v20 }
 0x125   : > { %v685_v45 = vadd.f32 %v3069_v43, %v679_v46  ;;  %v746_v56 = vpop.permute.xlu1 %745  ;;  %628 = vst.msk [vmem:[#allocation2 + $0x18] sm:$0xff] %vm625_vm0, %v2722_v20 }
 0x126   : > { %2396 = vset.pattern.permute.xlu0 %v2713_v1 }
 0x127   : > { %v691_v49 = vadd.f32 %v690_v0, %v685_v45  ;;  %1054 = vperm.xlu0 %2396, %v2955_v10  }
 0x128   : > { %892 = vperm.xlu1 %2392, %v2981_v15  }
 0x129   : > { %v698_v57 = vadd.f32 %v696_v37, %v691_v49 }
 0x12b   : > { %v3122_v50 = vmax.f32 %v698_v57, 0.0 }
 0x12c   : > { %977 = vperm.xlu2 %2394, %v2968_v13   ;;  %v796_v11 = vpop.permute.xlu2 %795 }
 0x12d   : > { %v808_v23 = vperm.slane %v3122_v50, 0  ;;  %v761_v31 = vpop.permute.xlu1 %760 }
 0x12f   : > { %v812_v52 = vmul.f32 %v808_v23, %v736_v30  ;;  %v3126_v53 = vmul.f32 %v808_v23, %v766_v16  ;;  %v814_v43 = vmul.f32 %v808_v23, %v746_v56  ;;  %v3128_v54 = vmul.f32 %v808_v23, %v781_v47  ;;  %1078 = vperm.xlu0 %2396, %v3026_v25  }
 0x130   : > { %v817_v10 = vmul.f32 %v808_v23, %v761_v31  ;;  %v3131_v55 = vmul.f32 %v808_v23, %v796_v11  ;;  %2393 = vset.pattern.permute.xlu1 %v2714_v2  ;;  %v809_v41 = vmul.f32 %v808_v23, %v721_v5  ;;  %v3134_v51 = vmul.f32 %v808_v23, %v726_v60 }
 0x131   : > { %941 = vperm.xlu1 %2393, %v2997_v18   ;;  %v3138_v39 = vmul.f32 %v808_v23, %v3090_v34  ;;  %v3140_v58 = vmul.f32 %v808_v23, %v751_v4  ;;  %v3142_v48 = vmul.f32 %v808_v23, %v741_v63  ;;  %v3145_v35 = vmul.f32 %v808_v23, %v3093_v59 }
 0x132   : > { %v3148_v37 = vmul.f32 %v808_v23, %v3097_v40  ;;  %v3150_v44 = vmul.f32 %v808_v23, %v786_v61  ;;  %v3152_v62 = vmul.f32 %v808_v23, %v801_v3  ;;  %v3155_v60 = vperm.slane %v3122_v50, 1 }
 0x134   : > { %2395 = vset.pattern.permute.xlu2 %v2713_v1 }
 0x135   : > { %v776_v34 = vpop.permute.xlu1 %775  ;;  %1046 = vperm.xlu2 %2395, %v2990_v17   ;;  %v829_v63 = vpop.permute.xlu2 %828 }
 0x136   : > { %v820_v0 = vmul.f32 %v808_v23, %v776_v34  ;;  %v900_v59 = vmul.f32 %v3155_v60, %v829_v63 }
 0x137   : > { %1086 = vperm.xlu0 %2396, %v2968_v13  }
 0x138   : > { %v3161_v40 = vadd.f32 %v900_v59, %v809_v41 }
 0x139   : > { %949 = vperm.xlu1 %2393, %v3002_v19  }
 0x13d   : > { %v791_v61 = vpop.permute.xlu1 %790  ;;  %1070 = vperm.xlu2 %2395, %v3021_v24   ;;  %v841_v3 = vpop.permute.xlu2 %840 }
 0x13e   : > { %v823_v4 = vmul.f32 %v808_v23, %v791_v61  ;;  %v903_v5 = vmul.f32 %v3155_v60, %v841_v3 }
 0x13f   : > { %1102 = vperm.xlu0 %2396, %v3050_v33  }
 0x140   : > { %v3167_v6 = vadd.f32 %v903_v5, %v812_v52 }
 0x141   : > { %961 = vperm.xlu1 %2393, %v3021_v24  }
 0x145   : > { %v806_v7 = vpop.permute.xlu1 %805  ;;  %v849_v8 = vpop.permute.xlu2 %848  ;;  %2398 = vset.pattern.permute.xlu2 %v2714_v2 }
 0x146   : > { %v826_v13 = vmul.f32 %v808_v23, %v806_v7  ;;  %v905_v9 = vmul.f32 %v3155_v60, %v849_v8 }
 0x147   : > { %2399 = vset.pattern.permute.xlu0 %v2714_v2 }
 0x148   : > { %v3173_v16 = vadd.f32 %v905_v9, %v814_v43  ;;  %937 = vperm.xlu0 %2399, %v2990_v17   ;;  %v3209_v43 = vperm.slane %v3122_v50, 2 }
 0x149   : > { %973 = vperm.xlu1 %2393, %v3033_v27  }
 0x14d   : > { %v861_v24 = vpop.permute.xlu2 %860 }
 0x14e   : > { %v908_v29 = vmul.f32 %v3155_v60, %v861_v24 }
 0x150   : > { %v3178_v30 = vadd.f32 %v908_v29, %v817_v10  ;;  %957 = vperm.xlu0 %2399, %v3014_v22  }
 0x151   : > { %985 = vperm.xlu1 %2393, %v3045_v32  }
 0x155   : > { %v873_v26 = vpop.permute.xlu2 %872 }
 0x156   : > { %v911_v42 = vmul.f32 %v3155_v60, %v873_v26 }
 0x158   : > { %v3183_v17 = vadd.f32 %v911_v42, %v820_v0  ;;  %969 = vperm.xlu0 %2399, %v3026_v25  }
 0x159   : > { %2397 = vset.pattern.permute.xlu1 %v2713_v1 }
 0x15a   : > { %1062 = vperm.xlu1 %2397, %v3009_v21  }
 0x15d   : > { %v885_v46 = vpop.permute.xlu2 %884 }
 0x15e   : > { %v914_v47 = vmul.f32 %v3155_v60, %v885_v46 }
 0x160   : > { %v3189_v45 = vadd.f32 %v914_v47, %v823_v4  ;;  %981 = vperm.xlu0 %2399, %v3038_v28  }
 0x162   : > { %1094 = vperm.xlu1 %2397, %v3045_v32  }
 0x165   : > { %v897_v56 = vpop.permute.xlu2 %896 }
 0x166   : > { %v917_v49 = vmul.f32 %v3155_v60, %v897_v56 }
 0x168   : > { %v3194_v57 = vadd.f32 %v917_v49, %v826_v13  ;;  %993 = vperm.xlu0 %2399, %v3050_v33   ;;  %v632_v25 = vpop.permute.xlu0 %631 }
 0x169   : > { %638 = vst.msk [vmem:[#allocation2] sm:$0xff] %vm637_vm1, %v632_v25 }
 0x16a   : > { %640 = vst.msk [vmem:[#allocation2 + $0x8] sm:$0xff] %vm639_vm2, %v632_v25  ;;  %v634_v21 = vpop.permute.xlu1 %633 }
 0x16b   : > { %641 = vst.msk [vmem:[#allocation2 + $0x10] sm:$0xff] %vm637_vm1, %v634_v21 }
 0x16c   : > { %642 = vst.msk [vmem:[#allocation2 + $0x18] sm:$0xff] %vm639_vm2, %v634_v21 }
 0x16e   : > { %v946_v11 = vpop.permute.xlu2 %945 }
 0x16f   : > { %v1011_v34 = vmul.f32 %v3209_v43, %v946_v11 }
 0x170   : > { %v833_v23 = vpop.permute.xlu0 %832  ;;  %v3197_v31 = vld [vmem:[#allocation2] sm:$0xff] }
 0x171   : > { %v901_v32 = vmul.f32 %v3155_v60, %v833_v23  ;;  %v3200_v52 = vld [vmem:[#allocation2 + $0x8] sm:$0xff]  ;;  %1202 = vrot.lane.b32.xlu1 %v3197_v31, %s2723_s16 }
 0x172   : > { %1289 = vrot.lane.b32.xlu0 %v3200_v52, %s2724_s18  ;;  %1204 = vrot.lane.b32.xlu2 %v3200_v52, %s2723_s16  ;;  %v837_v33 = vpop.permute.xlu1 %836  ;;  %v3235_v24 = vld [vmem:[#allocation2 + $0x10] sm:$0xff] }
 0x173   : > { %v3212_v10 = vadd.f32 %v901_v32, %v3134_v51  ;;  %v902_v41 = vmul.f32 %v3155_v60, %v837_v33 }
 0x175   : > { %v920_v63 = vadd.f32 %v902_v41, %v3138_v39 }
 0x176   : > { %v954_v0 = vpop.permute.xlu2 %953 }
 0x177   : > { %v3217_v59 = vadd.f32 %v1011_v34, %v920_v63  ;;  %v1013_v5 = vmul.f32 %v3209_v43, %v954_v0 }
 0x178   : > { %v853_v61 = vpop.permute.xlu0 %852 }
 0x179   : > { %v906_v3 = vmul.f32 %v3155_v60, %v853_v61  ;;  %1219 = vrot.lane.b32.xlu1 %v3197_v31, %s2725_s27 }
 0x17a   : > { %1221 = vrot.lane.b32.xlu2 %v3200_v52, %s2725_s27  ;;  %1321 = vrot.lane.b32.xlu0 %v3197_v31, %s2726_s19  ;;  %v845_v51 = vpop.permute.xlu1 %844 }
 0x17b   : > { %v3227_v39 = vadd.f32 %v906_v3, %v3140_v58  ;;  %v904_v4 = vmul.f32 %v3155_v60, %v845_v51  ;;  %v3316_v51 = vld [vmem:[#allocation2 + $0x18] sm:$0xff] }
 0x17d   : > { %v922_v7 = vadd.f32 %v904_v4, %v3142_v48 }
 0x17e   : > { %v966_v13 = vpop.permute.xlu2 %965 }
 0x17f   : > { %v3232_v8 = vadd.f32 %v1013_v5, %v922_v7  ;;  %v1016_v26 = vmul.f32 %v3209_v43, %v966_v13 }
 0x180   : > { %v865_v9 = vpop.permute.xlu0 %864 }
 0x181   : > { %v909_v20 = vmul.f32 %v3155_v60, %v865_v9  ;;  %1236 = vrot.lane.b32.xlu1 %v3197_v31, %s2727_s26 }
 0x182   : > { %1238 = vrot.lane.b32.xlu2 %v3200_v52, %s2727_s26  ;;  %1206 = vrot.lane.b32.xlu0 %v3235_v24, %s2723_s16  ;;  %v857_v58 = vpop.permute.xlu1 %856 }
 0x183   : > { %v3244_v48 = vadd.f32 %v909_v20, %v3126_v53  ;;  %v907_v29 = vmul.f32 %v3155_v60, %v857_v58 }
 0x185   : > { %v925_v42 = vadd.f32 %v907_v29, %v3145_v35 }
 0x186   : > { %v978_v49 = vpop.permute.xlu2 %977 }
 0x187   : > { %v3249_v46 = vadd.f32 %v1016_v26, %v925_v42  ;;  %v1019_v21 = vmul.f32 %v3209_v43, %v978_v49 }
 0x188   : > { %v877_v47 = vpop.permute.xlu0 %876 }
 0x189   : > { %v912_v56 = vmul.f32 %v3155_v60, %v877_v47  ;;  %1255 = vrot.lane.b32.xlu1 %v3200_v52, %s2728_s5 }
 0x18a   : > { %1223 = vrot.lane.b32.xlu0 %v3235_v24, %s2725_s27  ;;  %1253 = vrot.lane.b32.xlu2 %v3197_v31, %s2728_s5  ;;  %v869_v53 = vpop.permute.xlu1 %868 }
 0x18b   : > { %v3259_v25 = vadd.f32 %v912_v56, %v3128_v54  ;;  %v910_v35 = vmul.f32 %v3155_v60, %v869_v53 }
 0x18d   : > { %v928_v11 = vadd.f32 %v910_v35, %v3148_v37 }
 0x18f   : > { %v3264_v23 = vadd.f32 %v1019_v21, %v928_v11  ;;  %v1154_v11 = vld [vmem:[#allocation8] sm:$0xff] }
 0x190   : > { %v889_v32 = vpop.permute.xlu0 %888 }
 0x191   : > { %v915_v33 = vmul.f32 %v3155_v60, %v889_v32  ;;  %1270 = vrot.lane.b32.xlu1 %v3197_v31, %s2729_s12  ;;  %v1156_v32 = vld [vmem:[#allocation8 + $0x10] sm:$0xff] }
 0x192   : > { %997 = vperm.xlu0 %2399, %v3057_v36   ;;  %1001 = vperm.xlu2 %2398, %v2981_v15   ;;  %v881_v54 = vpop.permute.xlu1 %880 }
 0x193   : > { %v3272_v41 = vadd.f32 %v915_v33, %v3131_v55  ;;  %v913_v34 = vmul.f32 %v3155_v60, %v881_v54 }
 0x195   : > { %v3276_v37 = vadd.f32 %v913_v34, %v3150_v44 }
 0x199   : > { %1110 = vperm.xlu1 %2397, %v2981_v15   ;;  %v3279_v63 = vpop.permute.xlu0 %1054 }
 0x19a   : > { %2402 = vset.pattern.permute.xlu0 %v2713_v1  ;;  %1272 = vrot.lane.b32.xlu2 %v3200_v52, %s2729_s12  ;;  %v893_v0 = vpop.permute.xlu1 %892 }
 0x19b   : > { %1058 = vperm.xlu0 %2402, %v3002_v19   ;;  %v916_v55 = vmul.f32 %v3155_v60, %v893_v0  ;;  %2400 = vset.pattern.permute.xlu2 %v2713_v1 }
 0x19d   : > { %v3288_v61 = vadd.f32 %v916_v55, %v3152_v62 }
 0x1a1   : > { %1304 = vrot.lane.b32.xlu1 %v3197_v31, %s2730_s2  ;;  %v3292_v15 = vpop.permute.xlu0 %1078 }
 0x1a2   : > { %1287 = vrot.lane.b32.xlu2 %v3197_v31, %s2724_s18 }
 0x1a3   : > { %1090 = vperm.xlu0 %2402, %v3038_v28   ;;  %v942_v44 = vpop.permute.xlu1 %941 }
 0x1a4   : > { %v1010_v19 = vmul.f32 %v3209_v43, %v942_v44 }
 0x1a6   : > { %v3299_v60 = vadd.f32 %v1010_v19, %v3212_v10 }
 0x1a9   : > { %1323 = vrot.lane.b32.xlu1 %v3200_v52, %s2726_s19  ;;  %v3303_v1 = vpop.permute.xlu0 %1086 }
 0x1aa   : > { %1306 = vrot.lane.b32.xlu2 %v3200_v52, %s2730_s2 }
 0x1ab   : > { %1106 = vperm.xlu0 %2402, %v3057_v36   ;;  %v950_v62 = vpop.permute.xlu1 %949 }
 0x1ac   : > { %v1012_v3 = vmul.f32 %v3209_v43, %v950_v62 }
 0x1ae   : > { %v3310_v28 = vadd.f32 %v1012_v3, %v3167_v6  ;;  %v1047_v6 = vpop.permute.xlu2 %1046  ;;  %v1158_v3 = vld [vmem:[#allocation8 + $0x20] sm:$0xff] }
 0x1b1   : > { %1066 = vperm.xlu1 %2397, %v3014_v22   ;;  %v3313_v10 = vpop.permute.xlu0 %1102 }
 0x1b2   : > { %1050 = vperm.xlu2 %2400, %v2997_v18  }
 0x1b3   : > { %1293 = vrot.lane.b32.xlu0 %v3316_v51, %s2724_s18  ;;  %v962_v52 = vpop.permute.xlu1 %961 }
 0x1b4   : > { %v1015_v36 = vmul.f32 %v3209_v43, %v962_v52 }
 0x1b6   : > { %v3322_v4 = vadd.f32 %v1015_v36, %v3227_v39 }
 0x1b9   : > { %1208 = vrot.lane.b32.xlu1 %v3316_v51, %s2723_s16 }
 0x1ba   : > { %1074 = vperm.xlu2 %2400, %v2961_v12   ;;  %v938_v22 = vpop.permute.xlu0 %937  ;;  %v1071_v12 = vpop.permute.xlu2 %1070 }
 0x1bb   : > { %1325 = vrot.lane.b32.xlu0 %v3235_v24, %s2726_s19  ;;  %v974_v18 = vpop.permute.xlu1 %973  ;;  %v1009_v56 = vmul.f32 %v3209_v43, %v938_v22 }
 0x1bc   : > { %v1018_v5 = vmul.f32 %v3209_v43, %v974_v18 }
 0x1bd   : > { %v1027_v53 = vadd.f32 %v1009_v56, %v3161_v40  ;;  %v1162_v56 = vld [vmem:[#allocation8 + $0x40] sm:$0xff] }
 0x1be   : > { %v3331_v7 = vadd.f32 %v1018_v5, %v3244_v48 }
 0x1c1   : > { %1225 = vrot.lane.b32.xlu1 %v3316_v51, %s2725_s27 }
 0x1c2   : > { %1082 = vperm.xlu2 %2400, %v3033_v27   ;;  %v958_v39 = vpop.permute.xlu0 %957 }
 0x1c3   : > { %v1014_v13 = vmul.f32 %v3209_v43, %v958_v39  ;;  %v986_v9 = vpop.permute.xlu1 %985 }
 0x1c4   : > { %v1021_v20 = vmul.f32 %v3209_v43, %v986_v9  ;;  %v1160_v9 = vld [vmem:[#allocation8 + $0x30] sm:$0xff] }
 0x1c5   : > { %v3339_v58 = vadd.f32 %v1014_v13, %v3173_v16 }
 0x1c6   : > { %v3342_v29 = vadd.f32 %v1021_v20, %v3259_v25 }
 0x1c9   : > { %1240 = vrot.lane.b32.xlu1 %v3235_v24, %s2727_s26 }
 0x1ca   : > { %2401 = vset.pattern.permute.xlu2 %v2714_v2  ;;  %v970_v48 = vpop.permute.xlu0 %969  ;;  %v3357_v2 = vperm.slane %v3122_v50, 3 }
 0x1cb   : > { %989 = vperm.xlu2 %2401, %v2975_v14  }
 0x1cc   : > { %v1205_v27 = vpop.permute.xlu2 %1204  ;;  %v1063_v26 = vpop.permute.xlu1 %1062  ;;  %v1120_v25 = vmul.f32 %v3357_v2, %v3279_v63  ;;  %v1124_v18 = vmul.f32 %v3357_v2, %v1071_v12 }
 0x1cd   : > { %v1122_v54 = vmul.f32 %v3357_v2, %v1063_v26 }
 0x1ce   : > { %v1138_v50 = vadd.f32 %v1120_v25, %v3217_v59  ;;  %v1142_v39 = vadd.f32 %v1124_v18, %v3322_v4  ;;  %v1126_v4 = vmul.f32 %v3357_v2, %v3292_v15 }
 0x1cf   : > { %v1140_v59 = vadd.f32 %v1122_v54, %v3232_v8  ;;  %v1017_v8 = vmul.f32 %v3209_v43, %v970_v48 }
 0x1d0   : > { %v1174_v40 = vmul.f32 %v1156_v32, %v1138_v50  ;;  %v1164_v32 = vld [vmem:[#allocation8 + $0x50] sm:$0xff] }
 0x1d1   : > { %1098 = vperm.xlu1 %2397, %v2975_v14   ;;  %v1118_v14 = vmul.f32 %v3357_v2, %v1047_v6  ;;  %v1176_v52 = vmul.f32 %v1158_v3, %v1140_v59 }
 0x1d2   : > { %v982_v42 = vpop.permute.xlu0 %981 }
 0x1d3   : > { %1242 = vrot.lane.b32.xlu2 %v3316_v51, %s2727_s26  ;;  %v1020_v16 = vmul.f32 %v3209_v43, %v982_v42 }
 0x1d4   : > { %v1222_v47 = vpop.permute.xlu2 %1221  ;;  %v1095_v35 = vpop.permute.xlu1 %1094 }
 0x1d5   : > { %v3354_v49 = vadd.f32 %v1020_v16, %v3183_v17  ;;  %v1136_v17 = vadd.f32 %v1118_v14, %v1027_v53 }
 0x1d7   : > { %v1172_v33 = vmul.f32 %v1154_v11, %v1136_v17 }
 0x1d9   : > { %1259 = vrot.lane.b32.xlu1 %v3316_v51, %s2728_s5  ;;  %v1192_v44 = vmul.f32 %v3197_v31, %v1172_v33 }
 0x1da   : > { %v994_v63 = vpop.permute.xlu0 %993 }
 0x1db   : > { %1257 = vrot.lane.b32.xlu2 %v3235_v24, %s2728_s5 }
 0x1dc   : > { %v1239_v21 = vpop.permute.xlu2 %1238 }
 0x1e1   : > { %1274 = vrot.lane.b32.xlu1 %v3235_v24, %s2729_s12 }
 0x1e3   : > { %1005 = vperm.xlu2 %2401, %v3062_v38   ;;  %v1203_v34 = vpop.permute.xlu1 %1202 }
 0x1e4   : > { %v1254_v0 = vpop.permute.xlu2 %1253  ;;  %v1211_v55 = vsel %vm1210_vm3, %v1203_v34, %v1205_v27  ;;  %v1290_v31 = vpop.permute.xlu0 %1289  ;;  %v1178_v27 = vmul.f32 %v1160_v9, %v1142_v39 }
 0x1e5   : > { %v1215_v19 = vmul.f32 %v1211_v55, %v1174_v40 }
 0x1e7   : > { %v1217_v62 = vadd.f32 %v1215_v19, %v1192_v44 }
 0x1e9   : > { %1114 = vperm.xlu1 %2397, %v3062_v38   ;;  %v1035_v38 = vadd.f32 %v1017_v8, %v3178_v30  ;;  %v1128_v30 = vmul.f32 %v3357_v2, %v3303_v1  ;;  %v1166_v1 = vld [vmem:[#allocation8 + $0x60] sm:$0xff] }
 0x1eb   : > { %1276 = vrot.lane.b32.xlu2 %v3316_v51, %s2729_s12  ;;  %v1220_v36 = vpop.permute.xlu1 %1219  ;;  %v1144_v42 = vadd.f32 %v1126_v4, %v1035_v38  ;;  %v1146_v11 = vadd.f32 %v1128_v30, %v3264_v23  ;;  %v1023_v23 = vmul.f32 %v3209_v43, %v994_v63 }
 0x1ec   : > { %v1002_v6 = vpop.permute.xlu2 %1001  ;;  %v1228_v22 = vsel %vm1227_vm4, %v1220_v36, %v1222_v47  ;;  %v1322_v47 = vpop.permute.xlu0 %1321 }
 0x1ed   : > { %v1232_v5 = vmul.f32 %v1228_v22, %v1176_v52  ;;  %v1180_v14 = vmul.f32 %v1162_v56, %v1144_v42  ;;  %v1132_v22 = vmul.f32 %v3357_v2, %v3313_v10  ;;  %v1170_v10 = vld [vmem:[#allocation8 + $0x80] sm:$0xff] }
 0x1ef   : > { %v1234_v13 = vadd.f32 %v1232_v5, %v1217_v62  ;;  %v1168_v5 = vld [vmem:[#allocation8 + $0x70] sm:$0xff] }
 0x1f1   : > { %1308 = vrot.lane.b32.xlu1 %v3235_v24, %s2730_s2 }
 0x1f3   : > { %1291 = vrot.lane.b32.xlu2 %v3235_v24, %s2724_s18  ;;  %v1237_v20 = vpop.permute.xlu1 %1236 }
 0x1f4   : > { %v1273_v12 = vpop.permute.xlu2 %1272  ;;  %v1245_v26 = vsel %vm1244_vm5, %v1237_v20, %v1239_v21  ;;  %v1130_v21 = vmul.f32 %v3357_v2, %v1095_v35  ;;  %v3400_v40 = vpop.permute.xlu0 %1206 }
 0x1f5   : > { %v1249_v48 = vmul.f32 %v1245_v26, %v1178_v27 }
 0x1f6   : > { %v1148_v33 = vadd.f32 %v1130_v21, %v3342_v29  ;;  %v1041_v29 = vadd.f32 %v1023_v23, %v3189_v45 }
 0x1f7   : > { %v1251_v16 = vadd.f32 %v1249_v48, %v1234_v13 }
 0x1f8   : > { %v1184_v35 = vmul.f32 %v1166_v1, %v1148_v33  ;;  %v1150_v18 = vadd.f32 %v1132_v22, %v1041_v29 }
 0x1f9   : > { %1327 = vrot.lane.b32.xlu1 %v3316_v51, %s2726_s19 }
 0x1fa   : > { %v1186_v63 = vmul.f32 %v1168_v5, %v1150_v18 }
 0x1fb   : > { %1310 = vrot.lane.b32.xlu2 %v3316_v51, %s2730_s2  ;;  %v1256_v53 = vpop.permute.xlu1 %1255  ;;  %v1182_v51 = vmul.f32 %v1164_v32, %v1146_v11  ;;  %v1157_v11 = vld [vmem:[#allocation8 + $0x18] sm:$0xff] }
 0x1fc   : > { %v1288_v25 = vpop.permute.xlu2 %1287  ;;  %v1262_v15 = vsel %vm1261_vm6, %v1254_v0, %v1256_v53  ;;  %v1224_v52 = vpop.permute.xlu0 %1223 }
 0x1fd   : > { %v1266_v17 = vmul.f32 %v1262_v15, %v1180_v14  ;;  %v1296_v34 = vsel %vm1295_vm7, %v1288_v25, %v1290_v31  ;;  %v1025_v31 = vmul.f32 %v3209_v43, %v1002_v6  ;;  %v1155_v15 = vld [vmem:[#allocation8 + $0x8] sm:$0xff] }
 0x1fe   : > { %v1300_v19 = vmul.f32 %v1296_v34, %v1184_v35 }
 0x1ff   : > { %v1268_v50 = vadd.f32 %v1266_v17, %v1251_v16  ;;  %v1043_v45 = vadd.f32 %v1025_v31, %v3288_v61 }
 0x203   : > { %v1271_v54 = vpop.permute.xlu1 %1270 }
 0x204   : > { %v1307_v55 = vpop.permute.xlu2 %1306  ;;  %v1279_v0 = vsel %vm1278_vm8, %v1271_v54, %v1273_v12  ;;  %v3412_v20 = vpop.permute.xlu0 %997 }
 0x205   : > { %v1283_v44 = vmul.f32 %v1279_v0, %v1182_v51 }
 0x207   : > { %v1285_v59 = vadd.f32 %v1283_v44, %v1268_v50  ;;  %v1159_v44 = vld [vmem:[#allocation8 + $0x28] sm:$0xff] }
 0x209   : > { %v1302_v62 = vadd.f32 %v1300_v19, %v1285_v59 }
 0x20b   : > { %v1111_v3 = vpop.permute.xlu1 %1110 }
 0x20c   : > { %v1051_v36 = vpop.permute.xlu2 %1050  ;;  %v1134_v39 = vmul.f32 %v3357_v2, %v1111_v3 }
 0x20d   : > { %v1059_v56 = vpop.permute.xlu0 %1058  ;;  %v1119_v30 = vmul.f32 %v3357_v2, %v1051_v36  ;;  %v1161_v36 = vld [vmem:[#allocation8 + $0x38] sm:$0xff] }
 0x20e   : > { %v1152_v27 = vadd.f32 %v1134_v39, %v1043_v45  ;;  %v1121_v61 = vmul.f32 %v3357_v2, %v1059_v56 }
 0x20f   : > { %v1137_v14 = vadd.f32 %v1119_v30, %v3299_v60 }
 0x210   : > { %v1188_v26 = vmul.f32 %v1170_v10, %v1152_v27  ;;  %v1139_v21 = vadd.f32 %v1121_v61, %v3310_v28  ;;  %v1163_v27 = vld [vmem:[#allocation8 + $0x48] sm:$0xff] }
 0x211   : > { %v1173_v32 = vmul.f32 %v1155_v15, %v1137_v14 }
 0x212   : > { %v1175_v33 = vmul.f32 %v1157_v11, %v1139_v21 }
 0x213   : > { %v1305_v8 = vpop.permute.xlu1 %1304  ;;  %v1193_v28 = vmul.f32 %v3235_v24, %v1173_v32 }
 0x214   : > { %v1075_v13 = vpop.permute.xlu2 %1074  ;;  %v1313_v9 = vsel %vm1312_vm9, %v1305_v8, %v1307_v55 }
 0x215   : > { %v1317_v38 = vmul.f32 %v1313_v9, %v1186_v63  ;;  %v1125_v23 = vmul.f32 %v3357_v2, %v1075_v13  ;;  %v1091_v8 = vpop.permute.xlu0 %1090 }
 0x217   : > { %v1319_v12 = vadd.f32 %v1317_v38, %v1302_v62  ;;  %v1143_v24 = vadd.f32 %v1125_v23, %v3249_v46 }
 0x21b   : > { %v1324_v4 = vpop.permute.xlu1 %1323 }
 0x21c   : > { %v1083_v6 = vpop.permute.xlu2 %1082  ;;  %v1330_v48 = vsel %vm1329_vm10, %v1322_v47, %v1324_v4 }
 0x21d   : > { %v1334_v42 = vmul.f32 %v1330_v48, %v1188_v26  ;;  %v1127_v46 = vmul.f32 %v3357_v2, %v1083_v6  ;;  %v1107_v10 = vpop.permute.xlu0 %1106  ;;  %v1129_v26 = vmul.f32 %v3357_v2, %v1091_v8 }
 0x21f   : > { %v3415_v16 = vadd.f32 %v1334_v42, %v1319_v12  ;;  %v1145_v45 = vadd.f32 %v1127_v46, %v3331_v7  ;;  %v1147_v7 = vadd.f32 %v1129_v26, %v3354_v49 }
 0x221   : > { %1348 = vst.sshfl [vmem:[#allocation1] sm:$0xff pattern:$0x73625140] %v3415_v16  ;;  %1440 = vrot.lane.b32.xlu2 %v3415_v16, %s2731_s24  ;;  %v1341_v47 = vrot.slane %v3415_v16, 7  ;;  %v1181_v4 = vmul.f32 %v1163_v27, %v1145_v45 }
 0x222   : > { %1339 = vst.msk [vmem:[#allocation3] sm:$0x1] %vm1338_vm11, %v3415_v16 }
 0x223   : > { %v1067_v53 = vpop.permute.xlu1 %1066  ;;  %v3427_v17 = vrot.slane %v1341_v47, 2  ;;  %v1165_v47 = vld [vmem:[#allocation8 + $0x58] sm:$0xff] }
 0x224   : > { %v1123_v1 = vmul.f32 %v3357_v2, %v1067_v53  ;;  %v1183_v32 = vmul.f32 %v1165_v47, %v1147_v7 }
 0x225   : > { %v990_v25 = vpop.permute.xlu2 %989 }
 0x226   : > { %v1141_v55 = vadd.f32 %v1123_v1, %v3339_v58  ;;  %v1179_v58 = vmul.f32 %v1161_v36, %v1143_v24  ;;  %v1022_v48 = vmul.f32 %v3209_v43, %v990_v25 }
 0x228   : > { %v1350_v50 = vld [vmem:[#allocation1 + $0x1] ss:$4 sm:$0xff]  ;;  %v1177_v19 = vmul.f32 %v1159_v44, %v1141_v55  ;;  %v1040_v61 = vadd.f32 %v1022_v48, %v3276_v37  ;;  %v1133_v55 = vmul.f32 %v3357_v2, %v1107_v10 }
 0x229   : > { %1353 = vst.sshfl [vmem:[#allocation1] sm:$0xff pattern:$0x73625140] %v3415_v16  ;;  %1343 = vrot.lane.b32.xlu2 %v3427_v17, %s2731_s24 }
 0x22a   : > { %1352 = vst.msk [vmem:[#allocation3 + $0x2] sm:$0x1] %vm1338_vm11, %v1350_v50  ;;  %v1167_v50 = vld [vmem:[#allocation8 + $0x68] sm:$0xff] }
 0x22b   : > { %v1209_v60 = vpop.permute.xlu1 %1208 }
 0x22c   : > { %v1212_v51 = vsel %vm1210_vm3, %v3400_v40, %v1209_v60 }
 0x22d   : > { %v1216_v54 = vmul.f32 %v1212_v51, %v1175_v33  ;;  %v1243_v34 = vpop.permute.xlu2 %1242  ;;  %v1294_v33 = vpop.permute.xlu0 %1293 }
 0x22f   : > { %v1218_v0 = vadd.f32 %v1216_v54, %v1193_v28  ;;  %v1024_v54 = vmul.f32 %v3209_v43, %v3412_v20 }
 0x230   : > { %v3438_v35 = vld [vmem:[#allocation1 + $0x1] ss:$4 sm:$0xff] }
 0x231   : > { %1362 = vst.sshfl [vmem:[#allocation1] sm:$0xff pattern:$0x73625140] %v3415_v16  ;;  %v1042_v44 = vadd.f32 %v1024_v54, %v3272_v41 }
 0x233   : > { %v1226_v59 = vpop.permute.xlu1 %1225  ;;  %v1151_v23 = vadd.f32 %v1133_v55, %v1042_v44 }
 0x234   : > { %v1229_v62 = vsel %vm1227_vm4, %v1224_v52, %v1226_v59 }
 0x235   : > { %v1233_v29 = vmul.f32 %v1229_v62, %v1177_v19  ;;  %v1258_v40 = vpop.permute.xlu2 %1257  ;;  %v1169_v19 = vld [vmem:[#allocation8 + $0x78] sm:$0xff] }
 0x236   : > { %v1187_v62 = vmul.f32 %v1169_v19, %v1151_v23 }
 0x237   : > { %v1235_v3 = vadd.f32 %v1233_v29, %v1218_v0 }
 0x238   : > { %v1364_v22 = vld [vmem:[#allocation1 + $0x2] ss:$4 sm:$0xff] }
 0x239   : > { %1367 = vst.sshfl [vmem:[#allocation1] sm:$0xff pattern:$0x73625140] %v3415_v16 }
 0x23a   : > { %1366 = vst.msk [vmem:[#allocation3 + $0x4] sm:$0x1] %vm1338_vm11, %v1364_v22 }
 0x23b   : > { %v1241_v18 = vpop.permute.xlu1 %1240 }
 0x23c   : > { %v1246_v5 = vsel %vm1244_vm5, %v1241_v18, %v1243_v34  ;;  %v1171_v18 = vld [vmem:[#allocation8 + $0x88] sm:$0xff] }
 0x23d   : > { %v1250_v31 = vmul.f32 %v1246_v5, %v1179_v58  ;;  %v1006_v39 = vpop.permute.xlu2 %1005  ;;  %v1326_v5 = vpop.permute.xlu0 %1325 }
 0x23e   : > { %v1026_v59 = vmul.f32 %v3209_v43, %v1006_v39  ;;  %v2217_v39 = vrot.slane %v3438_v35, 9 }
 0x23f   : > { %v1252_v63 = vadd.f32 %v1250_v31, %v1235_v3 }
 0x240   : > { %v1369_v52 = vld [vmem:[#allocation1 + $0x2] ss:$4 sm:$0xff]  ;;  %v1044_v36 = vadd.f32 %v1026_v59, %v3194_v57 }
 0x241   : > { %v2218_v13 = vrot.slane %v1369_v52, 9  ;;  %1376 = vst.sshfl [vmem:[#allocation1] sm:$0xff pattern:$0x73625140] %v3415_v16 }
 0x243   : > { %v1099_v9 = vpop.permute.xlu1 %1098  ;;  %1372 = vrot.lane.b32.xlu1 %v2218_v13, %s2731_s24 }
 0x244   : > { %v1131_v56 = vmul.f32 %v3357_v2, %v1099_v9 }
 0x245   : > { %v1277_v38 = vpop.permute.xlu2 %1276 }
 0x246   : > { %v1149_v15 = vadd.f32 %v1131_v56, %v1040_v61 }
 0x248   : > { %v1378_v12 = vld [vmem:[#allocation1 + $0x3] ss:$4 sm:$0xff]  ;;  %v1185_v51 = vmul.f32 %v1167_v50, %v1149_v15 }
 0x249   : > { %1381 = vst.sshfl [vmem:[#allocation1] sm:$0xff pattern:$0x73625140] %v3415_v16 }
 0x24a   : > { %1380 = vst.msk [vmem:[#allocation3 + $0x6] sm:$0x1] %vm1338_vm11, %v1378_v12 }
 0x24b   : > { %v1260_v42 = vpop.permute.xlu1 %1259 }
 0x24c   : > { %v1263_v6 = vsel %vm1261_vm6, %v1258_v40, %v1260_v42 }
 0x24d   : > { %v1267_v30 = vmul.f32 %v1263_v6, %v1181_v4  ;;  %v1292_v21 = vpop.permute.xlu2 %1291 }
 0x24e   : > { %v1297_v1 = vsel %vm1295_vm7, %v1292_v21, %v1294_v33 }
 0x24f   : > { %v1269_v53 = vadd.f32 %v1267_v30, %v1252_v63  ;;  %v1301_v28 = vmul.f32 %v1297_v1, %v1185_v51 }
 0x250   : > { %v1383_v14 = vld [vmem:[#allocation1 + $0x3] ss:$4 sm:$0xff] }
 0x251   : > { %v2219_v11 = vrot.slane %v1383_v14, 9 }
 0x253   : > { %v1275_v25 = vpop.permute.xlu1 %1274  ;;  %1386 = vrot.lane.b32.xlu1 %v2219_v11, %s2731_s24 }
 0x254   : > { %v1280_v60 = vsel %vm1278_vm8, %v1275_v25, %v1277_v38 }
 0x255   : > { %v1284_v49 = vmul.f32 %v1280_v60, %v1183_v32  ;;  %v1311_v29 = vpop.permute.xlu2 %1310 }
 0x257   : > { %v1286_v37 = vadd.f32 %v1284_v49, %v1269_v53 }
 0x259   : > { %v1303_v34 = vadd.f32 %v1301_v28, %v1286_v37 }
 0x25b   : > { %v1115_v0 = vpop.permute.xlu1 %1114 }
 0x25c   : > { %v1135_v40 = vmul.f32 %v3357_v2, %v1115_v0 }
 0x25e   : > { %v1153_v22 = vadd.f32 %v1135_v40, %v1044_v36 }
 0x260   : > { %v1189_v31 = vmul.f32 %v1171_v18, %v1153_v22 }
 0x263   : > { %v1309_v24 = vpop.permute.xlu1 %1308 }
 0x264   : > { %v1314_v3 = vsel %vm1312_vm9, %v1309_v24, %v1311_v29 }
 0x265   : > { %v1318_v20 = vmul.f32 %v1314_v3, %v1187_v62 }
 0x267   : > { %v1320_v58 = vadd.f32 %v1318_v20, %v1303_v34  ;;  %v1536_v34 = vld [vmem:[#allocation11] sm:$0xf] }
 0x268   : > { %v1539_v55 = vperm.slane %v1536_v34, 1  ;;  %v1540_v0 = vperm.slane %v1536_v34, 2  ;;  %v1541_v44 = vperm.slane %v1536_v34, 3  ;;  %v1538_v23 = vperm.slane %v1536_v34, 0 }
 0x26a   : > { %v1542_v19 = vrot.slane %v1539_v55, 6  ;;  %v1543_v59 = vrot.slane %v1540_v0, 4  ;;  %v1544_v62 = vrot.slane %v1541_v44, 2 }
 0x26b   : > { %v1328_v41 = vpop.permute.xlu1 %1327 }
 0x26c   : > { %v1331_v8 = vsel %vm1329_vm10, %v1326_v5, %v1328_v41  ;;  %v1546_v40 = vsel %vm1545_vm13, %v1538_v23, %v1542_v19  ;;  %v1548_v24 = vsel %vm1547_vm14, %v1543_v59, %v1544_v62 }
 0x26d   : > { %v1335_v63 = vmul.f32 %v1331_v8, %v1189_v31  ;;  %v1550_v3 = vsel %vm1549_vm15, %v1546_v40, %v1548_v24 }
 0x26e   : > { %1552 = vst [vmem:[#allocation4] sm:$0xff] %v1550_v3 }
 0x26f   : > { %v3471_v43 = vadd.f32 %v1335_v63, %v1320_v58 }
 0x271   : > { %1398 = vst.sshfl [vmem:[#allocation1] sm:$0xff pattern:$0x73625140] %v3471_v43  ;;  %1488 = vrot.lane.b32.xlu0 %v3471_v43, %s2731_s24  ;;  %v1392_v2 = vrot.slane %v3471_v43, 7 }
 0x272   : > { %1390 = vst.msk [vmem:[#allocation3 + $0x8] sm:$0x1] %vm1338_vm11, %v3471_v43 }
 0x273   : > { %v1393_v57 = vrot.slane %v1392_v2, 2 }
 0x275   : > { %1394 = vrot.lane.b32.xlu2 %v1393_v57, %s2731_s24 }
 0x278   : > { %v1400_v52 = vld [vmem:[#allocation1 + $0x1] ss:$4 sm:$0xff] }
 0x279   : > { %1403 = vst.sshfl [vmem:[#allocation1] sm:$0xff pattern:$0x73625140] %v3471_v43  ;;  %1358 = vrot.lane.b32.xlu0 %v2217_v39, %s2731_s24 }
 0x27a   : > { %1402 = vst.msk [vmem:[#allocation3 + $0xa] sm:$0x1] %vm1338_vm11, %v1400_v52 }
 0x27b   : > { %v1441_v13 = vpop.permute.xlu2 %1440 }
 0x27c   : > { %1443 = vst.msk [vmem:[#allocation3 + $0x1] sm:$0x1] %vm1338_vm11, %v1441_v13 }
 0x27d   : > { %1445 = vst.msk [vmem:[#allocation3 + $0x1] sm:$0x1] %vm1346_vm12, %v3427_v17 }
 0x280   : > { %v1405_v46 = vld [vmem:[#allocation1 + $0x1] ss:$4 sm:$0xff] }
 0x281   : > { %1412 = vst.sshfl [vmem:[#allocation1] sm:$0xff pattern:$0x73625140] %v3471_v43  ;;  %v2220_v11 = vrot.slane %v1405_v46, 9 }
 0x283   : > { %v1344_v9 = vpop.permute.xlu2 %1343 }
 0x284   : > { %1347 = vst.msk [vmem:[#allocation3] sm:$0x1] %vm1346_vm12, %v1344_v9 }
 0x288   : > { %v1414_v35 = vld [vmem:[#allocation1 + $0x2] ss:$4 sm:$0xff] }
 0x289   : > { %1417 = vst.sshfl [vmem:[#allocation1] sm:$0xff pattern:$0x73625140] %v3471_v43 }
 0x28a   : > { %1416 = vst.msk [vmem:[#allocation3 + $0xc] sm:$0x1] %vm1338_vm11, %v1414_v35 }
 0x290   : > { %v1419_v45 = vld [vmem:[#allocation1 + $0x2] ss:$4 sm:$0xff] }
 0x291   : > { %1426 = vst.sshfl [vmem:[#allocation1] sm:$0xff pattern:$0x73625140] %v3471_v43  ;;  %v2221_v7 = vrot.slane %v1419_v45, 9 }
 0x298   : > { %v1428_v38 = vld [vmem:[#allocation1 + $0x3] ss:$4 sm:$0xff] }
 0x299   : > { %1431 = vst.sshfl [vmem:[#allocation1] sm:$0xff pattern:$0x73625140] %v3471_v43 }
 0x29a   : > { %1430 = vst.msk [vmem:[#allocation3 + $0xe] sm:$0x1] %vm1338_vm11, %v1428_v38 }
 0x2a0   : > { %v1433_v17 = vld [vmem:[#allocation1 + $0x3] ss:$4 sm:$0xff] }
 0x2a1   : > { %1446 = vst.sshfl [vmem:[#allocation1] sm:$0xff pattern:$0x73625140] %v3415_v16  ;;  %v2222_v14 = vrot.slane %v1433_v17, 9 }
 0x2a8   : > { %v1448_v27 = vld [vmem:[#allocation1 + $0x1] ss:$4 sm:$0xff] }
 0x2a9   : > { %1449 = vrot.lane.b32.xlu0 %v1448_v27, %s2731_s24  ;;  %1453 = vst.sshfl [vmem:[#allocation1] sm:$0xff pattern:$0x73625140] %v3415_v16 }
 0x2b0   : > { %v1455_v12 = vld [vmem:[#allocation1 + $0x1] ss:$4 sm:$0xff] }
 0x2b1   : > { %1460 = vst.sshfl [vmem:[#allocation1] sm:$0xff pattern:$0x73625140] %v3415_v16  ;;  %v2223_v32 = vrot.slane %v1455_v12, 9 }
 0x2b5   : > { %v1373_v10 = vpop.permute.xlu1 %1372 }
 0x2b6   : > { %1375 = vst.msk [vmem:[#allocation3 + $0x4] sm:$0x1] %vm1346_vm12, %v1373_v10 }
 0x2b8   : > { %v1462_v26 = vld [vmem:[#allocation1 + $0x2] ss:$4 sm:$0xff] }
 0x2b9   : > { %1463 = vrot.lane.b32.xlu1 %v1462_v26, %s2731_s24  ;;  %1467 = vst.sshfl [vmem:[#allocation1] sm:$0xff pattern:$0x73625140] %v3415_v16 }
 0x2c0   : > { %v1469_v4 = vld [vmem:[#allocation1 + $0x2] ss:$4 sm:$0xff] }
 0x2c1   : > { %1474 = vst.sshfl [vmem:[#allocation1] sm:$0xff pattern:$0x73625140] %v3415_v16  ;;  %v2224_v60 = vrot.slane %v1469_v4, 9 }
 0x2c5   : > { %v1387_v48 = vpop.permute.xlu1 %1386 }
 0x2c6   : > { %1389 = vst.msk [vmem:[#allocation3 + $0x6] sm:$0x1] %vm1346_vm12, %v1387_v48 }
 0x2c8   : > { %v1476_v42 = vld [vmem:[#allocation1 + $0x3] ss:$4 sm:$0xff] }
 0x2c9   : > { %1481 = vst.sshfl [vmem:[#allocation1] sm:$0xff pattern:$0x73625140] %v3415_v16  ;;  %1477 = vrot.lane.b32.xlu2 %v1476_v42, %s2731_s24 }
 0x2cf   : > { %v1395_v6 = vpop.permute.xlu2 %1394 }
 0x2d0   : > { %v1483_v56 = vld [vmem:[#allocation1 + $0x3] ss:$4 sm:$0xff]  ;;  %1397 = vst.msk [vmem:[#allocation3 + $0x8] sm:$0x1] %vm1346_vm12, %v1395_v6 }
 0x2d1   : > { %1494 = vst.sshfl [vmem:[#allocation1] sm:$0xff pattern:$0x73625140] %v3471_v43  ;;  %v2225_v33 = vrot.slane %v1483_v56, 9 }
 0x2d8   : > { %v1496_v30 = vld [vmem:[#allocation1 + $0x1] ss:$4 sm:$0xff] }
 0x2d9   : > { %1497 = vrot.lane.b32.xlu1 %v1496_v30, %s2731_s24  ;;  %1501 = vst.sshfl [vmem:[#allocation1] sm:$0xff pattern:$0x73625140] %v3471_v43 }
 0x2e0   : > { %v1503_v61 = vld [vmem:[#allocation1 + $0x1] ss:$4 sm:$0xff] }
 0x2e1   : > { %1508 = vst.sshfl [vmem:[#allocation1] sm:$0xff pattern:$0x73625140] %v3471_v43  ;;  %1422 = vrot.lane.b32.xlu1 %v2221_v7, %s2731_s24  ;;  %v2226_v37 = vrot.slane %v1503_v61, 9 }
 0x2e3   : > { %v1489_v16 = vpop.permute.xlu0 %1488 }
 0x2e4   : > { %1491 = vst.msk [vmem:[#allocation3 + $0x9] sm:$0x1] %vm1338_vm11, %v1489_v16 }
 0x2e5   : > { %1493 = vst.msk [vmem:[#allocation3 + $0x9] sm:$0x1] %vm1346_vm12, %v1393_v57 }
 0x2e8   : > { %v1510_v53 = vld [vmem:[#allocation1 + $0x2] ss:$4 sm:$0xff] }
 0x2e9   : > { %1515 = vst.sshfl [vmem:[#allocation1] sm:$0xff pattern:$0x73625140] %v3471_v43  ;;  %1511 = vrot.lane.b32.xlu2 %v1510_v53, %s2731_s24 }
 0x2eb   : > { %v1359_v47 = vpop.permute.xlu0 %1358 }
 0x2ec   : > { %1361 = vst.msk [vmem:[#allocation3 + $0x2] sm:$0x1] %vm1346_vm12, %v1359_v47 }
 0x2f0   : > { %v1517_v15 = vld [vmem:[#allocation1 + $0x2] ss:$4 sm:$0xff] }
 0x2f1   : > { %1522 = vst.sshfl [vmem:[#allocation1] sm:$0xff pattern:$0x73625140] %v3471_v43  ;;  %1436 = vrot.lane.b32.xlu2 %v2222_v14, %s2731_s24  ;;  %v2227_v51 = vrot.slane %v1517_v15, 9 }
 0x2f8   : > { %v1524_v21 = vld [vmem:[#allocation1 + $0x3] ss:$4 sm:$0xff] }
 0x2f9   : > { %1525 = vrot.lane.b32.xlu0 %v1524_v21, %s2731_s24  ;;  %1529 = vst.sshfl [vmem:[#allocation1] sm:$0xff pattern:$0x73625140] %v3471_v43 }
 0x300   : > { %v1531_v36 = vld [vmem:[#allocation1 + $0x3] ss:$4 sm:$0xff] }
 0x301   : > { %1408 = vrot.lane.b32.xlu0 %v2220_v11, %s2731_s24  ;;  %v2228_v22 = vrot.slane %v1531_v36, 9 }
 0x31b   : > { %v1450_v50 = vpop.permute.xlu0 %1449 }
 0x31c   : > { %1452 = vst.msk [vmem:[#allocation3 + $0x3] sm:$0x1] %vm1338_vm11, %v1450_v50 }
 0x31d   : > { %1459 = vst.msk [vmem:[#allocation3 + $0x3] sm:$0x1] %vm1346_vm12, %v2223_v32 }
 0x323   : > { %v1478_v25 = vpop.permute.xlu2 %1477 }
 0x324   : > { %1480 = vst.msk [vmem:[#allocation3 + $0x7] sm:$0x1] %vm1338_vm11, %v1478_v25 }
 0x325   : > { %1487 = vst.msk [vmem:[#allocation3 + $0x7] sm:$0x1] %vm1346_vm12, %v2225_v33 }
 0x32b   : > { %v1464_v1 = vpop.permute.xlu1 %1463 }
 0x32c   : > { %1466 = vst.msk [vmem:[#allocation3 + $0x5] sm:$0x1] %vm1338_vm11, %v1464_v1 }
 0x32d   : > { %1473 = vst.msk [vmem:[#allocation3 + $0x5] sm:$0x1] %vm1346_vm12, %v2224_v60 }
 0x343   : > { %v1512_v49 = vpop.permute.xlu2 %1511 }
 0x344   : > { %1514 = vst.msk [vmem:[#allocation3 + $0xd] sm:$0x1] %vm1338_vm11, %v1512_v49 }
 0x345   : > { %1521 = vst.msk [vmem:[#allocation3 + $0xd] sm:$0x1] %vm1346_vm12, %v2227_v51 }
 0x34b   : > { %v1498_v28 = vpop.permute.xlu1 %1497  ;;  %v1437_v54 = vpop.permute.xlu2 %1436 }
 0x34c   : > { %1500 = vst.msk [vmem:[#allocation3 + $0xb] sm:$0x1] %vm1338_vm11, %v1498_v28 }
 0x34d   : > { %1507 = vst.msk [vmem:[#allocation3 + $0xb] sm:$0x1] %vm1346_vm12, %v2226_v37 }
 0x34e   : > { %1439 = vst.msk [vmem:[#allocation3 + $0xe] sm:$0x1] %vm1346_vm12, %v1437_v54 }
 0x353   : > { %v1423_v29 = vpop.permute.xlu1 %1422 }
 0x354   : > { %1425 = vst.msk [vmem:[#allocation3 + $0xc] sm:$0x1] %vm1346_vm12, %v1423_v29 }
 0x36b   : > { %v1526_v20 = vpop.permute.xlu0 %1525 }
 0x36c   : > { %1528 = vst.msk [vmem:[#allocation3 + $0xf] sm:$0x1] %vm1338_vm11, %v1526_v20 }
 0x36d   : > { %1535 = vst.msk [vmem:[#allocation3 + $0xf] sm:$0x1] %vm1346_vm12, %v2228_v22 }
 0x373   : > { %v1409_v58 = vpop.permute.xlu0 %1408 }
 0x374   : > { %1411 = vst.msk [vmem:[#allocation3 + $0xa] sm:$0x1] %vm1346_vm12, %v1409_v58 }
 0x375 PF: > { %v1621_v18 = vld [vmem:[%s2922_s14 + $0x1e8] sm:$0xff]  ;;  %v1620_v43 = vld [vmem:[%s2922_s14 + $0x1e0] sm:$0xff]  ;;  %s2229_s17 = sshll.u32 %s2822_s28, 8  ;;  %v1623_v36 = vld [vmem:[%s2922_s14 + $0x1f8] sm:$0xff]  ;;  %vm1861_vm0 = vcmask 1041408   ;;  %vm1863_vm1 = vcmask 1045508  }
 0x376   : > { %v1685_v5 = vld [vmem:[%s2922_s14 + $0x3e8] sm:$0xff]  ;;  %1734 = vmatpush.msra.mxu2 %v1621_v18  ;;  %v1684_v2 = vld [vmem:[%s2922_s14 + $0x3e0] sm:$0xff]  ;;  %1694 = vmatpush.msra.mxu0 %v1620_v43  ;;  %s3591_s20 = sshra.s32 %s2229_s17, 7  ;;  %v1687_v20 = vld [vmem:[%s2922_s14 + $0x3f8] sm:$0xff]  ;;  %vm1865_vm2 = vcmask 1043456   ;;  %p2231_p1 = scmp.ne.s32.totalorder %s2822_s28, 3 }
 0x377   : > { %v1617_v31 = vld [vmem:[%s2922_s14 + $0x1c8] sm:$0xff]  ;;  %1754 = vmatpush.msra.mxu3 %v1685_v5  ;;  %v1616_v57 = vld [vmem:[%s2922_s14 + $0x1c0] sm:$0xff]  ;;  %1714 = vmatpush.msra.mxu1 %v1684_v2  ;;  %s2230_s25 = sshll.u32 %s3591_s20, 1  ;;  %v1619_v18 = vld [vmem:[%s2922_s14 + $0x1d8] sm:$0xff] }
 0x378   : > { %v1681_v41 = vld [vmem:[%s2922_s14 + $0x3c8] sm:$0xff]  ;;  %1735 = vmatpush.msra.mxu2 %v1617_v31  ;;  %v1680_v39 = vld [vmem:[%s2922_s14 + $0x3c0] sm:$0xff]  ;;  %1695 = vmatpush.msra.mxu0 %v1616_v57  ;;  %v1683_v5 = vld [vmem:[%s2922_s14 + $0x3d8] sm:$0xff]  ;;  %s1557_s30 = scalar_lea.vmem [#allocation3], %s2230_s25 }
 0x379   : > { %v1613_v8 = vld [vmem:[%s2922_s14 + $0x1a8] sm:$0xff]  ;;  %1755 = vmatpush.msra.mxu3 %v1681_v41  ;;  %v1612_v46 = vld [vmem:[%s2922_s14 + $0x1a0] sm:$0xff]  ;;  %1715 = vmatpush.msra.mxu1 %v1680_v39  ;;  %v1622_v43 = vld [vmem:[%s2922_s14 + $0x1f0] sm:$0xff] }
 0x37a   : > { %v1677_v63 = vld [vmem:[%s2922_s14 + $0x3a8] sm:$0xff]  ;;  %1736 = vmatpush.msra.mxu2 %v1613_v8  ;;  %v1676_v9 = vld [vmem:[%s2922_s14 + $0x3a0] sm:$0xff]  ;;  %1696 = vmatpush.msra.mxu0 %v1612_v46  ;;  %v1615_v8 = vld [vmem:[%s2922_s14 + $0x1b8] sm:$0xff] }
 0x37b   : > { %v1609_v52 = vld [vmem:[%s2922_s14 + $0x188] sm:$0xff]  ;;  %1756 = vmatpush.msra.mxu3 %v1677_v63  ;;  %v1608_v38 = vld [vmem:[%s2922_s14 + $0x180] sm:$0xff]  ;;  %1716 = vmatpush.msra.mxu1 %v1676_v9  ;;  %v1679_v63 = vld [vmem:[%s2922_s14 + $0x3b8] sm:$0xff] }
 0x37c   : > { %v1673_v13 = vld [vmem:[%s2922_s14 + $0x388] sm:$0xff]  ;;  %1737 = vmatpush.msra.mxu2 %v1609_v52  ;;  %v1672_v17 = vld [vmem:[%s2922_s14 + $0x380] sm:$0xff]  ;;  %1697 = vmatpush.msra.mxu0 %v1608_v38  ;;  %v1686_v2 = vld [vmem:[%s2922_s14 + $0x3f0] sm:$0xff] }
 0x37d   : > { %v1605_v35 = vld [vmem:[%s2922_s14 + $0x168] sm:$0xff]  ;;  %1757 = vmatpush.msra.mxu3 %v1673_v13  ;;  %v1604_v10 = vld [vmem:[%s2922_s14 + $0x160] sm:$0xff]  ;;  %1717 = vmatpush.msra.mxu1 %v1672_v17  ;;  %v1611_v39 = vld [vmem:[%s2922_s14 + $0x198] sm:$0xff] }
 0x37e   : > { %v1669_v45 = vld [vmem:[%s2922_s14 + $0x368] sm:$0xff]  ;;  %1738 = vmatpush.msra.mxu2 %v1605_v35  ;;  %v1668_v26 = vld [vmem:[%s2922_s14 + $0x360] sm:$0xff]  ;;  %1698 = vmatpush.msra.mxu0 %v1604_v10  ;;  %v1675_v52 = vld [vmem:[%s2922_s14 + $0x398] sm:$0xff] }
 0x37f   : > { %v1601_v27 = vld [vmem:[%s2922_s14 + $0x148] sm:$0xff]  ;;  %1758 = vmatpush.msra.mxu3 %v1669_v45  ;;  %v1600_v42 = vld [vmem:[%s2922_s14 + $0x140] sm:$0xff]  ;;  %1718 = vmatpush.msra.mxu1 %v1668_v26  ;;  %v1618_v13 = vld [vmem:[%s2922_s14 + $0x1d0] sm:$0xff] }
 0x380   : > { %v1665_v12 = vld [vmem:[%s2922_s14 + $0x348] sm:$0xff]  ;;  %1739 = vmatpush.msra.mxu2 %v1601_v27  ;;  %v1664_v6 = vld [vmem:[%s2922_s14 + $0x340] sm:$0xff]  ;;  %1699 = vmatpush.msra.mxu0 %v1600_v42  ;;  %v1682_v46 = vld [vmem:[%s2922_s14 + $0x3d0] sm:$0xff] }
 0x381   : > { %v1597_v4 = vld [vmem:[%s2922_s14 + $0x128] sm:$0xff]  ;;  %1759 = vmatpush.msra.mxu3 %v1665_v12  ;;  %v1596_v7 = vld [vmem:[%s2922_s14 + $0x120] sm:$0xff]  ;;  %1719 = vmatpush.msra.mxu1 %v1664_v6  ;;  %v1607_v9 = vld [vmem:[%s2922_s14 + $0x178] sm:$0xff] }
 0x382   : > { %v1661_v48 = vld [vmem:[%s2922_s14 + $0x328] sm:$0xff]  ;;  %1740 = vmatpush.msra.mxu2 %v1597_v4  ;;  %v1660_v61 = vld [vmem:[%s2922_s14 + $0x320] sm:$0xff]  ;;  %1700 = vmatpush.msra.mxu0 %v1596_v7  ;;  %v1671_v35 = vld [vmem:[%s2922_s14 + $0x378] sm:$0xff] }
 0x383   : > { %v1593_v56 = vld [vmem:[%s2922_s14 + $0x108] sm:$0xff]  ;;  %1760 = vmatpush.msra.mxu3 %v1661_v48  ;;  %v1592_v47 = vld [vmem:[%s2922_s14 + $0x100] sm:$0xff]  ;;  %1720 = vmatpush.msra.mxu1 %v1660_v61  ;;  %v1614_v45 = vld [vmem:[%s2922_s14 + $0x1b0] sm:$0xff] }
 0x384   : > { %v1657_v30 = vld [vmem:[%s2922_s14 + $0x308] sm:$0xff]  ;;  %1741 = vmatpush.msra.mxu2 %v1593_v56  ;;  %v1656_v14 = vld [vmem:[%s2922_s14 + $0x300] sm:$0xff]  ;;  %1701 = vmatpush.msra.mxu0 %v1592_v47  ;;  %v1678_v38 = vld [vmem:[%s2922_s14 + $0x3b0] sm:$0xff] }
 0x385   : > { %v1589_v16 = vld [vmem:[%s2922_s14 + $0xe8] sm:$0xff]  ;;  %1761 = vmatpush.msra.mxu3 %v1657_v30  ;;  %v1588_v11 = vld [vmem:[%s2922_s14 + $0xe0] sm:$0xff]  ;;  %1721 = vmatpush.msra.mxu1 %v1656_v14  ;;  %v1603_v17 = vld [vmem:[%s2922_s14 + $0x158] sm:$0xff] }
 0x386   : > { %v1653_v53 = vld [vmem:[%s2922_s14 + $0x2e8] sm:$0xff]  ;;  %1742 = vmatpush.msra.mxu2 %v1589_v16  ;;  %v1652_v50 = vld [vmem:[%s2922_s14 + $0x2e0] sm:$0xff]  ;;  %1702 = vmatpush.msra.mxu0 %v1588_v11  ;;  %v1667_v27 = vld [vmem:[%s2922_s14 + $0x358] sm:$0xff] }
 0x387   : > { %v1585_v15 = vld [vmem:[%s2922_s14 + $0xc8] sm:$0xff]  ;;  %1762 = vmatpush.msra.mxu3 %v1653_v53  ;;  %v1584_v25 = vld [vmem:[%s2922_s14 + $0xc0] sm:$0xff]  ;;  %1722 = vmatpush.msra.mxu1 %v1652_v50  ;;  %v1610_v12 = vld [vmem:[%s2922_s14 + $0x190] sm:$0xff] }
 0x388   : > { %v1649_v21 = vld [vmem:[%s2922_s14 + $0x2c8] sm:$0xff]  ;;  %1743 = vmatpush.msra.mxu2 %v1585_v15  ;;  %v1648_v1 = vld [vmem:[%s2922_s14 + $0x2c0] sm:$0xff]  ;;  %1703 = vmatpush.msra.mxu0 %v1584_v25  ;;  %v1674_v10 = vld [vmem:[%s2922_s14 + $0x390] sm:$0xff] }
 0x389   : > { %v1581_v32 = vld [vmem:[%s2922_s14 + $0xa8] sm:$0xff]  ;;  %1763 = vmatpush.msra.mxu3 %v1649_v21  ;;  %v1580_v49 = vld [vmem:[%s2922_s14 + $0xa0] sm:$0xff]  ;;  %1723 = vmatpush.msra.mxu1 %v1648_v1  ;;  %v1599_v26 = vld [vmem:[%s2922_s14 + $0x138] sm:$0xff] }
 0x38a   : > { %v1645_v33 = vld [vmem:[%s2922_s14 + $0x2a8] sm:$0xff]  ;;  %1744 = vmatpush.msra.mxu2 %v1581_v32  ;;  %v1644_v28 = vld [vmem:[%s2922_s14 + $0x2a0] sm:$0xff]  ;;  %1704 = vmatpush.msra.mxu0 %v1580_v49  ;;  %v1663_v4 = vld [vmem:[%s2922_s14 + $0x338] sm:$0xff] }
 0x38b   : > { %v1577_v60 = vld [vmem:[%s2922_s14 + $0x88] sm:$0xff]  ;;  %1764 = vmatpush.msra.mxu3 %v1645_v33  ;;  %v1576_v34 = vld [vmem:[%s2922_s14 + $0x80] sm:$0xff]  ;;  %1724 = vmatpush.msra.mxu1 %v1644_v28  ;;  %v1606_v48 = vld [vmem:[%s2922_s14 + $0x170] sm:$0xff] }
 0x38c   : > { %v1641_v51 = vld [vmem:[%s2922_s14 + $0x288] sm:$0xff]  ;;  %1745 = vmatpush.msra.mxu2 %v1577_v60  ;;  %v1640_v55 = vld [vmem:[%s2922_s14 + $0x280] sm:$0xff]  ;;  %1705 = vmatpush.msra.mxu0 %v1576_v34  ;;  %v1670_v42 = vld [vmem:[%s2922_s14 + $0x370] sm:$0xff] }
 0x38d   : > { %v1573_v37 = vld [vmem:[%s2922_s14 + $0x68] sm:$0xff]  ;;  %1765 = vmatpush.msra.mxu3 %v1641_v51  ;;  %v1572_v23 = vld [vmem:[%s2922_s14 + $0x60] sm:$0xff]  ;;  %1725 = vmatpush.msra.mxu1 %v1640_v55  ;;  %v1595_v6 = vld [vmem:[%s2922_s14 + $0x118] sm:$0xff] }
 0x38e   : > { %v1637_v54 = vld [vmem:[%s2922_s14 + $0x268] sm:$0xff]  ;;  %1746 = vmatpush.msra.mxu2 %v1573_v37  ;;  %v1636_v19 = vld [vmem:[%s2922_s14 + $0x260] sm:$0xff]  ;;  %1706 = vmatpush.msra.mxu0 %v1572_v23  ;;  %v1659_v56 = vld [vmem:[%s2922_s14 + $0x318] sm:$0xff] }
 0x38f   : > { %v1569_v0 = vld [vmem:[%s2922_s14 + $0x48] sm:$0xff]  ;;  %1766 = vmatpush.msra.mxu3 %v1637_v54  ;;  %v1568_v29 = vld [vmem:[%s2922_s14 + $0x40] sm:$0xff]  ;;  %1726 = vmatpush.msra.mxu1 %v1636_v19  ;;  %v1602_v30 = vld [vmem:[%s2922_s14 + $0x150] sm:$0xff] }
 0x390   : > { %v1633_v44 = vld [vmem:[%s2922_s14 + $0x248] sm:$0xff]  ;;  %1747 = vmatpush.msra.mxu2 %v1569_v0  ;;  %v1632_v40 = vld [vmem:[%s2922_s14 + $0x240] sm:$0xff]  ;;  %1707 = vmatpush.msra.mxu0 %v1568_v29  ;;  %v1666_v7 = vld [vmem:[%s2922_s14 + $0x350] sm:$0xff] }
 0x391   : > { %v1565_v59 = vld [vmem:[%s2922_s14 + $0x28] sm:$0xff]  ;;  %1767 = vmatpush.msra.mxu3 %v1633_v44  ;;  %1727 = vmatpush.msra.mxu1 %v1632_v40  ;;  %v1564_v22 = vld [vmem:[%s2922_s14 + $0x20] sm:$0xff]  ;;  %v1591_v61 = vld [vmem:[%s2922_s14 + $0xf8] sm:$0xff] }
 0x392   : > { %v1629_v62 = vld [vmem:[%s2922_s14 + $0x228] sm:$0xff]  ;;  %1748 = vmatpush.msra.mxu2 %v1565_v59  ;;  %v1628_v58 = vld [vmem:[%s2922_s14 + $0x220] sm:$0xff]  ;;  %1708 = vmatpush.msra.mxu0 %v1564_v22  ;;  %v1655_v16 = vld [vmem:[%s2922_s14 + $0x2f8] sm:$0xff] }
 0x393   : > { %v1561_v24 = vld [vmem:[%s2922_s14 + $0x8] sm:$0xff]  ;;  %1768 = vmatpush.msra.mxu3 %v1629_v62  ;;  %v1560_v31 = vld [vmem:[%s2922_s14] sm:$0xff]  ;;  %1728 = vmatpush.msra.mxu1 %v1628_v58  ;;  %v1598_v53 = vld [vmem:[%s2922_s14 + $0x130] sm:$0xff] }
 0x394   : > { %v1625_v3 = vld [vmem:[%s2922_s14 + $0x208] sm:$0xff]  ;;  %1749 = vmatpush.msra.mxu2 %v1561_v24  ;;  %v1624_v41 = vld [vmem:[%s2922_s14 + $0x200] sm:$0xff]  ;;  %1709 = vmatpush.msra.mxu0 %v1560_v31  ;;  %v1662_v47 = vld [vmem:[%s2922_s14 + $0x330] sm:$0xff] }
 0x395   : > { %1769 = vmatpush.msra.mxu3 %v1625_v3  ;;  %v1558_v57 = vld [vmem:[%s1557_s30] sm:$0xf]  ;;  %1729 = vmatpush.msra.mxu1 %v1624_v41  ;;  %v1587_v14 = vld [vmem:[%s2922_s14 + $0xd8] sm:$0xff]  ;;  %v1594_v21 = vld [vmem:[%s2922_s14 + $0x110] sm:$0xff] }
 0x396   : > { %1814 = vmatpush.msrb.mxu2 %v1623_v36  ;;  %1689 = vst [vmem:[#allocation1] ss:$4 sm:$0xff] %v1558_v57  ;;  %1774 = vmatpush.msrb.mxu0 %v1622_v43  ;;  %v1651_v15 = vld [vmem:[%s2922_s14 + $0x2d8] sm:$0xff]  ;;  %v1658_v11 = vld [vmem:[%s2922_s14 + $0x310] sm:$0xff] }
 0x397   : > { %1834 = vmatpush.msrb.mxu3 %v1687_v20  ;;  %1794 = vmatpush.msrb.mxu1 %v1686_v2  ;;  %v1583_v50 = vld [vmem:[%s2922_s14 + $0xb8] sm:$0xff]  ;;  %v1590_v1 = vld [vmem:[%s2922_s14 + $0xf0] sm:$0xff] }
 0x398   : > { %1815 = vmatpush.msrb.mxu2 %v1619_v18  ;;  %1775 = vmatpush.msrb.mxu0 %v1618_v13  ;;  %v1647_v32 = vld [vmem:[%s2922_s14 + $0x2b8] sm:$0xff]  ;;  %v1654_v60 = vld [vmem:[%s2922_s14 + $0x2f0] sm:$0xff] }
 0x399   : > { %1835 = vmatpush.msrb.mxu3 %v1683_v5  ;;  %1795 = vmatpush.msrb.mxu1 %v1682_v46  ;;  %v1579_v51 = vld [vmem:[%s2922_s14 + $0x98] sm:$0xff]  ;;  %v1586_v28 = vld [vmem:[%s2922_s14 + $0xd0] sm:$0xff] }
 0x39a   : > { %1816 = vmatpush.msrb.mxu2 %v1615_v8  ;;  %1776 = vmatpush.msrb.mxu0 %v1614_v45  ;;  %v1643_v49 = vld [vmem:[%s2922_s14 + $0x298] sm:$0xff]  ;;  %v1650_v37 = vld [vmem:[%s2922_s14 + $0x2d0] sm:$0xff] }
 0x39b   : > { %1836 = vmatpush.msrb.mxu3 %v1679_v63  ;;  %1796 = vmatpush.msrb.mxu1 %v1678_v38  ;;  %v1575_v54 = vld [vmem:[%s2922_s14 + $0x78] sm:$0xff]  ;;  %v1582_v55 = vld [vmem:[%s2922_s14 + $0xb0] sm:$0xff] }
 0x39c   : > { %1817 = vmatpush.msrb.mxu2 %v1611_v39  ;;  %1777 = vmatpush.msrb.mxu0 %v1610_v12  ;;  %v1639_v34 = vld [vmem:[%s2922_s14 + $0x278] sm:$0xff]  ;;  %v1646_v0 = vld [vmem:[%s2922_s14 + $0x2b0] sm:$0xff] }
 0x39d   : > { %1837 = vmatpush.msrb.mxu3 %v1675_v52  ;;  %1797 = vmatpush.msrb.mxu1 %v1674_v10  ;;  %v3642_v33 = vld.sshfl [vmem:[#allocation1] sm:$0xff pattern:$0x73625140]  ;;  %v3644_v25 = vld.sshfl [vmem:[#allocation1 + $0x8] sm:$0xff pattern:$0x73625140] }
 0x39e   : > { %1818 = vmatpush.msrb.mxu2 %v1607_v9  ;;  %1778 = vmatpush.msrb.mxu0 %v1606_v48  ;;  %v1571_v44 = vld [vmem:[%s2922_s14 + $0x58] sm:$0xff]  ;;  %v1578_v19 = vld [vmem:[%s2922_s14 + $0x90] sm:$0xff] }
 0x39f   : > { %1838 = vmatpush.msrb.mxu3 %v1671_v35  ;;  %1798 = vmatpush.msrb.mxu1 %v1670_v42  ;;  %v1635_v23 = vld [vmem:[%s2922_s14 + $0x258] sm:$0xff]  ;;  %v1642_v59 = vld [vmem:[%s2922_s14 + $0x290] sm:$0xff] }
 0x3a0   : > { %1819 = vmatpush.msrb.mxu2 %v1603_v17  ;;  %1779 = vmatpush.msrb.mxu0 %v1602_v30  ;;  %v1567_v62 = vld [vmem:[%s2922_s14 + $0x38] sm:$0xff]  ;;  %v1574_v40 = vld [vmem:[%s2922_s14 + $0x70] sm:$0xff] }
 0x3a1   : > { %1839 = vmatpush.msrb.mxu3 %v1667_v27  ;;  %1799 = vmatpush.msrb.mxu1 %v1666_v7  ;;  %v1631_v29 = vld [vmem:[%s2922_s14 + $0x238] sm:$0xff]  ;;  %v1638_v24 = vld [vmem:[%s2922_s14 + $0x270] sm:$0xff]  ;;  %v1559_v27 = vld [vmem:[#allocation4] sm:$0xff] }
 0x3a2   : > { %1820 = vmatpush.msrb.mxu2 %v1599_v26  ;;  %1780 = vmatpush.msrb.mxu0 %v1598_v53  ;;  %v1563_v3 = vld [vmem:[%s2922_s14 + $0x18] sm:$0xff]  ;;  %v1570_v20 = vld [vmem:[%s2922_s14 + $0x50] sm:$0xff] }
 0x3a3   : > { %1840 = vmatpush.msrb.mxu3 %v1663_v4  ;;  %1800 = vmatpush.msrb.mxu1 %v1662_v47  ;;  %v1627_v36 = vld [vmem:[%s2922_s14 + $0x218] sm:$0xff]  ;;  %v1634_v22 = vld [vmem:[%s2922_s14 + $0x250] sm:$0xff] }
 0x3a4   : > { %1821 = vmatpush.msrb.mxu2 %v1595_v6  ;;  %1781 = vmatpush.msrb.mxu0 %v1594_v21  ;;  %v1566_v58 = vld [vmem:[%s2922_s14 + $0x30] sm:$0xff] }
 0x3a5   : > { %1841 = vmatpush.msrb.mxu3 %v1659_v56  ;;  %1801 = vmatpush.msrb.mxu1 %v1658_v11  ;;  %v1630_v18 = vld [vmem:[%s2922_s14 + $0x230] sm:$0xff] }
 0x3a6   : > { %1822 = vmatpush.msrb.mxu2 %v1591_v61  ;;  %1770 = vmatmul.f32.vlgmr.msra.gmra.mxu3 %v3644_v25  ;;  %v1562_v5 = vld [vmem:[%s2922_s14 + $0x10] sm:$0xff] }
 0x3a7   : > { %1842 = vmatpush.msrb.mxu3 %v1655_v16  ;;  %1750 = vmatmul.f32.vlgmr.msra.gmra.mxu2 %v3642_v33  ;;  %v1626_v31 = vld [vmem:[%s2922_s14 + $0x210] sm:$0xff] }
 0x3a8   : > { %1823 = vmatpush.msrb.mxu2 %v1587_v14  ;;  %1782 = vmatpush.msrb.mxu0 %v1590_v1 }
 0x3a9   : > { %1843 = vmatpush.msrb.mxu3 %v1651_v15  ;;  %1802 = vmatpush.msrb.mxu1 %v1654_v60 }
 0x3aa   : > { %1824 = vmatpush.msrb.mxu2 %v1583_v50  ;;  %1783 = vmatpush.msrb.mxu0 %v1586_v28 }
 0x3ab   : > { %1844 = vmatpush.msrb.mxu3 %v1647_v32  ;;  %1803 = vmatpush.msrb.mxu1 %v1650_v37 }
 0x3ac   : > { %1825 = vmatpush.msrb.mxu2 %v1579_v51  ;;  %1784 = vmatpush.msrb.mxu0 %v1582_v55 }
 0x3ad   : > { %1845 = vmatpush.msrb.mxu3 %v1643_v49  ;;  %1804 = vmatpush.msrb.mxu1 %v1646_v0 }
 0x3ae   : > { %1826 = vmatpush.msrb.mxu2 %v1575_v54  ;;  %1785 = vmatpush.msrb.mxu0 %v1578_v19 }
 0x3af   : > { %1846 = vmatpush.msrb.mxu3 %v1639_v34  ;;  %1805 = vmatpush.msrb.mxu1 %v1642_v59 }
 0x3b0   : > { %1827 = vmatpush.msrb.mxu2 %v1571_v44  ;;  %1710 = vmatmul.f32.vlgmr.msra.gmra.mxu0 %v3642_v33 }
 0x3b1   : > { %1847 = vmatpush.msrb.mxu3 %v1635_v23  ;;  %1730 = vmatmul.f32.vlgmr.msra.gmra.mxu1 %v3644_v25 }
 0x3b2   : > { %1828 = vmatpush.msrb.mxu2 %v1567_v62  ;;  %1786 = vmatpush.msrb.mxu0 %v1574_v40 }
 0x3b3   : > { %1848 = vmatpush.msrb.mxu3 %v1631_v29  ;;  %1806 = vmatpush.msrb.mxu1 %v1638_v24 }
 0x3b4   : > { %1829 = vmatpush.msrb.mxu2 %v1563_v3  ;;  %1787 = vmatpush.msrb.mxu0 %v1570_v20 }
 0x3b5   : > { %1849 = vmatpush.msrb.mxu3 %v1627_v36  ;;  %1830 = vmatmul.f32.vlgmr.msrb.gmra.mxu2 %v3642_v33 }
 0x3b6   : > { %1850 = vmatmul.f32.vlgmr.msrb.gmra.mxu3 %v3644_v25  ;;  %1807 = vmatpush.msrb.mxu1 %v1634_v22 }
 0x3b7   : > { %1788 = vmatpush.msrb.mxu0 %v1566_v58 }
 0x3b8   : > { %1808 = vmatpush.msrb.mxu1 %v1630_v18 }
 0x3b9   : > { %1789 = vmatpush.msrb.mxu0 %v1562_v5 }
 0x3ba   : > { %1809 = vmatpush.msrb.mxu1 %v1626_v31  ;;  %1790 = vmatmul.f32.vlgmr.msrb.gmra.mxu0 %v3642_v33 }
 0x3bb   : > { %1810 = vmatmul.f32.vlgmr.msrb.gmra.mxu1 %v3644_v25 }
 0x429   : > { %v1771_v43 = vpop.f32.mrf.mxu3 }
 0x42a   : > { %v1751_v63 = vpop.f32.mrf.mxu2 }
 0x42b   : > { %v1772_v2 = vadd.f32 %v1771_v43, %v1751_v63 }
 0x42d   : > { %v1711_v41 = vpop.f32.mrf.mxu0  ;;  %v1858_v9 = vrot.slane %v1772_v2, 6 }
 0x42e   : > { %v1731_v8 = vpop.f32.mrf.mxu1 }
 0x42f   : > { %v1732_v35 = vadd.f32 %v1731_v8, %v1711_v41 }
 0x431   : > { %v1862_v12 = vsel %vm1861_vm0, %v1732_v35, %v1858_v9 }
 0x437   : > { %v1791_v57 = vpop.f32.mrf.mxu0 }
 0x438   : > { %v1811_v39 = vpop.f32.mrf.mxu1  ;;  %v1831_v13 = vpop.f32.mrf.mxu2 }
 0x439   : > { %v1812_v52 = vadd.f32 %v1811_v39, %v1791_v57  ;;  %v1851_v46 = vpop.f32.mrf.mxu3 }
 0x43a   : > { %v1852_v45 = vadd.f32 %v1851_v46, %v1831_v13 }
 0x43b   : > { %v1859_v38 = vrot.slane %v1812_v52, 4 }
 0x43c   : > { %v1860_v17 = vrot.slane %v1852_v45, 2 }
 0x43e   : > { %v1864_v10 = vsel %vm1863_vm1, %v1859_v38, %v1860_v17  ;;  %1873 = sbr.rel (%p2231_p1) target bundleno = 1391 (0x56f), region = 104 }
 0x43f   : > { %v1866_v26 = vsel %vm1865_vm2, %v1862_v12, %v1864_v10 }
 0x440   : > { %v1868_v4 = vadd.f32 %v1866_v26, %v1559_v27 }
 0x442   : > { %1869 = vst [vmem:[#allocation4] sm:$0xff] %v1868_v4 }
 0x443   : > { %v1923_v48 = vld [vmem:[#allocation12 + $0x178] sm:$0xff]  ;;  %v1922_v6 = vld [vmem:[#allocation12 + $0x170] sm:$0xff]  ;;  %v1921_v61 = vld [vmem:[#allocation12 + $0x168] sm:$0xff]  ;;  %vm2075_vm3 = vcmask 132096  }
 0x444   : > { %v1891_v42 = vld [vmem:[#allocation12 + $0x78] sm:$0xff]  ;;  %1994 = vmatpush.msra.mxu2 %v1923_v48  ;;  %v1890_v30 = vld [vmem:[#allocation12 + $0x70] sm:$0xff]  ;;  %v1889_v53 = vld [vmem:[#allocation12 + $0x68] sm:$0xff] }
 0x445   : > { %1954 = vmatpush.msra.mxu0 %v1891_v42  ;;  %v1939_v56 = vld [vmem:[#allocation12 + $0x1f8] sm:$0xff]  ;;  %v1938_v16 = vld [vmem:[#allocation12 + $0x1f0] sm:$0xff]  ;;  %v1937_v14 = vld [vmem:[#allocation12 + $0x1e8] sm:$0xff] }
 0x446   : > { %v1907_v7 = vld [vmem:[#allocation12 + $0xf8] sm:$0xff]  ;;  %2014 = vmatpush.msra.mxu3 %v1939_v56  ;;  %1995 = vmatpush.msra.mxu2 %v1922_v6  ;;  %v1906_v47 = vld [vmem:[#allocation12 + $0xf0] sm:$0xff]  ;;  %v1920_v15 = vld [vmem:[#allocation12 + $0x160] sm:$0xff] }
 0x447   : > { %1974 = vmatpush.msra.mxu1 %v1907_v7  ;;  %1955 = vmatpush.msra.mxu0 %v1890_v30  ;;  %v1888_v21 = vld [vmem:[#allocation12 + $0x60] sm:$0xff]  ;;  %v1905_v11 = vld [vmem:[#allocation12 + $0xe8] sm:$0xff]  ;;  %v1919_v33 = vld [vmem:[#allocation12 + $0x158] sm:$0xff] }
 0x448   : > { %2015 = vmatpush.msra.mxu3 %v1938_v16  ;;  %1996 = vmatpush.msra.mxu2 %v1921_v61  ;;  %v1936_v50 = vld [vmem:[#allocation12 + $0x1e0] sm:$0xff]  ;;  %v1887_v25 = vld [vmem:[#allocation12 + $0x58] sm:$0xff]  ;;  %v1918_v51 = vld [vmem:[#allocation12 + $0x150] sm:$0xff] }
 0x449   : > { %1975 = vmatpush.msra.mxu1 %v1906_v47  ;;  %1956 = vmatpush.msra.mxu0 %v1889_v53  ;;  %v1904_v32 = vld [vmem:[#allocation12 + $0xe0] sm:$0xff]  ;;  %v1935_v1 = vld [vmem:[#allocation12 + $0x1d8] sm:$0xff]  ;;  %v1886_v49 = vld [vmem:[#allocation12 + $0x50] sm:$0xff] }
 0x44a   : > { %2016 = vmatpush.msra.mxu3 %v1937_v14  ;;  %1997 = vmatpush.msra.mxu2 %v1920_v15  ;;  %v1903_v60 = vld [vmem:[#allocation12 + $0xd8] sm:$0xff]  ;;  %v1934_v28 = vld [vmem:[#allocation12 + $0x1d0] sm:$0xff]  ;;  %v1917_v54 = vld [vmem:[#allocation12 + $0x148] sm:$0xff] }
 0x44b   : > { %1976 = vmatpush.msra.mxu1 %v1905_v11  ;;  %1957 = vmatpush.msra.mxu0 %v1888_v21  ;;  %v1902_v37 = vld [vmem:[#allocation12 + $0xd0] sm:$0xff]  ;;  %v1885_v34 = vld [vmem:[#allocation12 + $0x48] sm:$0xff]  ;;  %v1916_v44 = vld [vmem:[#allocation12 + $0x140] sm:$0xff] }
 0x44c   : > { %2017 = vmatpush.msra.mxu3 %v1936_v50  ;;  %1998 = vmatpush.msra.mxu2 %v1919_v33  ;;  %v1933_v55 = vld [vmem:[#allocation12 + $0x1c8] sm:$0xff]  ;;  %v1884_v23 = vld [vmem:[#allocation12 + $0x40] sm:$0xff]  ;;  %v1915_v62 = vld [vmem:[#allocation12 + $0x138] sm:$0xff] }
 0x44d   : > { %1977 = vmatpush.msra.mxu1 %v1904_v32  ;;  %1958 = vmatpush.msra.mxu0 %v1887_v25  ;;  %v1901_v0 = vld [vmem:[#allocation12 + $0xc8] sm:$0xff]  ;;  %v1932_v19 = vld [vmem:[#allocation12 + $0x1c0] sm:$0xff]  ;;  %v1883_v29 = vld [vmem:[#allocation12 + $0x38] sm:$0xff] }
 0x44e   : > { %2018 = vmatpush.msra.mxu3 %v1935_v1  ;;  %1999 = vmatpush.msra.mxu2 %v1918_v51  ;;  %v1900_v59 = vld [vmem:[#allocation12 + $0xc0] sm:$0xff]  ;;  %v1931_v40 = vld [vmem:[#allocation12 + $0x1b8] sm:$0xff]  ;;  %v1914_v3 = vld [vmem:[#allocation12 + $0x130] sm:$0xff] }
 0x44f   : > { %1978 = vmatpush.msra.mxu1 %v1903_v60  ;;  %1959 = vmatpush.msra.mxu0 %v1886_v49  ;;  %v1899_v24 = vld [vmem:[#allocation12 + $0xb8] sm:$0xff]  ;;  %v1882_v36 = vld [vmem:[#allocation12 + $0x30] sm:$0xff]  ;;  %v1913_v58 = vld [vmem:[#allocation12 + $0x128] sm:$0xff] }
 0x450   : > { %2019 = vmatpush.msra.mxu3 %v1934_v28  ;;  %2000 = vmatpush.msra.mxu2 %v1917_v54  ;;  %v1930_v20 = vld [vmem:[#allocation12 + $0x1b0] sm:$0xff]  ;;  %v1881_v18 = vld [vmem:[#allocation12 + $0x28] sm:$0xff]  ;;  %v1912_v41 = vld [vmem:[#allocation12 + $0x120] sm:$0xff] }
 0x451   : > { %1979 = vmatpush.msra.mxu1 %v1902_v37  ;;  %1960 = vmatpush.msra.mxu0 %v1885_v34  ;;  %v1898_v22 = vld [vmem:[#allocation12 + $0xb0] sm:$0xff]  ;;  %v1929_v5 = vld [vmem:[#allocation12 + $0x1a8] sm:$0xff]  ;;  %v1880_v8 = vld [vmem:[#allocation12 + $0x20] sm:$0xff] }
 0x452   : > { %2020 = vmatpush.msra.mxu3 %v1933_v55  ;;  %2001 = vmatpush.msra.mxu2 %v1916_v44  ;;  %v1897_v31 = vld [vmem:[#allocation12 + $0xa8] sm:$0xff]  ;;  %v1874_v63 = vld [vmem:[#allocation4] sm:$0xff]  ;;  %v1911_v39 = vld [vmem:[#allocation12 + $0x118] sm:$0xff] }
 0x453   : > { %1980 = vmatpush.msra.mxu1 %v1901_v0  ;;  %1961 = vmatpush.msra.mxu0 %v1884_v23  ;;  %v1928_v43 = vld [vmem:[#allocation12 + $0x1a0] sm:$0xff]  ;;  %v1875_v57 = vmax.f32 %v1874_v63, 0.0  ;;  %v1879_v52 = vld [vmem:[#allocation12 + $0x18] sm:$0xff]  ;;  %v1910_v9 = vld [vmem:[#allocation12 + $0x110] sm:$0xff] }
 0x454   : > { %2021 = vmatpush.msra.mxu3 %v1932_v19  ;;  %2002 = vmatpush.msra.mxu2 %v1915_v62  ;;  %v1896_v2 = vld [vmem:[#allocation12 + $0xa0] sm:$0xff]  ;;  %v1927_v13 = vld [vmem:[#allocation12 + $0x198] sm:$0xff]  ;;  %v1878_v35 = vld [vmem:[#allocation12 + $0x10] sm:$0xff] }
 0x455   : > { %1981 = vmatpush.msra.mxu1 %v1900_v59  ;;  %1962 = vmatpush.msra.mxu0 %v1883_v29  ;;  %v1895_v46 = vld [vmem:[#allocation12 + $0x98] sm:$0xff]  ;;  %1945 = vst [vmem:[#allocation1] ss:$4 sm:$0xff] %v1875_v57  ;;  %v1926_v45 = vld [vmem:[#allocation12 + $0x190] sm:$0xff]  ;;  %v1909_v17 = vld [vmem:[#allocation12 + $0x108] sm:$0xff] }
 0x456   : > { %2022 = vmatpush.msra.mxu3 %v1931_v40  ;;  %2003 = vmatpush.msra.mxu2 %v1914_v3  ;;  %v1894_v38 = vld [vmem:[#allocation12 + $0x90] sm:$0xff]  ;;  %v1877_v27 = vld [vmem:[#allocation12 + $0x8] sm:$0xff]  ;;  %v1908_v26 = vld [vmem:[#allocation12 + $0x100] sm:$0xff] }
 0x457   : > { %1982 = vmatpush.msra.mxu1 %v1899_v24  ;;  %1963 = vmatpush.msra.mxu0 %v1882_v36  ;;  %v1925_v12 = vld [vmem:[#allocation12 + $0x188] sm:$0xff]  ;;  %v1876_v4 = vld [vmem:[#allocation12] sm:$0xff]  ;;  %v2049_v16 = vld [vmem:[%s3756_s10 + $0x70] sm:$0xff] }
 0x458   : > { %2023 = vmatpush.msra.mxu3 %v1930_v20  ;;  %2004 = vmatpush.msra.mxu2 %v1913_v58  ;;  %v1893_v10 = vld [vmem:[#allocation12 + $0x88] sm:$0xff]  ;;  %v1924_v48 = vld [vmem:[#allocation12 + $0x180] sm:$0xff]  ;;  %v2048_v53 = vld [vmem:[%s3756_s10 + $0x68] sm:$0xff] }
 0x459   : > { %1983 = vmatpush.msra.mxu1 %v1898_v22  ;;  %1964 = vmatpush.msra.mxu0 %v1881_v18  ;;  %v1892_v30 = vld [vmem:[#allocation12 + $0x80] sm:$0xff]  ;;  %v2047_v47 = vld [vmem:[%s3756_s10 + $0x60] sm:$0xff]  ;;  %v2045_v15 = vld [vmem:[%s3756_s10 + $0x50] sm:$0xff] }
 0x45a   : > { %2024 = vmatpush.msra.mxu3 %v1929_v5  ;;  %2005 = vmatpush.msra.mxu2 %v1912_v41  ;;  %v2050_v7 = vld [vmem:[%s3756_s10 + $0x78] sm:$0xff]  ;;  %v2044_v21 = vld [vmem:[%s3756_s10 + $0x48] sm:$0xff]  ;;  %v2043_v11 = vld [vmem:[%s3756_s10 + $0x40] sm:$0xff] }
 0x45b   : > { %1984 = vmatpush.msra.mxu1 %v1897_v31  ;;  %1965 = vmatpush.msra.mxu0 %v1880_v8  ;;  %v2046_v14 = vld [vmem:[%s3756_s10 + $0x58] sm:$0xff]  ;;  %v2041_v32 = vld [vmem:[%s3756_s10 + $0x30] sm:$0xff]  ;;  %v2040_v33 = vld [vmem:[%s3756_s10 + $0x28] sm:$0xff] }
 0x45c   : > { %2025 = vmatpush.msra.mxu3 %v1928_v43  ;;  %2006 = vmatpush.msra.mxu2 %v1911_v39  ;;  %v1948_v42 = vld.sshfl [vmem:[#allocation1 + $0x10] sm:$0xff pattern:$0x73625140]  ;;  %v1946_v6 = vld.sshfl [vmem:[#allocation1] sm:$0xff pattern:$0x73625140] }
 0x45d   : > { %1985 = vmatpush.msra.mxu1 %v1896_v2  ;;  %1966 = vmatpush.msra.mxu0 %v1879_v52  ;;  %v1949_v56 = vld.sshfl [vmem:[#allocation1 + $0x18] sm:$0xff pattern:$0x73625140]  ;;  %v1947_v61 = vld.sshfl [vmem:[#allocation1 + $0x8] sm:$0xff pattern:$0x73625140] }
 0x45e   : > { %2026 = vmatpush.msra.mxu3 %v1927_v13  ;;  %2007 = vmatpush.msra.mxu2 %v1910_v9  ;;  %v2042_v50 = vld [vmem:[%s3756_s10 + $0x38] sm:$0xff]  ;;  %v2039_v25 = vld [vmem:[%s3756_s10 + $0x20] sm:$0xff]  ;;  %v2037_v60 = vld [vmem:[%s3756_s10 + $0x10] sm:$0xff] }
 0x45f   : > { %1986 = vmatpush.msra.mxu1 %v1895_v46  ;;  %1967 = vmatpush.msra.mxu0 %v1878_v35  ;;  %v2038_v1 = vld [vmem:[%s3756_s10 + $0x18] sm:$0xff]  ;;  %v2036_v51 = vld [vmem:[%s3756_s10 + $0x8] sm:$0xff]  ;;  %v2035_v49 = vld [vmem:[%s3756_s10] sm:$0xff] }
 0x460   : > { %2027 = vmatpush.msra.mxu3 %v1926_v45  ;;  %2008 = vmatpush.msra.mxu2 %v1909_v17  ;;  %v2403_v28 = vld [vmem:[#allocation14] ss:$0 sm:$0xff]  ;;  %v2404_v62 = vld [vmem:[#allocation15] ss:$0 sm:$0xff] }
 0x461   : > { %1987 = vmatpush.msra.mxu1 %v1894_v38  ;;  %1968 = vmatpush.msra.mxu0 %v1877_v27 }
 0x462   : > { %2028 = vmatpush.msra.mxu3 %v1925_v12  ;;  %2009 = vmatpush.msra.mxu2 %v1908_v26 }
 0x463   : > { %1988 = vmatpush.msra.mxu1 %v1893_v10  ;;  %1969 = vmatpush.msra.mxu0 %v1876_v4 }
 0x464   : > { %2010 = vmatmul.f32.vlgmr.msra.gmra.mxu2 %v1948_v42  ;;  %2029 = vmatpush.msra.mxu3 %v1924_v48 }
 0x465   : > { %1970 = vmatmul.f32.vlgmr.msra.gmra.mxu0 %v1946_v6  ;;  %2030 = vmatmul.f32.vlgmr.msra.gmra.mxu3 %v1949_v56 }
 0x466   : > { %1989 = vmatpush.msra.mxu1 %v1892_v30  ;;  %2055 = vmatpush.msrb.mxu0 %v2050_v7 }
 0x467   : > { %1990 = vmatmul.f32.vlgmr.msra.gmra.mxu1 %v1947_v61 }
 0x468   : > { %2056 = vmatpush.msrb.mxu0 %v2049_v16 }
 0x46a   : > { %2057 = vmatpush.msrb.mxu0 %v2048_v53 }
 0x46c   : > { %2058 = vmatpush.msrb.mxu0 %v2047_v47 }
 0x46e   : > { %2059 = vmatpush.msrb.mxu0 %v2046_v14 }
 0x470   : > { %2060 = vmatpush.msrb.mxu0 %v2045_v15 }
 0x472   : > { %2061 = vmatpush.msrb.mxu0 %v2044_v21 }
 0x474   : > { %2062 = vmatpush.msrb.mxu0 %v2043_v11 }
 0x476   : > { %2063 = vmatpush.msrb.mxu0 %v2042_v50 }
 0x478   : > { %2064 = vmatpush.msrb.mxu0 %v2041_v32 }
 0x47a   : > { %2065 = vmatpush.msrb.mxu0 %v2040_v33 }
 0x47c   : > { %2066 = vmatpush.msrb.mxu0 %v2039_v25 }
 0x47e   : > { %2067 = vmatpush.msrb.mxu0 %v2038_v1 }
 0x480   : > { %2068 = vmatpush.msrb.mxu0 %v2037_v60 }
 0x482   : > { %2069 = vmatpush.msrb.mxu0 %v2036_v51 }
 0x484   : > { %2070 = vmatpush.msrb.mxu0 %v2035_v49 }
 0x4e2   : > { %v1971_v37 = vpop.f32.mrf.mxu0 }
 0x4e3   : > { %v1972_v54 = vadd.f32 %v2403_v28, %v1971_v37 }
 0x4e4   : > { %v1991_v34 = vpop.f32.mrf.mxu1 }
 0x4e5   : > { %v1992_v55 = vadd.f32 %v1991_v34, %v1972_v54 }
 0x4e7   : > { %v2011_v0 = vpop.f32.mrf.mxu2 }
 0x4e8   : > { %v2012_v44 = vadd.f32 %v2011_v0, %v1992_v55  ;;  %v2031_v23 = vpop.f32.mrf.mxu3 }
 0x4ea   : > { %v2032_v19 = vadd.f32 %v2031_v23, %v2012_v44 }
 0x4ec   : > { %v2034_v59 = vmax.f32 %v2032_v19, 0.0 }
 0x4ee   : > { %2071 = vmatmul.f32.vlgmr.msrb.gmra.mxu0 %v2034_v59 }
 0x56b   : > { %v2072_v29 = vpop.f32.mrf.mxu0 }
 0x56c   : > { %v2073_v40 = vadd.f32 %v2404_v62, %v2072_v29 }
 0x56e   : > { %2076 = vst.msk [vmem:[#allocation17] sm:$0x3] %vm2075_vm3, %v2073_v40 }
 0x56f PF: > { %p2304_p3 = scmp.eq.s32.totalorder %s2822_s28, 3  ;;  %s2732_s14 = smov [#allocation17]  }
 0x570   : > { %s2083_s21 = sshll.u32 %s2732_s14, 4  ;;  %s3768_s18 = sld [smem:[#allocation27_spill]]  ;;  %s2084_s21 = int_to_ptr.vmem [resolvable:$true] %s2083_s21 }
 0x576   : > { %s2085_s27 = sshll.u32 %s3768_s18, 4  ;;  %s2086_s27 = int_to_ptr.hbm [resolvable:$true] %s2085_s27 }
 0x577   : > { %2265 = dma.vmem_to_hbm [thread:$0]  (%p2304_p3), %s2084_s21, 32, %s2086_s27, [#allocation7]  }
 0x578   : > { %2684 = dma.done.wait (%p2304_p3), [#allocation7], 32  }
 0x579   : > { %2686 = vsyncadd (%p2304_p3), [#allocation7], 4294967264 }
 0x57a PF: > { %p24_p4 = scmp.ge.s32.totalorder %s2868_s15, 6   ;;  %s3769_s21 = smov %s2693_s22 }
 0x57b   : > { %s3770_s22 = smov %s2697_s23  ;;  %s3771_s23 = smov %s2880_s13 }
 0x57c   : > { %s3772_s24 = smov %s2868_s15  ;;  %26 = sbr.rel (!%p24_p4) target bundleno = 10 (0xa), region = 161 }
 0x581   :  { %2099 = vsyncpa [#allocation6], 1 }
 0x582   :  { %2101 = vsyncpa [#allocation6 + $0x1], 1 }
 0x583   :  { %2102 = vsyncpa [#allocation9], 1 }
 0x584   :  { %2103 = vsyncpa [#allocation13], 1 }
 0x585   :  { %2104 = vsyncpa [#allocation16], 1 }
 0x586   :  { %2105 = vsyncpa [#allocation7], 1 }
 0x587   :  { %2107 = vsyncpa [#allocation7 + $0x1], 1 }

</bundles_post_ra>
